<compile_context>
chip_gen: v6e
topology: v6e:2x2x1
jax: 0.10.0
libtpu: 0.0.40
codegen_flags: <defaults>
</compile_context>

<pallas_src>
import functools
import math

import jax
import jax.numpy as jnp
from jax.experimental import pallas as pl
from jax.experimental.pallas import tpu as pltpu


# ----------------------------- Pallas kernel ------------------------------- #
def _make_kernel(B, C, H, W, Ho, Wo, G, Gc):
    CWo = C * Wo
    n_chunks = G // Gc
    chunk_lanes = Gc * CWo

    def kernel(gyt_ref, gxb_ref, fmap_ref, out_ref):
        # gyt_ref  : (G, Ho, H)       f32  per-box y-interp matrices (transposed)
        # gxb_ref  : (1, B*W, G*Wo)   f32  grouped, batch-folded x-interp matrix
        # fmap_ref : (C*H, B*W)       f32  whole featuremap, resident in VMEM
        #                                  (memory_space=VMEM -> single-buffered)
        # out_ref  : (1, Ho, G*C*Wo)       lane-dense output block for the group
        f = fmap_ref[...]                                     # (C*H, B*W)

        # (1) Grouped x-contraction: ONE lane-dense MXU matmul per group.
        #     Batch selection is folded into gxb's row index, so mixed-batch
        #     groups need no per-box slab select.
        t = jnp.dot(f, gxb_ref[0], preferred_element_type=jnp.float32)
        t3 = t.reshape(C, H, G * Wo)       # leading-dim split only (no relayout)

        # (2) Per-box y-contraction as a single 2-D matmul (Ho,H)@(H,C*Wo).
        #     Boxes are processed in chunks of Gc so every store is one
        #     full-width, 128-lane-aligned store and live ranges stay
        #     chunk-sized.  Padded boxes have all-zero interp matrices and
        #     just produce zeros that are sliced off in the wrapper.
        for k in range(n_chunks):
            tiles = []
            for j in range(Gc):
                i = k * Gc + j
                # explicit (C, H, Wo) -> (H, C*Wo) relayout via static slices
                # + lane concatenate (the relayout the review asked for).
                t_i = jnp.concatenate(
                    [t3[c, :, i * Wo:(i + 1) * Wo] for c in range(C)], axis=-1)
                tiles.append(jnp.dot(gyt_ref[i], t_i,
                                     preferred_element_type=jnp.float32))
            out_ref[0, :, k * chunk_lanes:(k + 1) * chunk_lanes] = (
                jnp.concatenate(tiles, axis=-1).astype(out_ref.dtype))

    return kernel


# ------------------------------ JAX wrapper -------------------------------- #
@functools.partial(jax.jit, static_argnames=("extract_shape",))
def roi_align_inner(featuremap, boxes, box_sample_association, extract_shape):
    """Pallas equivalent of RoiAlignInner.forward (padding=None path).

    featuremap: (B, C, H, W) float32   boxes: (N, 2, 2) float32 [start, stop]
    box_sample_association: (N,) int   -> returns (N, C, Ho, Wo)
    """
    B, C, H, W = featuremap.shape
    Ho, Wo = extract_shape
    N = boxes.shape[0]
    dtype = featuremap.dtype
    CWo = C * Wo

    # --- PyTorch coordinate / weight math (cheap XLA glue) ------------------
    start = boxes[:, 0, :]                                    # (N, 2)
    stop = boxes[:, 1, :]                                     # (N, 2)
    shape_m1 = jnp.asarray(extract_shape, dtype=boxes.dtype) - 1
    step = (stop - start) / shape_m1   # same div-by-zero semantics as PyTorch

    ys = jnp.minimum(jnp.arange(Ho, dtype=boxes.dtype)[None, :] * step[:, 0:1]
                     + start[:, 0:1], stop[:, 0:1])           # (N, Ho)
    xs = jnp.minimum(jnp.arange(Wo, dtype=boxes.dtype)[None, :] * step[:, 1:2]
                     + start[:, 1:2], stop[:, 1:2])           # (N, Wo)

    y_fl, y_ce = jnp.floor(ys), jnp.ceil(ys)
    x_fl, x_ce = jnp.floor(xs), jnp.ceil(xs)
    y_idx = jnp.stack([y_fl, y_ce], axis=1).astype(jnp.int32)    # (N, 2, Ho)
    x_idx = jnp.stack([x_fl, x_ce], axis=1).astype(jnp.int32)    # (N, 2, Wo)
    wy1 = (ys - y_fl).astype(dtype)
    wx1 = (xs - x_fl).astype(dtype)
    y_wt = jnp.stack([1 - wy1, wy1], axis=1)                     # (N, 2, Ho)
    x_wt = jnp.stack([1 - wx1, wx1], axis=1)                     # (N, 2, Wo)

    # y-interp matrices (transposed): (N, Ho, H); out-of-range y rows give 0.
    hh = jnp.arange(H, dtype=jnp.int32)
    gyT = jnp.sum((y_idx[:, :, :, None] == hh).astype(dtype)
                  * y_wt[:, :, :, None], axis=1)                 # (N, Ho, H)

    # Batch-folded x-interp matrices: (N, B*W, Wo).  Row index = b*W + w, so
    # the kernel's grouped matmul selects the right batch slab implicitly.
    assoc = box_sample_association.astype(jnp.int32)
    x_ok = (x_idx >= 0) & (x_idx < W)                 # guard cross-batch alias
    x_wt = jnp.where(x_ok, x_wt, jnp.zeros_like(x_wt))
    x_row = jnp.clip(x_idx, 0, W - 1) + assoc[:, None, None] * W   # (N, 2, Wo)
    rr = jnp.arange(B * W, dtype=jnp.int32)
    gxb = jnp.sum((x_row[:, :, None, :] == rr[None, None, :, None]).astype(dtype)
                  * x_wt[:, :, None, :], axis=1)                 # (N, B*W, Wo)

    # --- grouping: fill the MXU (G*Wo >= 256) and keep stores 128-aligned ---
    Gc = max(1, 128 // CWo) if CWo < 128 else 1   # boxes per ~128-lane store chunk
    G = Gc * max(1, math.ceil(math.ceil(256 / Wo) / Gc))
    N_pad = math.ceil(N / G) * G
    NG = N_pad // G
    if N_pad != N:
        pad = N_pad - N
        gyT = jnp.pad(gyT, ((0, pad), (0, 0), (0, 0)))   # zero -> zero output
        gxb = jnp.pad(gxb, ((0, pad), (0, 0), (0, 0)))

    # Pack the G boxes of each group along lanes: (NG, B*W, G*Wo) -> dense DMA
    # and a lane-dense grouped matmul RHS.
    gxb_grp = (gxb.reshape(NG, G, B * W, Wo)
                  .transpose(0, 2, 1, 3)
                  .reshape(NG, B * W, G * Wo))

    # Featuremap as (C*H, B*W): rows c*H+h, cols b*W+w.
    fmap2 = featuremap.transpose(1, 2, 0, 3).reshape(C * H, B * W)

    kernel = _make_kernel(B, C, H, W, Ho, Wo, G, Gc)

    # Explicit scoped-VMEM limit (default 16/32 MiB is far below physical).
    try:
        info = pltpu.get_tpu_info()
        vmem_limit = int(min(info.vmem_capacity_bytes - (8 << 20), 100 << 20))
        vmem_limit = max(vmem_limit, 32 << 20)
    except Exception:
        vmem_limit = 64 << 20

    cost = pl.CostEstimate(
        flops=2 * NG * (C * H) * (B * W) * (G * Wo)      # grouped x-matmul
        + 2 * N_pad * Ho * H * CWo,                       # per-box y-matmuls
        transcendentals=0,
        bytes_accessed=4 * (fmap2.size + gyT.size + gxb_grp.size
                            + NG * Ho * G * CWo),
    )

    out_grp = pl.pallas_call(
        kernel,
        out_shape=jax.ShapeDtypeStruct((NG, Ho, G * CWo), dtype),
        grid=(NG,),
        in_specs=[
            pl.BlockSpec((G, Ho, H), lambda g: (g, 0, 0)),
            pl.BlockSpec((1, B * W, G * Wo), lambda g: (g, 0, 0)),
            # whole featuremap resident in VMEM, not pipelined (single buffer)
            pl.BlockSpec(memory_space=pltpu.MemorySpace.VMEM),
        ],
        out_specs=pl.BlockSpec((1, Ho, G * CWo), lambda g: (g, 0, 0)),
        compiler_params=pltpu.CompilerParams(
            dimension_semantics=("parallel",),
            vmem_limit_bytes=vmem_limit),
        cost_estimate=cost,
    )(gyT, gxb_grp, fmap2)

    # Layout plumbing back to PyTorch's (N, C, Ho, Wo).
    out = (out_grp.reshape(NG, Ho, G, C, Wo)
                  .transpose(0, 2, 3, 1, 4)
                  .reshape(N_pad, C, Ho, Wo))
    return out[:N]


# ---------------------------- pure-JAX reference ---------------------------- #
def roi_align_ref(featuremap, boxes, assoc, extract_shape):
    Ho, Wo = extract_shape
    start = boxes[:, 0, :]
    stop = boxes[:, 1, :]
    step = (stop - start) / (jnp.asarray(extract_shape, boxes.dtype) - 1)
    ys = jnp.minimum(jnp.arange(Ho, dtype=boxes.dtype)[None] * step[:, 0:1]
                     + start[:, 0:1], stop[:, 0:1])
    xs = jnp.minimum(jnp.arange(Wo, dtype=boxes.dtype)[None] * step[:, 1:2]
                     + start[:, 1:2], stop[:, 1:2])
    y0, y1 = jnp.floor(ys), jnp.ceil(ys)
    x0, x1 = jnp.floor(xs), jnp.ceil(xs)
    wy1 = ys - y0
    wy0 = 1.0 - wy1
    wx1 = xs - x0
    wx0 = 1.0 - wx1
    fm = featuremap[assoc]   # (N, C, H, W)

    def one(fm_b, y0b, y1b, x0b, x1b, wy0b, wy1b, wx0b, wx1b):
        def g(yi, xi):
            t = jnp.take(fm_b, yi.astype(jnp.int32), axis=1)
            return jnp.take(t, xi.astype(jnp.int32), axis=2)
        return (g(y0b, x0b) * (wy0b[:, None] * wx0b[None, :])[None]
                + g(y0b, x1b) * (wy0b[:, None] * wx1b[None, :])[None]
                + g(y1b, x0b) * (wy1b[:, None] * wx0b[None, :])[None]
                + g(y1b, x1b) * (wy1b[:, None] * wx1b[None, :])[None])

    return jax.vmap(one)(fm, y0, y1, x0, x1, wy0, wy1, wx0, wx1)


# ----------------------------------- main ----------------------------------- #
if __name__ == "__main__":
    B, C, H, W = 2, 4, 16, 16
    N = 5
    extract_shape = (4, 4)

    key = jax.random.PRNGKey(0)
    k1, k2, k3, k4 = jax.random.split(key, 4)
    featuremap = jax.random.normal(k1, (B, C, H, W), dtype=jnp.float32)
    start = jax.random.uniform(k2, (N, 2), minval=0.0, maxval=9.0)
    extent = jax.random.uniform(k3, (N, 2), minval=1.0, maxval=5.0)
    boxes = jnp.stack([start, start + extent], axis=1)      # (N, 2, 2), in-bounds
    assoc = jax.random.randint(k4, (N,), 0, B)

    out = roi_align_inner(featuremap, boxes, assoc, extract_shape)
    out = jax.block_until_ready(out)

    ref = roi_align_ref(featuremap, boxes, assoc, extract_shape)
    assert out.shape == (N, C, *extract_shape), out.shape
    err = float(jnp.max(jnp.abs(out - ref)))
    assert jnp.allclose(out, ref, rtol=1e-3, atol=1e-3), err

    print("KERNEL_OK")
</pallas_src>

<mosaic_0001>
module attributes {stable_mosaic.version = 11 : i64} {
  func.func @kernel(%arg0: i32, %arg1: memref<64x4x16xf32, #tpu.memory_space<vmem>>, %arg2: memref<1x32x256xf32, #tpu.memory_space<vmem>>, %arg3: memref<64x32xf32, #tpu.memory_space<vmem>>, %arg4: memref<1x4x1024xf32, #tpu.memory_space<vmem>>) attributes {dimension_semantics = [#tpu.dimension_semantics<parallel>], iteration_bounds = array<i64: 1>, scalar_prefetch = 0 : i64, scratch_operands = 0 : i64, tpu.core_type = #tpu.core_type<tc>, window_params = [{transform_indices = @transform_0, window_bounds = array<i64: 64, 4, 16>}, {transform_indices = @transform_1, window_bounds = array<i64: 1, 32, 256>}, {pipeline_mode = #tpu.pipeline_mode<synchronous>, transform_indices = @transform_2, window_bounds = array<i64: 64, 32>}, {transform_indices = @transform_3, window_bounds = array<i64: 1, 4, 1024>}]} {
    %c0 = arith.constant 0 : index
    %c0_0 = arith.constant 0 : index
    %0 = vector.load %arg3[%c0, %c0_0] : memref<64x32xf32, #tpu.memory_space<vmem>>, vector<64x32xf32>
    %c0_1 = arith.constant 0 : index
    %c0_2 = arith.constant 0 : index
    %c0_3 = arith.constant 0 : index
    %1 = vector.load %arg2[%c0_1, %c0_2, %c0_3] : memref<1x32x256xf32, #tpu.memory_space<vmem>>, vector<1x32x256xf32>
    %2 = vector.shape_cast %1 : vector<1x32x256xf32> to vector<32x256xf32>
    %cst = arith.constant dense<0.000000e+00> : vector<64x256xf32>
    %3 = tpu.matmul %0, %2, %cst {dimension_numbers = #tpu.dot_dimension_numbers<[1], [0], [0], [1], [0, 0, 1, 1], [], []>} : vector<64x32xf32>, vector<32x256xf32>, vector<64x256xf32> -> vector<64x256xf32>
    %4 = vector.shape_cast %3 : vector<64x256xf32> to vector<4x16x256xf32>
    %5 = vector.extract_strided_slice %4 {offsets = [0, 0, 0], sizes = [1, 16, 4], strides = [1, 1, 1]} : vector<4x16x256xf32> to vector<1x16x4xf32>
    %6 = vector.shape_cast %5 : vector<1x16x4xf32> to vector<16x4xf32>
    %7 = vector.extract_strided_slice %4 {offsets = [1, 0, 0], sizes = [1, 16, 4], strides = [1, 1, 1]} : vector<4x16x256xf32> to vector<1x16x4xf32>
    %8 = vector.shape_cast %7 : vector<1x16x4xf32> to vector<16x4xf32>
    %9 = vector.extract_strided_slice %4 {offsets = [2, 0, 0], sizes = [1, 16, 4], strides = [1, 1, 1]} : vector<4x16x256xf32> to vector<1x16x4xf32>
    %10 = vector.shape_cast %9 : vector<1x16x4xf32> to vector<16x4xf32>
    %11 = vector.extract_strided_slice %4 {offsets = [3, 0, 0], sizes = [1, 16, 4], strides = [1, 1, 1]} : vector<4x16x256xf32> to vector<1x16x4xf32>
    %12 = vector.shape_cast %11 : vector<1x16x4xf32> to vector<16x4xf32>
    %13 = tpu.concatenate %6, %8, %10, %12 in 1 : vector<16x4xf32>, vector<16x4xf32>, vector<16x4xf32>, vector<16x4xf32> -> vector<16x16xf32>
    %c0_4 = arith.constant 0 : index
    %c0_5 = arith.constant 0 : index
    %c0_6 = arith.constant 0 : index
    %14 = vector.load %arg1[%c0_4, %c0_5, %c0_6] : memref<64x4x16xf32, #tpu.memory_space<vmem>>, vector<1x4x16xf32>
    %15 = vector.shape_cast %14 : vector<1x4x16xf32> to vector<4x16xf32>
    %cst_7 = arith.constant dense<0.000000e+00> : vector<4x16xf32>
    %16 = tpu.matmul %15, %13, %cst_7 {dimension_numbers = #tpu.dot_dimension_numbers<[1], [0], [0], [1], [0, 0, 1, 1], [], []>} : vector<4x16xf32>, vector<16x16xf32>, vector<4x16xf32> -> vector<4x16xf32>
    %17 = vector.extract_strided_slice %4 {offsets = [0, 0, 4], sizes = [1, 16, 4], strides = [1, 1, 1]} : vector<4x16x256xf32> to vector<1x16x4xf32>
    %18 = vector.shape_cast %17 : vector<1x16x4xf32> to vector<16x4xf32>
    %19 = vector.extract_strided_slice %4 {offsets = [1, 0, 4], sizes = [1, 16, 4], strides = [1, 1, 1]} : vector<4x16x256xf32> to vector<1x16x4xf32>
    %20 = vector.shape_cast %19 : vector<1x16x4xf32> to vector<16x4xf32>
    %21 = vector.extract_strided_slice %4 {offsets = [2, 0, 4], sizes = [1, 16, 4], strides = [1, 1, 1]} : vector<4x16x256xf32> to vector<1x16x4xf32>
    %22 = vector.shape_cast %21 : vector<1x16x4xf32> to vector<16x4xf32>
    %23 = vector.extract_strided_slice %4 {offsets = [3, 0, 4], sizes = [1, 16, 4], strides = [1, 1, 1]} : vector<4x16x256xf32> to vector<1x16x4xf32>
    %24 = vector.shape_cast %23 : vector<1x16x4xf32> to vector<16x4xf32>
    %25 = tpu.concatenate %18, %20, %22, %24 in 1 : vector<16x4xf32>, vector<16x4xf32>, vector<16x4xf32>, vector<16x4xf32> -> vector<16x16xf32>
    %c1 = arith.constant 1 : index
    %c0_8 = arith.constant 0 : index
    %c0_9 = arith.constant 0 : index
    %26 = vector.load %arg1[%c1, %c0_8, %c0_9] : memref<64x4x16xf32, #tpu.memory_space<vmem>>, vector<1x4x16xf32>
    %27 = vector.shape_cast %26 : vector<1x4x16xf32> to vector<4x16xf32>
    %cst_10 = arith.constant dense<0.000000e+00> : vector<4x16xf32>
    %28 = tpu.matmul %27, %25, %cst_10 {dimension_numbers = #tpu.dot_dimension_numbers<[1], [0], [0], [1], [0, 0, 1, 1], [], []>} : vector<4x16xf32>, vector<16x16xf32>, vector<4x16xf32> -> vector<4x16xf32>
    %29 = vector.extract_strided_slice %4 {offsets = [0, 0, 8], sizes = [1, 16, 4], strides = [1, 1, 1]} : vector<4x16x256xf32> to vector<1x16x4xf32>
    %30 = vector.shape_cast %29 : vector<1x16x4xf32> to vector<16x4xf32>
    %31 = vector.extract_strided_slice %4 {offsets = [1, 0, 8], sizes = [1, 16, 4], strides = [1, 1, 1]} : vector<4x16x256xf32> to vector<1x16x4xf32>
    %32 = vector.shape_cast %31 : vector<1x16x4xf32> to vector<16x4xf32>
    %33 = vector.extract_strided_slice %4 {offsets = [2, 0, 8], sizes = [1, 16, 4], strides = [1, 1, 1]} : vector<4x16x256xf32> to vector<1x16x4xf32>
    %34 = vector.shape_cast %33 : vector<1x16x4xf32> to vector<16x4xf32>
    %35 = vector.extract_strided_slice %4 {offsets = [3, 0, 8], sizes = [1, 16, 4], strides = [1, 1, 1]} : vector<4x16x256xf32> to vector<1x16x4xf32>
    %36 = vector.shape_cast %35 : vector<1x16x4xf32> to vector<16x4xf32>
    %37 = tpu.concatenate %30, %32, %34, %36 in 1 : vector<16x4xf32>, vector<16x4xf32>, vector<16x4xf32>, vector<16x4xf32> -> vector<16x16xf32>
    %c2 = arith.constant 2 : index
    %c0_11 = arith.constant 0 : index
    %c0_12 = arith.constant 0 : index
    %38 = vector.load %arg1[%c2, %c0_11, %c0_12] : memref<64x4x16xf32, #tpu.memory_space<vmem>>, vector<1x4x16xf32>
    %39 = vector.shape_cast %38 : vector<1x4x16xf32> to vector<4x16xf32>
    %cst_13 = arith.constant dense<0.000000e+00> : vector<4x16xf32>
    %40 = tpu.matmul %39, %37, %cst_13 {dimension_numbers = #tpu.dot_dimension_numbers<[1], [0], [0], [1], [0, 0, 1, 1], [], []>} : vector<4x16xf32>, vector<16x16xf32>, vector<4x16xf32> -> vector<4x16xf32>
    %41 = vector.extract_strided_slice %4 {offsets = [0, 0, 12], sizes = [1, 16, 4], strides = [1, 1, 1]} : vector<4x16x256xf32> to vector<1x16x4xf32>
    %42 = vector.shape_cast %41 : vector<1x16x4xf32> to vector<16x4xf32>
    %43 = vector.extract_strided_slice %4 {offsets = [1, 0, 12], sizes = [1, 16, 4], strides = [1, 1, 1]} : vector<4x16x256xf32> to vector<1x16x4xf32>
    %44 = vector.shape_cast %43 : vector<1x16x4xf32> to vector<16x4xf32>
    %45 = vector.extract_strided_slice %4 {offsets = [2, 0, 12], sizes = [1, 16, 4], strides = [1, 1, 1]} : vector<4x16x256xf32> to vector<1x16x4xf32>
    %46 = vector.shape_cast %45 : vector<1x16x4xf32> to vector<16x4xf32>
    %47 = vector.extract_strided_slice %4 {offsets = [3, 0, 12], sizes = [1, 16, 4], strides = [1, 1, 1]} : vector<4x16x256xf32> to vector<1x16x4xf32>
    %48 = vector.shape_cast %47 : vector<1x16x4xf32> to vector<16x4xf32>
    %49 = tpu.concatenate %42, %44, %46, %48 in 1 : vector<16x4xf32>, vector<16x4xf32>, vector<16x4xf32>, vector<16x4xf32> -> vector<16x16xf32>
    %c3 = arith.constant 3 : index
    %c0_14 = arith.constant 0 : index
    %c0_15 = arith.constant 0 : index
    %50 = vector.load %arg1[%c3, %c0_14, %c0_15] : memref<64x4x16xf32, #tpu.memory_space<vmem>>, vector<1x4x16xf32>
    %51 = vector.shape_cast %50 : vector<1x4x16xf32> to vector<4x16xf32>
    %cst_16 = arith.constant dense<0.000000e+00> : vector<4x16xf32>
    %52 = tpu.matmul %51, %49, %cst_16 {dimension_numbers = #tpu.dot_dimension_numbers<[1], [0], [0], [1], [0, 0, 1, 1], [], []>} : vector<4x16xf32>, vector<16x16xf32>, vector<4x16xf32> -> vector<4x16xf32>
    %53 = vector.extract_strided_slice %4 {offsets = [0, 0, 16], sizes = [1, 16, 4], strides = [1, 1, 1]} : vector<4x16x256xf32> to vector<1x16x4xf32>
    %54 = vector.shape_cast %53 : vector<1x16x4xf32> to vector<16x4xf32>
    %55 = vector.extract_strided_slice %4 {offsets = [1, 0, 16], sizes = [1, 16, 4], strides = [1, 1, 1]} : vector<4x16x256xf32> to vector<1x16x4xf32>
    %56 = vector.shape_cast %55 : vector<1x16x4xf32> to vector<16x4xf32>
    %57 = vector.extract_strided_slice %4 {offsets = [2, 0, 16], sizes = [1, 16, 4], strides = [1, 1, 1]} : vector<4x16x256xf32> to vector<1x16x4xf32>
    %58 = vector.shape_cast %57 : vector<1x16x4xf32> to vector<16x4xf32>
    %59 = vector.extract_strided_slice %4 {offsets = [3, 0, 16], sizes = [1, 16, 4], strides = [1, 1, 1]} : vector<4x16x256xf32> to vector<1x16x4xf32>
    %60 = vector.shape_cast %59 : vector<1x16x4xf32> to vector<16x4xf32>
    %61 = tpu.concatenate %54, %56, %58, %60 in 1 : vector<16x4xf32>, vector<16x4xf32>, vector<16x4xf32>, vector<16x4xf32> -> vector<16x16xf32>
    %c4 = arith.constant 4 : index
    %c0_17 = arith.constant 0 : index
    %c0_18 = arith.constant 0 : index
    %62 = vector.load %arg1[%c4, %c0_17, %c0_18] : memref<64x4x16xf32, #tpu.memory_space<vmem>>, vector<1x4x16xf32>
    %63 = vector.shape_cast %62 : vector<1x4x16xf32> to vector<4x16xf32>
    %cst_19 = arith.constant dense<0.000000e+00> : vector<4x16xf32>
    %64 = tpu.matmul %63, %61, %cst_19 {dimension_numbers = #tpu.dot_dimension_numbers<[1], [0], [0], [1], [0, 0, 1, 1], [], []>} : vector<4x16xf32>, vector<16x16xf32>, vector<4x16xf32> -> vector<4x16xf32>
    %65 = vector.extract_strided_slice %4 {offsets = [0, 0, 20], sizes = [1, 16, 4], strides = [1, 1, 1]} : vector<4x16x256xf32> to vector<1x16x4xf32>
    %66 = vector.shape_cast %65 : vector<1x16x4xf32> to vector<16x4xf32>
    %67 = vector.extract_strided_slice %4 {offsets = [1, 0, 20], sizes = [1, 16, 4], strides = [1, 1, 1]} : vector<4x16x256xf32> to vector<1x16x4xf32>
    %68 = vector.shape_cast %67 : vector<1x16x4xf32> to vector<16x4xf32>
    %69 = vector.extract_strided_slice %4 {offsets = [2, 0, 20], sizes = [1, 16, 4], strides = [1, 1, 1]} : vector<4x16x256xf32> to vector<1x16x4xf32>
    %70 = vector.shape_cast %69 : vector<1x16x4xf32> to vector<16x4xf32>
    %71 = vector.extract_strided_slice %4 {offsets = [3, 0, 20], sizes = [1, 16, 4], strides = [1, 1, 1]} : vector<4x16x256xf32> to vector<1x16x4xf32>
    %72 = vector.shape_cast %71 : vector<1x16x4xf32> to vector<16x4xf32>
    %73 = tpu.concatenate %66, %68, %70, %72 in 1 : vector<16x4xf32>, vector<16x4xf32>, vector<16x4xf32>, vector<16x4xf32> -> vector<16x16xf32>
    %c5 = arith.constant 5 : index
    %c0_20 = arith.constant 0 : index
    %c0_21 = arith.constant 0 : index
    %74 = vector.load %arg1[%c5, %c0_20, %c0_21] : memref<64x4x16xf32, #tpu.memory_space<vmem>>, vector<1x4x16xf32>
    %75 = vector.shape_cast %74 : vector<1x4x16xf32> to vector<4x16xf32>
    %cst_22 = arith.constant dense<0.000000e+00> : vector<4x16xf32>
    %76 = tpu.matmul %75, %73, %cst_22 {dimension_numbers = #tpu.dot_dimension_numbers<[1], [0], [0], [1], [0, 0, 1, 1], [], []>} : vector<4x16xf32>, vector<16x16xf32>, vector<4x16xf32> -> vector<4x16xf32>
    %77 = vector.extract_strided_slice %4 {offsets = [0, 0, 24], sizes = [1, 16, 4], strides = [1, 1, 1]} : vector<4x16x256xf32> to vector<1x16x4xf32>
    %78 = vector.shape_cast %77 : vector<1x16x4xf32> to vector<16x4xf32>
    %79 = vector.extract_strided_slice %4 {offsets = [1, 0, 24], sizes = [1, 16, 4], strides = [1, 1, 1]} : vector<4x16x256xf32> to vector<1x16x4xf32>
    %80 = vector.shape_cast %79 : vector<1x16x4xf32> to vector<16x4xf32>
    %81 = vector.extract_strided_slice %4 {offsets = [2, 0, 24], sizes = [1, 16, 4], strides = [1, 1, 1]} : vector<4x16x256xf32> to vector<1x16x4xf32>
    %82 = vector.shape_cast %81 : vector<1x16x4xf32> to vector<16x4xf32>
    %83 = vector.extract_strided_slice %4 {offsets = [3, 0, 24], sizes = [1, 16, 4], strides = [1, 1, 1]} : vector<4x16x256xf32> to vector<1x16x4xf32>
    %84 = vector.shape_cast %83 : vector<1x16x4xf32> to vector<16x4xf32>
    %85 = tpu.concatenate %78, %80, %82, %84 in 1 : vector<16x4xf32>, vector<16x4xf32>, vector<16x4xf32>, vector<16x4xf32> -> vector<16x16xf32>
    %c6 = arith.constant 6 : index
    %c0_23 = arith.constant 0 : index
    %c0_24 = arith.constant 0 : index
    %86 = vector.load %arg1[%c6, %c0_23, %c0_24] : memref<64x4x16xf32, #tpu.memory_space<vmem>>, vector<1x4x16xf32>
    %87 = vector.shape_cast %86 : vector<1x4x16xf32> to vector<4x16xf32>
    %cst_25 = arith.constant dense<0.000000e+00> : vector<4x16xf32>
    %88 = tpu.matmul %87, %85, %cst_25 {dimension_numbers = #tpu.dot_dimension_numbers<[1], [0], [0], [1], [0, 0, 1, 1], [], []>} : vector<4x16xf32>, vector<16x16xf32>, vector<4x16xf32> -> vector<4x16xf32>
    %89 = vector.extract_strided_slice %4 {offsets = [0, 0, 28], sizes = [1, 16, 4], strides = [1, 1, 1]} : vector<4x16x256xf32> to vector<1x16x4xf32>
    %90 = vector.shape_cast %89 : vector<1x16x4xf32> to vector<16x4xf32>
    %91 = vector.extract_strided_slice %4 {offsets = [1, 0, 28], sizes = [1, 16, 4], strides = [1, 1, 1]} : vector<4x16x256xf32> to vector<1x16x4xf32>
    %92 = vector.shape_cast %91 : vector<1x16x4xf32> to vector<16x4xf32>
    %93 = vector.extract_strided_slice %4 {offsets = [2, 0, 28], sizes = [1, 16, 4], strides = [1, 1, 1]} : vector<4x16x256xf32> to vector<1x16x4xf32>
    %94 = vector.shape_cast %93 : vector<1x16x4xf32> to vector<16x4xf32>
    %95 = vector.extract_strided_slice %4 {offsets = [3, 0, 28], sizes = [1, 16, 4], strides = [1, 1, 1]} : vector<4x16x256xf32> to vector<1x16x4xf32>
    %96 = vector.shape_cast %95 : vector<1x16x4xf32> to vector<16x4xf32>
    %97 = tpu.concatenate %90, %92, %94, %96 in 1 : vector<16x4xf32>, vector<16x4xf32>, vector<16x4xf32>, vector<16x4xf32> -> vector<16x16xf32>
    %c7 = arith.constant 7 : index
    %c0_26 = arith.constant 0 : index
    %c0_27 = arith.constant 0 : index
    %98 = vector.load %arg1[%c7, %c0_26, %c0_27] : memref<64x4x16xf32, #tpu.memory_space<vmem>>, vector<1x4x16xf32>
    %99 = vector.shape_cast %98 : vector<1x4x16xf32> to vector<4x16xf32>
    %cst_28 = arith.constant dense<0.000000e+00> : vector<4x16xf32>
    %100 = tpu.matmul %99, %97, %cst_28 {dimension_numbers = #tpu.dot_dimension_numbers<[1], [0], [0], [1], [0, 0, 1, 1], [], []>} : vector<4x16xf32>, vector<16x16xf32>, vector<4x16xf32> -> vector<4x16xf32>
    %101 = tpu.concatenate %16, %28, %40, %52, %64, %76, %88, %100 in 1 : vector<4x16xf32>, vector<4x16xf32>, vector<4x16xf32>, vector<4x16xf32>, vector<4x16xf32>, vector<4x16xf32>, vector<4x16xf32>, vector<4x16xf32> -> vector<4x128xf32>
    %c0_29 = arith.constant 0 : index
    %c0_30 = arith.constant 0 : index
    %c0_31 = arith.constant 0 : index
    %102 = vector.load %arg4[%c0_29, %c0_30, %c0_31] : memref<1x4x1024xf32, #tpu.memory_space<vmem>>, vector<1x4x128xf32>
    %103 = vector.shape_cast %102 : vector<1x4x128xf32> to vector<4x128xf32>
    %104 = vector.shape_cast %101 : vector<4x128xf32> to vector<1x4x128xf32>
    tpu.vector_store %arg4[%c0_29, %c0_30, %c0_31], %104 {strides = array<i32>} : memref<1x4x1024xf32, #tpu.memory_space<vmem>>, vector<1x4x128xf32>,
    %105 = vector.extract_strided_slice %4 {offsets = [0, 0, 32], sizes = [1, 16, 4], strides = [1, 1, 1]} : vector<4x16x256xf32> to vector<1x16x4xf32>
    %106 = vector.shape_cast %105 : vector<1x16x4xf32> to vector<16x4xf32>
    %107 = vector.extract_strided_slice %4 {offsets = [1, 0, 32], sizes = [1, 16, 4], strides = [1, 1, 1]} : vector<4x16x256xf32> to vector<1x16x4xf32>
    %108 = vector.shape_cast %107 : vector<1x16x4xf32> to vector<16x4xf32>
    %109 = vector.extract_strided_slice %4 {offsets = [2, 0, 32], sizes = [1, 16, 4], strides = [1, 1, 1]} : vector<4x16x256xf32> to vector<1x16x4xf32>
    %110 = vector.shape_cast %109 : vector<1x16x4xf32> to vector<16x4xf32>
    %111 = vector.extract_strided_slice %4 {offsets = [3, 0, 32], sizes = [1, 16, 4], strides = [1, 1, 1]} : vector<4x16x256xf32> to vector<1x16x4xf32>
    %112 = vector.shape_cast %111 : vector<1x16x4xf32> to vector<16x4xf32>
    %113 = tpu.concatenate %106, %108, %110, %112 in 1 : vector<16x4xf32>, vector<16x4xf32>, vector<16x4xf32>, vector<16x4xf32> -> vector<16x16xf32>
    %c8 = arith.constant 8 : index
    %c0_32 = arith.constant 0 : index
    %c0_33 = arith.constant 0 : index
    %114 = vector.load %arg1[%c8, %c0_32, %c0_33] : memref<64x4x16xf32, #tpu.memory_space<vmem>>, vector<1x4x16xf32>
    %115 = vector.shape_cast %114 : vector<1x4x16xf32> to vector<4x16xf32>
    %cst_34 = arith.constant dense<0.000000e+00> : vector<4x16xf32>
    %116 = tpu.matmul %115, %113, %cst_34 {dimension_numbers = #tpu.dot_dimension_numbers<[1], [0], [0], [1], [0, 0, 1, 1], [], []>} : vector<4x16xf32>, vector<16x16xf32>, vector<4x16xf32> -> vector<4x16xf32>
    %117 = vector.extract_strided_slice %4 {offsets = [0, 0, 36], sizes = [1, 16, 4], strides = [1, 1, 1]} : vector<4x16x256xf32> to vector<1x16x4xf32>
    %118 = vector.shape_cast %117 : vector<1x16x4xf32> to vector<16x4xf32>
    %119 = vector.extract_strided_slice %4 {offsets = [1, 0, 36], sizes = [1, 16, 4], strides = [1, 1, 1]} : vector<4x16x256xf32> to vector<1x16x4xf32>
    %120 = vector.shape_cast %119 : vector<1x16x4xf32> to vector<16x4xf32>
    %121 = vector.extract_strided_slice %4 {offsets = [2, 0, 36], sizes = [1, 16, 4], strides = [1, 1, 1]} : vector<4x16x256xf32> to vector<1x16x4xf32>
    %122 = vector.shape_cast %121 : vector<1x16x4xf32> to vector<16x4xf32>
    %123 = vector.extract_strided_slice %4 {offsets = [3, 0, 36], sizes = [1, 16, 4], strides = [1, 1, 1]} : vector<4x16x256xf32> to vector<1x16x4xf32>
    %124 = vector.shape_cast %123 : vector<1x16x4xf32> to vector<16x4xf32>
    %125 = tpu.concatenate %118, %120, %122, %124 in 1 : vector<16x4xf32>, vector<16x4xf32>, vector<16x4xf32>, vector<16x4xf32> -> vector<16x16xf32>
    %c9 = arith.constant 9 : index
    %c0_35 = arith.constant 0 : index
    %c0_36 = arith.constant 0 : index
    %126 = vector.load %arg1[%c9, %c0_35, %c0_36] : memref<64x4x16xf32, #tpu.memory_space<vmem>>, vector<1x4x16xf32>
    %127 = vector.shape_cast %126 : vector<1x4x16xf32> to vector<4x16xf32>
    %cst_37 = arith.constant dense<0.000000e+00> : vector<4x16xf32>
    %128 = tpu.matmul %127, %125, %cst_37 {dimension_numbers = #tpu.dot_dimension_numbers<[1], [0], [0], [1], [0, 0, 1, 1], [], []>} : vector<4x16xf32>, vector<16x16xf32>, vector<4x16xf32> -> vector<4x16xf32>
    %129 = vector.extract_strided_slice %4 {offsets = [0, 0, 40], sizes = [1, 16, 4], strides = [1, 1, 1]} : vector<4x16x256xf32> to vector<1x16x4xf32>
    %130 = vector.shape_cast %129 : vector<1x16x4xf32> to vector<16x4xf32>
    %131 = vector.extract_strided_slice %4 {offsets = [1, 0, 40], sizes = [1, 16, 4], strides = [1, 1, 1]} : vector<4x16x256xf32> to vector<1x16x4xf32>
    %132 = vector.shape_cast %131 : vector<1x16x4xf32> to vector<16x4xf32>
    %133 = vector.extract_strided_slice %4 {offsets = [2, 0, 40], sizes = [1, 16, 4], strides = [1, 1, 1]} : vector<4x16x256xf32> to vector<1x16x4xf32>
    %134 = vector.shape_cast %133 : vector<1x16x4xf32> to vector<16x4xf32>
    %135 = vector.extract_strided_slice %4 {offsets = [3, 0, 40], sizes = [1, 16, 4], strides = [1, 1, 1]} : vector<4x16x256xf32> to vector<1x16x4xf32>
    %136 = vector.shape_cast %135 : vector<1x16x4xf32> to vector<16x4xf32>
    %137 = tpu.concatenate %130, %132, %134, %136 in 1 : vector<16x4xf32>, vector<16x4xf32>, vector<16x4xf32>, vector<16x4xf32> -> vector<16x16xf32>
    %c10 = arith.constant 10 : index
    %c0_38 = arith.constant 0 : index
    %c0_39 = arith.constant 0 : index
    %138 = vector.load %arg1[%c10, %c0_38, %c0_39] : memref<64x4x16xf32, #tpu.memory_space<vmem>>, vector<1x4x16xf32>
    %139 = vector.shape_cast %138 : vector<1x4x16xf32> to vector<4x16xf32>
    %cst_40 = arith.constant dense<0.000000e+00> : vector<4x16xf32>
    %140 = tpu.matmul %139, %137, %cst_40 {dimension_numbers = #tpu.dot_dimension_numbers<[1], [0], [0], [1], [0, 0, 1, 1], [], []>} : vector<4x16xf32>, vector<16x16xf32>, vector<4x16xf32> -> vector<4x16xf32>
    %141 = vector.extract_strided_slice %4 {offsets = [0, 0, 44], sizes = [1, 16, 4], strides = [1, 1, 1]} : vector<4x16x256xf32> to vector<1x16x4xf32>
    %142 = vector.shape_cast %141 : vector<1x16x4xf32> to vector<16x4xf32>
    %143 = vector.extract_strided_slice %4 {offsets = [1, 0, 44], sizes = [1, 16, 4], strides = [1, 1, 1]} : vector<4x16x256xf32> to vector<1x16x4xf32>
    %144 = vector.shape_cast %143 : vector<1x16x4xf32> to vector<16x4xf32>
    %145 = vector.extract_strided_slice %4 {offsets = [2, 0, 44], sizes = [1, 16, 4], strides = [1, 1, 1]} : vector<4x16x256xf32> to vector<1x16x4xf32>
    %146 = vector.shape_cast %145 : vector<1x16x4xf32> to vector<16x4xf32>
    %147 = vector.extract_strided_slice %4 {offsets = [3, 0, 44], sizes = [1, 16, 4], strides = [1, 1, 1]} : vector<4x16x256xf32> to vector<1x16x4xf32>
    %148 = vector.shape_cast %147 : vector<1x16x4xf32> to vector<16x4xf32>
    %149 = tpu.concatenate %142, %144, %146, %148 in 1 : vector<16x4xf32>, vector<16x4xf32>, vector<16x4xf32>, vector<16x4xf32> -> vector<16x16xf32>
    %c11 = arith.constant 11 : index
    %c0_41 = arith.constant 0 : index
    %c0_42 = arith.constant 0 : index
    %150 = vector.load %arg1[%c11, %c0_41, %c0_42] : memref<64x4x16xf32, #tpu.memory_space<vmem>>, vector<1x4x16xf32>
    %151 = vector.shape_cast %150 : vector<1x4x16xf32> to vector<4x16xf32>
    %cst_43 = arith.constant dense<0.000000e+00> : vector<4x16xf32>
    %152 = tpu.matmul %151, %149, %cst_43 {dimension_numbers = #tpu.dot_dimension_numbers<[1], [0], [0], [1], [0, 0, 1, 1], [], []>} : vector<4x16xf32>, vector<16x16xf32>, vector<4x16xf32> -> vector<4x16xf32>
    %153 = vector.extract_strided_slice %4 {offsets = [0, 0, 48], sizes = [1, 16, 4], strides = [1, 1, 1]} : vector<4x16x256xf32> to vector<1x16x4xf32>
    %154 = vector.shape_cast %153 : vector<1x16x4xf32> to vector<16x4xf32>
    %155 = vector.extract_strided_slice %4 {offsets = [1, 0, 48], sizes = [1, 16, 4], strides = [1, 1, 1]} : vector<4x16x256xf32> to vector<1x16x4xf32>
    %156 = vector.shape_cast %155 : vector<1x16x4xf32> to vector<16x4xf32>
    %157 = vector.extract_strided_slice %4 {offsets = [2, 0, 48], sizes = [1, 16, 4], strides = [1, 1, 1]} : vector<4x16x256xf32> to vector<1x16x4xf32>
    %158 = vector.shape_cast %157 : vector<1x16x4xf32> to vector<16x4xf32>
    %159 = vector.extract_strided_slice %4 {offsets = [3, 0, 48], sizes = [1, 16, 4], strides = [1, 1, 1]} : vector<4x16x256xf32> to vector<1x16x4xf32>
    %160 = vector.shape_cast %159 : vector<1x16x4xf32> to vector<16x4xf32>
    %161 = tpu.concatenate %154, %156, %158, %160 in 1 : vector<16x4xf32>, vector<16x4xf32>, vector<16x4xf32>, vector<16x4xf32> -> vector<16x16xf32>
    %c12 = arith.constant 12 : index
    %c0_44 = arith.constant 0 : index
    %c0_45 = arith.constant 0 : index
    %162 = vector.load %arg1[%c12, %c0_44, %c0_45] : memref<64x4x16xf32, #tpu.memory_space<vmem>>, vector<1x4x16xf32>
    %163 = vector.shape_cast %162 : vector<1x4x16xf32> to vector<4x16xf32>
    %cst_46 = arith.constant dense<0.000000e+00> : vector<4x16xf32>
    %164 = tpu.matmul %163, %161, %cst_46 {dimension_numbers = #tpu.dot_dimension_numbers<[1], [0], [0], [1], [0, 0, 1, 1], [], []>} : vector<4x16xf32>, vector<16x16xf32>, vector<4x16xf32> -> vector<4x16xf32>
    %165 = vector.extract_strided_slice %4 {offsets = [0, 0, 52], sizes = [1, 16, 4], strides = [1, 1, 1]} : vector<4x16x256xf32> to vector<1x16x4xf32>
    %166 = vector.shape_cast %165 : vector<1x16x4xf32> to vector<16x4xf32>
    %167 = vector.extract_strided_slice %4 {offsets = [1, 0, 52], sizes = [1, 16, 4], strides = [1, 1, 1]} : vector<4x16x256xf32> to vector<1x16x4xf32>
    %168 = vector.shape_cast %167 : vector<1x16x4xf32> to vector<16x4xf32>
    %169 = vector.extract_strided_slice %4 {offsets = [2, 0, 52], sizes = [1, 16, 4], strides = [1, 1, 1]} : vector<4x16x256xf32> to vector<1x16x4xf32>
    %170 = vector.shape_cast %169 : vector<1x16x4xf32> to vector<16x4xf32>
    %171 = vector.extract_strided_slice %4 {offsets = [3, 0, 52], sizes = [1, 16, 4], strides = [1, 1, 1]} : vector<4x16x256xf32> to vector<1x16x4xf32>
    %172 = vector.shape_cast %171 : vector<1x16x4xf32> to vector<16x4xf32>
    %173 = tpu.concatenate %166, %168, %170, %172 in 1 : vector<16x4xf32>, vector<16x4xf32>, vector<16x4xf32>, vector<16x4xf32> -> vector<16x16xf32>
    %c13 = arith.constant 13 : index
    %c0_47 = arith.constant 0 : index
    %c0_48 = arith.constant 0 : index
    %174 = vector.load %arg1[%c13, %c0_47, %c0_48] : memref<64x4x16xf32, #tpu.memory_space<vmem>>, vector<1x4x16xf32>
    %175 = vector.shape_cast %174 : vector<1x4x16xf32> to vector<4x16xf32>
    %cst_49 = arith.constant dense<0.000000e+00> : vector<4x16xf32>
    %176 = tpu.matmul %175, %173, %cst_49 {dimension_numbers = #tpu.dot_dimension_numbers<[1], [0], [0], [1], [0, 0, 1, 1], [], []>} : vector<4x16xf32>, vector<16x16xf32>, vector<4x16xf32> -> vector<4x16xf32>
    %177 = vector.extract_strided_slice %4 {offsets = [0, 0, 56], sizes = [1, 16, 4], strides = [1, 1, 1]} : vector<4x16x256xf32> to vector<1x16x4xf32>
    %178 = vector.shape_cast %177 : vector<1x16x4xf32> to vector<16x4xf32>
    %179 = vector.extract_strided_slice %4 {offsets = [1, 0, 56], sizes = [1, 16, 4], strides = [1, 1, 1]} : vector<4x16x256xf32> to vector<1x16x4xf32>
    %180 = vector.shape_cast %179 : vector<1x16x4xf32> to vector<16x4xf32>
    %181 = vector.extract_strided_slice %4 {offsets = [2, 0, 56], sizes = [1, 16, 4], strides = [1, 1, 1]} : vector<4x16x256xf32> to vector<1x16x4xf32>
    %182 = vector.shape_cast %181 : vector<1x16x4xf32> to vector<16x4xf32>
    %183 = vector.extract_strided_slice %4 {offsets = [3, 0, 56], sizes = [1, 16, 4], strides = [1, 1, 1]} : vector<4x16x256xf32> to vector<1x16x4xf32>
    %184 = vector.shape_cast %183 : vector<1x16x4xf32> to vector<16x4xf32>
    %185 = tpu.concatenate %178, %180, %182, %184 in 1 : vector<16x4xf32>, vector<16x4xf32>, vector<16x4xf32>, vector<16x4xf32> -> vector<16x16xf32>
    %c14 = arith.constant 14 : index
    %c0_50 = arith.constant 0 : index
    %c0_51 = arith.constant 0 : index
    %186 = vector.load %arg1[%c14, %c0_50, %c0_51] : memref<64x4x16xf32, #tpu.memory_space<vmem>>, vector<1x4x16xf32>
    %187 = vector.shape_cast %186 : vector<1x4x16xf32> to vector<4x16xf32>
    %cst_52 = arith.constant dense<0.000000e+00> : vector<4x16xf32>
    %188 = tpu.matmul %187, %185, %cst_52 {dimension_numbers = #tpu.dot_dimension_numbers<[1], [0], [0], [1], [0, 0, 1, 1], [], []>} : vector<4x16xf32>, vector<16x16xf32>, vector<4x16xf32> -> vector<4x16xf32>
    %189 = vector.extract_strided_slice %4 {offsets = [0, 0, 60], sizes = [1, 16, 4], strides = [1, 1, 1]} : vector<4x16x256xf32> to vector<1x16x4xf32>
    %190 = vector.shape_cast %189 : vector<1x16x4xf32> to vector<16x4xf32>
    %191 = vector.extract_strided_slice %4 {offsets = [1, 0, 60], sizes = [1, 16, 4], strides = [1, 1, 1]} : vector<4x16x256xf32> to vector<1x16x4xf32>
    %192 = vector.shape_cast %191 : vector<1x16x4xf32> to vector<16x4xf32>
    %193 = vector.extract_strided_slice %4 {offsets = [2, 0, 60], sizes = [1, 16, 4], strides = [1, 1, 1]} : vector<4x16x256xf32> to vector<1x16x4xf32>
    %194 = vector.shape_cast %193 : vector<1x16x4xf32> to vector<16x4xf32>
    %195 = vector.extract_strided_slice %4 {offsets = [3, 0, 60], sizes = [1, 16, 4], strides = [1, 1, 1]} : vector<4x16x256xf32> to vector<1x16x4xf32>
    %196 = vector.shape_cast %195 : vector<1x16x4xf32> to vector<16x4xf32>
    %197 = tpu.concatenate %190, %192, %194, %196 in 1 : vector<16x4xf32>, vector<16x4xf32>, vector<16x4xf32>, vector<16x4xf32> -> vector<16x16xf32>
    %c15 = arith.constant 15 : index
    %c0_53 = arith.constant 0 : index
    %c0_54 = arith.constant 0 : index
    %198 = vector.load %arg1[%c15, %c0_53, %c0_54] : memref<64x4x16xf32, #tpu.memory_space<vmem>>, vector<1x4x16xf32>
    %199 = vector.shape_cast %198 : vector<1x4x16xf32> to vector<4x16xf32>
    %cst_55 = arith.constant dense<0.000000e+00> : vector<4x16xf32>
    %200 = tpu.matmul %199, %197, %cst_55 {dimension_numbers = #tpu.dot_dimension_numbers<[1], [0], [0], [1], [0, 0, 1, 1], [], []>} : vector<4x16xf32>, vector<16x16xf32>, vector<4x16xf32> -> vector<4x16xf32>
    %201 = tpu.concatenate %116, %128, %140, %152, %164, %176, %188, %200 in 1 : vector<4x16xf32>, vector<4x16xf32>, vector<4x16xf32>, vector<4x16xf32>, vector<4x16xf32>, vector<4x16xf32>, vector<4x16xf32>, vector<4x16xf32> -> vector<4x128xf32>
    %c0_56 = arith.constant 0 : index
    %c0_57 = arith.constant 0 : index
    %c128 = arith.constant 128 : index
    %202 = vector.load %arg4[%c0_56, %c0_57, %c128] : memref<1x4x1024xf32, #tpu.memory_space<vmem>>, vector<1x4x128xf32>
    %203 = vector.shape_cast %202 : vector<1x4x128xf32> to vector<4x128xf32>
    %204 = vector.shape_cast %201 : vector<4x128xf32> to vector<1x4x128xf32>
    tpu.vector_store %arg4[%c0_56, %c0_57, %c128], %204 {strides = array<i32>} : memref<1x4x1024xf32, #tpu.memory_space<vmem>>, vector<1x4x128xf32>,
    %205 = vector.extract_strided_slice %4 {offsets = [0, 0, 64], sizes = [1, 16, 4], strides = [1, 1, 1]} : vector<4x16x256xf32> to vector<1x16x4xf32>
    %206 = vector.shape_cast %205 : vector<1x16x4xf32> to vector<16x4xf32>
    %207 = vector.extract_strided_slice %4 {offsets = [1, 0, 64], sizes = [1, 16, 4], strides = [1, 1, 1]} : vector<4x16x256xf32> to vector<1x16x4xf32>
    %208 = vector.shape_cast %207 : vector<1x16x4xf32> to vector<16x4xf32>
    %209 = vector.extract_strided_slice %4 {offsets = [2, 0, 64], sizes = [1, 16, 4], strides = [1, 1, 1]} : vector<4x16x256xf32> to vector<1x16x4xf32>
    %210 = vector.shape_cast %209 : vector<1x16x4xf32> to vector<16x4xf32>
    %211 = vector.extract_strided_slice %4 {offsets = [3, 0, 64], sizes = [1, 16, 4], strides = [1, 1, 1]} : vector<4x16x256xf32> to vector<1x16x4xf32>
    %212 = vector.shape_cast %211 : vector<1x16x4xf32> to vector<16x4xf32>
    %213 = tpu.concatenate %206, %208, %210, %212 in 1 : vector<16x4xf32>, vector<16x4xf32>, vector<16x4xf32>, vector<16x4xf32> -> vector<16x16xf32>
    %c16 = arith.constant 16 : index
    %c0_58 = arith.constant 0 : index
    %c0_59 = arith.constant 0 : index
    %214 = vector.load %arg1[%c16, %c0_58, %c0_59] : memref<64x4x16xf32, #tpu.memory_space<vmem>>, vector<1x4x16xf32>
    %215 = vector.shape_cast %214 : vector<1x4x16xf32> to vector<4x16xf32>
    %cst_60 = arith.constant dense<0.000000e+00> : vector<4x16xf32>
    %216 = tpu.matmul %215, %213, %cst_60 {dimension_numbers = #tpu.dot_dimension_numbers<[1], [0], [0], [1], [0, 0, 1, 1], [], []>} : vector<4x16xf32>, vector<16x16xf32>, vector<4x16xf32> -> vector<4x16xf32>
    %217 = vector.extract_strided_slice %4 {offsets = [0, 0, 68], sizes = [1, 16, 4], strides = [1, 1, 1]} : vector<4x16x256xf32> to vector<1x16x4xf32>
    %218 = vector.shape_cast %217 : vector<1x16x4xf32> to vector<16x4xf32>
    %219 = vector.extract_strided_slice %4 {offsets = [1, 0, 68], sizes = [1, 16, 4], strides = [1, 1, 1]} : vector<4x16x256xf32> to vector<1x16x4xf32>
    %220 = vector.shape_cast %219 : vector<1x16x4xf32> to vector<16x4xf32>
    %221 = vector.extract_strided_slice %4 {offsets = [2, 0, 68], sizes = [1, 16, 4], strides = [1, 1, 1]} : vector<4x16x256xf32> to vector<1x16x4xf32>
    %222 = vector.shape_cast %221 : vector<1x16x4xf32> to vector<16x4xf32>
    %223 = vector.extract_strided_slice %4 {offsets = [3, 0, 68], sizes = [1, 16, 4], strides = [1, 1, 1]} : vector<4x16x256xf32> to vector<1x16x4xf32>
    %224 = vector.shape_cast %223 : vector<1x16x4xf32> to vector<16x4xf32>
    %225 = tpu.concatenate %218, %220, %222, %224 in 1 : vector<16x4xf32>, vector<16x4xf32>, vector<16x4xf32>, vector<16x4xf32> -> vector<16x16xf32>
    %c17 = arith.constant 17 : index
    %c0_61 = arith.constant 0 : index
    %c0_62 = arith.constant 0 : index
    %226 = vector.load %arg1[%c17, %c0_61, %c0_62] : memref<64x4x16xf32, #tpu.memory_space<vmem>>, vector<1x4x16xf32>
    %227 = vector.shape_cast %226 : vector<1x4x16xf32> to vector<4x16xf32>
    %cst_63 = arith.constant dense<0.000000e+00> : vector<4x16xf32>
    %228 = tpu.matmul %227, %225, %cst_63 {dimension_numbers = #tpu.dot_dimension_numbers<[1], [0], [0], [1], [0, 0, 1, 1], [], []>} : vector<4x16xf32>, vector<16x16xf32>, vector<4x16xf32> -> vector<4x16xf32>
    %229 = vector.extract_strided_slice %4 {offsets = [0, 0, 72], sizes = [1, 16, 4], strides = [1, 1, 1]} : vector<4x16x256xf32> to vector<1x16x4xf32>
    %230 = vector.shape_cast %229 : vector<1x16x4xf32> to vector<16x4xf32>
    %231 = vector.extract_strided_slice %4 {offsets = [1, 0, 72], sizes = [1, 16, 4], strides = [1, 1, 1]} : vector<4x16x256xf32> to vector<1x16x4xf32>
    %232 = vector.shape_cast %231 : vector<1x16x4xf32> to vector<16x4xf32>
    %233 = vector.extract_strided_slice %4 {offsets = [2, 0, 72], sizes = [1, 16, 4], strides = [1, 1, 1]} : vector<4x16x256xf32> to vector<1x16x4xf32>
    %234 = vector.shape_cast %233 : vector<1x16x4xf32> to vector<16x4xf32>
    %235 = vector.extract_strided_slice %4 {offsets = [3, 0, 72], sizes = [1, 16, 4], strides = [1, 1, 1]} : vector<4x16x256xf32> to vector<1x16x4xf32>
    %236 = vector.shape_cast %235 : vector<1x16x4xf32> to vector<16x4xf32>
    %237 = tpu.concatenate %230, %232, %234, %236 in 1 : vector<16x4xf32>, vector<16x4xf32>, vector<16x4xf32>, vector<16x4xf32> -> vector<16x16xf32>
    %c18 = arith.constant 18 : index
    %c0_64 = arith.constant 0 : index
    %c0_65 = arith.constant 0 : index
    %238 = vector.load %arg1[%c18, %c0_64, %c0_65] : memref<64x4x16xf32, #tpu.memory_space<vmem>>, vector<1x4x16xf32>
    %239 = vector.shape_cast %238 : vector<1x4x16xf32> to vector<4x16xf32>
    %cst_66 = arith.constant dense<0.000000e+00> : vector<4x16xf32>
    %240 = tpu.matmul %239, %237, %cst_66 {dimension_numbers = #tpu.dot_dimension_numbers<[1], [0], [0], [1], [0, 0, 1, 1], [], []>} : vector<4x16xf32>, vector<16x16xf32>, vector<4x16xf32> -> vector<4x16xf32>
    %241 = vector.extract_strided_slice %4 {offsets = [0, 0, 76], sizes = [1, 16, 4], strides = [1, 1, 1]} : vector<4x16x256xf32> to vector<1x16x4xf32>
    %242 = vector.shape_cast %241 : vector<1x16x4xf32> to vector<16x4xf32>
    %243 = vector.extract_strided_slice %4 {offsets = [1, 0, 76], sizes = [1, 16, 4], strides = [1, 1, 1]} : vector<4x16x256xf32> to vector<1x16x4xf32>
    %244 = vector.shape_cast %243 : vector<1x16x4xf32> to vector<16x4xf32>
    %245 = vector.extract_strided_slice %4 {offsets = [2, 0, 76], sizes = [1, 16, 4], strides = [1, 1, 1]} : vector<4x16x256xf32> to vector<1x16x4xf32>
    %246 = vector.shape_cast %245 : vector<1x16x4xf32> to vector<16x4xf32>
    %247 = vector.extract_strided_slice %4 {offsets = [3, 0, 76], sizes = [1, 16, 4], strides = [1, 1, 1]} : vector<4x16x256xf32> to vector<1x16x4xf32>
    %248 = vector.shape_cast %247 : vector<1x16x4xf32> to vector<16x4xf32>
    %249 = tpu.concatenate %242, %244, %246, %248 in 1 : vector<16x4xf32>, vector<16x4xf32>, vector<16x4xf32>, vector<16x4xf32> -> vector<16x16xf32>
    %c19 = arith.constant 19 : index
    %c0_67 = arith.constant 0 : index
    %c0_68 = arith.constant 0 : index
    %250 = vector.load %arg1[%c19, %c0_67, %c0_68] : memref<64x4x16xf32, #tpu.memory_space<vmem>>, vector<1x4x16xf32>
    %251 = vector.shape_cast %250 : vector<1x4x16xf32> to vector<4x16xf32>
    %cst_69 = arith.constant dense<0.000000e+00> : vector<4x16xf32>
    %252 = tpu.matmul %251, %249, %cst_69 {dimension_numbers = #tpu.dot_dimension_numbers<[1], [0], [0], [1], [0, 0, 1, 1], [], []>} : vector<4x16xf32>, vector<16x16xf32>, vector<4x16xf32> -> vector<4x16xf32>
    %253 = vector.extract_strided_slice %4 {offsets = [0, 0, 80], sizes = [1, 16, 4], strides = [1, 1, 1]} : vector<4x16x256xf32> to vector<1x16x4xf32>
    %254 = vector.shape_cast %253 : vector<1x16x4xf32> to vector<16x4xf32>
    %255 = vector.extract_strided_slice %4 {offsets = [1, 0, 80], sizes = [1, 16, 4], strides = [1, 1, 1]} : vector<4x16x256xf32> to vector<1x16x4xf32>
    %256 = vector.shape_cast %255 : vector<1x16x4xf32> to vector<16x4xf32>
    %257 = vector.extract_strided_slice %4 {offsets = [2, 0, 80], sizes = [1, 16, 4], strides = [1, 1, 1]} : vector<4x16x256xf32> to vector<1x16x4xf32>
    %258 = vector.shape_cast %257 : vector<1x16x4xf32> to vector<16x4xf32>
    %259 = vector.extract_strided_slice %4 {offsets = [3, 0, 80], sizes = [1, 16, 4], strides = [1, 1, 1]} : vector<4x16x256xf32> to vector<1x16x4xf32>
    %260 = vector.shape_cast %259 : vector<1x16x4xf32> to vector<16x4xf32>
    %261 = tpu.concatenate %254, %256, %258, %260 in 1 : vector<16x4xf32>, vector<16x4xf32>, vector<16x4xf32>, vector<16x4xf32> -> vector<16x16xf32>
    %c20 = arith.constant 20 : index
    %c0_70 = arith.constant 0 : index
    %c0_71 = arith.constant 0 : index
    %262 = vector.load %arg1[%c20, %c0_70, %c0_71] : memref<64x4x16xf32, #tpu.memory_space<vmem>>, vector<1x4x16xf32>
    %263 = vector.shape_cast %262 : vector<1x4x16xf32> to vector<4x16xf32>
    %cst_72 = arith.constant dense<0.000000e+00> : vector<4x16xf32>
    %264 = tpu.matmul %263, %261, %cst_72 {dimension_numbers = #tpu.dot_dimension_numbers<[1], [0], [0], [1], [0, 0, 1, 1], [], []>} : vector<4x16xf32>, vector<16x16xf32>, vector<4x16xf32> -> vector<4x16xf32>
    %265 = vector.extract_strided_slice %4 {offsets = [0, 0, 84], sizes = [1, 16, 4], strides = [1, 1, 1]} : vector<4x16x256xf32> to vector<1x16x4xf32>
    %266 = vector.shape_cast %265 : vector<1x16x4xf32> to vector<16x4xf32>
    %267 = vector.extract_strided_slice %4 {offsets = [1, 0, 84], sizes = [1, 16, 4], strides = [1, 1, 1]} : vector<4x16x256xf32> to vector<1x16x4xf32>
    %268 = vector.shape_cast %267 : vector<1x16x4xf32> to vector<16x4xf32>
    %269 = vector.extract_strided_slice %4 {offsets = [2, 0, 84], sizes = [1, 16, 4], strides = [1, 1, 1]} : vector<4x16x256xf32> to vector<1x16x4xf32>
    %270 = vector.shape_cast %269 : vector<1x16x4xf32> to vector<16x4xf32>
    %271 = vector.extract_strided_slice %4 {offsets = [3, 0, 84], sizes = [1, 16, 4], strides = [1, 1, 1]} : vector<4x16x256xf32> to vector<1x16x4xf32>
    %272 = vector.shape_cast %271 : vector<1x16x4xf32> to vector<16x4xf32>
    %273 = tpu.concatenate %266, %268, %270, %272 in 1 : vector<16x4xf32>, vector<16x4xf32>, vector<16x4xf32>, vector<16x4xf32> -> vector<16x16xf32>
    %c21 = arith.constant 21 : index
    %c0_73 = arith.constant 0 : index
    %c0_74 = arith.constant 0 : index
    %274 = vector.load %arg1[%c21, %c0_73, %c0_74] : memref<64x4x16xf32, #tpu.memory_space<vmem>>, vector<1x4x16xf32>
    %275 = vector.shape_cast %274 : vector<1x4x16xf32> to vector<4x16xf32>
    %cst_75 = arith.constant dense<0.000000e+00> : vector<4x16xf32>
    %276 = tpu.matmul %275, %273, %cst_75 {dimension_numbers = #tpu.dot_dimension_numbers<[1], [0], [0], [1], [0, 0, 1, 1], [], []>} : vector<4x16xf32>, vector<16x16xf32>, vector<4x16xf32> -> vector<4x16xf32>
    %277 = vector.extract_strided_slice %4 {offsets = [0, 0, 88], sizes = [1, 16, 4], strides = [1, 1, 1]} : vector<4x16x256xf32> to vector<1x16x4xf32>
    %278 = vector.shape_cast %277 : vector<1x16x4xf32> to vector<16x4xf32>
    %279 = vector.extract_strided_slice %4 {offsets = [1, 0, 88], sizes = [1, 16, 4], strides = [1, 1, 1]} : vector<4x16x256xf32> to vector<1x16x4xf32>
    %280 = vector.shape_cast %279 : vector<1x16x4xf32> to vector<16x4xf32>
    %281 = vector.extract_strided_slice %4 {offsets = [2, 0, 88], sizes = [1, 16, 4], strides = [1, 1, 1]} : vector<4x16x256xf32> to vector<1x16x4xf32>
    %282 = vector.shape_cast %281 : vector<1x16x4xf32> to vector<16x4xf32>
    %283 = vector.extract_strided_slice %4 {offsets = [3, 0, 88], sizes = [1, 16, 4], strides = [1, 1, 1]} : vector<4x16x256xf32> to vector<1x16x4xf32>
    %284 = vector.shape_cast %283 : vector<1x16x4xf32> to vector<16x4xf32>
    %285 = tpu.concatenate %278, %280, %282, %284 in 1 : vector<16x4xf32>, vector<16x4xf32>, vector<16x4xf32>, vector<16x4xf32> -> vector<16x16xf32>
    %c22 = arith.constant 22 : index
    %c0_76 = arith.constant 0 : index
    %c0_77 = arith.constant 0 : index
    %286 = vector.load %arg1[%c22, %c0_76, %c0_77] : memref<64x4x16xf32, #tpu.memory_space<vmem>>, vector<1x4x16xf32>
    %287 = vector.shape_cast %286 : vector<1x4x16xf32> to vector<4x16xf32>
    %cst_78 = arith.constant dense<0.000000e+00> : vector<4x16xf32>
    %288 = tpu.matmul %287, %285, %cst_78 {dimension_numbers = #tpu.dot_dimension_numbers<[1], [0], [0], [1], [0, 0, 1, 1], [], []>} : vector<4x16xf32>, vector<16x16xf32>, vector<4x16xf32> -> vector<4x16xf32>
    %289 = vector.extract_strided_slice %4 {offsets = [0, 0, 92], sizes = [1, 16, 4], strides = [1, 1, 1]} : vector<4x16x256xf32> to vector<1x16x4xf32>
    %290 = vector.shape_cast %289 : vector<1x16x4xf32> to vector<16x4xf32>
    %291 = vector.extract_strided_slice %4 {offsets = [1, 0, 92], sizes = [1, 16, 4], strides = [1, 1, 1]} : vector<4x16x256xf32> to vector<1x16x4xf32>
    %292 = vector.shape_cast %291 : vector<1x16x4xf32> to vector<16x4xf32>
    %293 = vector.extract_strided_slice %4 {offsets = [2, 0, 92], sizes = [1, 16, 4], strides = [1, 1, 1]} : vector<4x16x256xf32> to vector<1x16x4xf32>
    %294 = vector.shape_cast %293 : vector<1x16x4xf32> to vector<16x4xf32>
    %295 = vector.extract_strided_slice %4 {offsets = [3, 0, 92], sizes = [1, 16, 4], strides = [1, 1, 1]} : vector<4x16x256xf32> to vector<1x16x4xf32>
    %296 = vector.shape_cast %295 : vector<1x16x4xf32> to vector<16x4xf32>
    %297 = tpu.concatenate %290, %292, %294, %296 in 1 : vector<16x4xf32>, vector<16x4xf32>, vector<16x4xf32>, vector<16x4xf32> -> vector<16x16xf32>
    %c23 = arith.constant 23 : index
    %c0_79 = arith.constant 0 : index
    %c0_80 = arith.constant 0 : index
    %298 = vector.load %arg1[%c23, %c0_79, %c0_80] : memref<64x4x16xf32, #tpu.memory_space<vmem>>, vector<1x4x16xf32>
    %299 = vector.shape_cast %298 : vector<1x4x16xf32> to vector<4x16xf32>
    %cst_81 = arith.constant dense<0.000000e+00> : vector<4x16xf32>
    %300 = tpu.matmul %299, %297, %cst_81 {dimension_numbers = #tpu.dot_dimension_numbers<[1], [0], [0], [1], [0, 0, 1, 1], [], []>} : vector<4x16xf32>, vector<16x16xf32>, vector<4x16xf32> -> vector<4x16xf32>
    %301 = tpu.concatenate %216, %228, %240, %252, %264, %276, %288, %300 in 1 : vector<4x16xf32>, vector<4x16xf32>, vector<4x16xf32>, vector<4x16xf32>, vector<4x16xf32>, vector<4x16xf32>, vector<4x16xf32>, vector<4x16xf32> -> vector<4x128xf32>
    %c0_82 = arith.constant 0 : index
    %c0_83 = arith.constant 0 : index
    %c256 = arith.constant 256 : index
    %302 = vector.load %arg4[%c0_82, %c0_83, %c256] : memref<1x4x1024xf32, #tpu.memory_space<vmem>>, vector<1x4x128xf32>
    %303 = vector.shape_cast %302 : vector<1x4x128xf32> to vector<4x128xf32>
    %304 = vector.shape_cast %301 : vector<4x128xf32> to vector<1x4x128xf32>
    tpu.vector_store %arg4[%c0_82, %c0_83, %c256], %304 {strides = array<i32>} : memref<1x4x1024xf32, #tpu.memory_space<vmem>>, vector<1x4x128xf32>,
    %305 = vector.extract_strided_slice %4 {offsets = [0, 0, 96], sizes = [1, 16, 4], strides = [1, 1, 1]} : vector<4x16x256xf32> to vector<1x16x4xf32>
    %306 = vector.shape_cast %305 : vector<1x16x4xf32> to vector<16x4xf32>
    %307 = vector.extract_strided_slice %4 {offsets = [1, 0, 96], sizes = [1, 16, 4], strides = [1, 1, 1]} : vector<4x16x256xf32> to vector<1x16x4xf32>
    %308 = vector.shape_cast %307 : vector<1x16x4xf32> to vector<16x4xf32>
    %309 = vector.extract_strided_slice %4 {offsets = [2, 0, 96], sizes = [1, 16, 4], strides = [1, 1, 1]} : vector<4x16x256xf32> to vector<1x16x4xf32>
    %310 = vector.shape_cast %309 : vector<1x16x4xf32> to vector<16x4xf32>
    %311 = vector.extract_strided_slice %4 {offsets = [3, 0, 96], sizes = [1, 16, 4], strides = [1, 1, 1]} : vector<4x16x256xf32> to vector<1x16x4xf32>
    %312 = vector.shape_cast %311 : vector<1x16x4xf32> to vector<16x4xf32>
    %313 = tpu.concatenate %306, %308, %310, %312 in 1 : vector<16x4xf32>, vector<16x4xf32>, vector<16x4xf32>, vector<16x4xf32> -> vector<16x16xf32>
    %c24 = arith.constant 24 : index
    %c0_84 = arith.constant 0 : index
    %c0_85 = arith.constant 0 : index
    %314 = vector.load %arg1[%c24, %c0_84, %c0_85] : memref<64x4x16xf32, #tpu.memory_space<vmem>>, vector<1x4x16xf32>
    %315 = vector.shape_cast %314 : vector<1x4x16xf32> to vector<4x16xf32>
    %cst_86 = arith.constant dense<0.000000e+00> : vector<4x16xf32>
    %316 = tpu.matmul %315, %313, %cst_86 {dimension_numbers = #tpu.dot_dimension_numbers<[1], [0], [0], [1], [0, 0, 1, 1], [], []>} : vector<4x16xf32>, vector<16x16xf32>, vector<4x16xf32> -> vector<4x16xf32>
    %317 = vector.extract_strided_slice %4 {offsets = [0, 0, 100], sizes = [1, 16, 4], strides = [1, 1, 1]} : vector<4x16x256xf32> to vector<1x16x4xf32>
    %318 = vector.shape_cast %317 : vector<1x16x4xf32> to vector<16x4xf32>
    %319 = vector.extract_strided_slice %4 {offsets = [1, 0, 100], sizes = [1, 16, 4], strides = [1, 1, 1]} : vector<4x16x256xf32> to vector<1x16x4xf32>
    %320 = vector.shape_cast %319 : vector<1x16x4xf32> to vector<16x4xf32>
    %321 = vector.extract_strided_slice %4 {offsets = [2, 0, 100], sizes = [1, 16, 4], strides = [1, 1, 1]} : vector<4x16x256xf32> to vector<1x16x4xf32>
    %322 = vector.shape_cast %321 : vector<1x16x4xf32> to vector<16x4xf32>
    %323 = vector.extract_strided_slice %4 {offsets = [3, 0, 100], sizes = [1, 16, 4], strides = [1, 1, 1]} : vector<4x16x256xf32> to vector<1x16x4xf32>
    %324 = vector.shape_cast %323 : vector<1x16x4xf32> to vector<16x4xf32>
    %325 = tpu.concatenate %318, %320, %322, %324 in 1 : vector<16x4xf32>, vector<16x4xf32>, vector<16x4xf32>, vector<16x4xf32> -> vector<16x16xf32>
    %c25 = arith.constant 25 : index
    %c0_87 = arith.constant 0 : index
    %c0_88 = arith.constant 0 : index
    %326 = vector.load %arg1[%c25, %c0_87, %c0_88] : memref<64x4x16xf32, #tpu.memory_space<vmem>>, vector<1x4x16xf32>
    %327 = vector.shape_cast %326 : vector<1x4x16xf32> to vector<4x16xf32>
    %cst_89 = arith.constant dense<0.000000e+00> : vector<4x16xf32>
    %328 = tpu.matmul %327, %325, %cst_89 {dimension_numbers = #tpu.dot_dimension_numbers<[1], [0], [0], [1], [0, 0, 1, 1], [], []>} : vector<4x16xf32>, vector<16x16xf32>, vector<4x16xf32> -> vector<4x16xf32>
    %329 = vector.extract_strided_slice %4 {offsets = [0, 0, 104], sizes = [1, 16, 4], strides = [1, 1, 1]} : vector<4x16x256xf32> to vector<1x16x4xf32>
    %330 = vector.shape_cast %329 : vector<1x16x4xf32> to vector<16x4xf32>
    %331 = vector.extract_strided_slice %4 {offsets = [1, 0, 104], sizes = [1, 16, 4], strides = [1, 1, 1]} : vector<4x16x256xf32> to vector<1x16x4xf32>
    %332 = vector.shape_cast %331 : vector<1x16x4xf32> to vector<16x4xf32>
    %333 = vector.extract_strided_slice %4 {offsets = [2, 0, 104], sizes = [1, 16, 4], strides = [1, 1, 1]} : vector<4x16x256xf32> to vector<1x16x4xf32>
    %334 = vector.shape_cast %333 : vector<1x16x4xf32> to vector<16x4xf32>
    %335 = vector.extract_strided_slice %4 {offsets = [3, 0, 104], sizes = [1, 16, 4], strides = [1, 1, 1]} : vector<4x16x256xf32> to vector<1x16x4xf32>
    %336 = vector.shape_cast %335 : vector<1x16x4xf32> to vector<16x4xf32>
    %337 = tpu.concatenate %330, %332, %334, %336 in 1 : vector<16x4xf32>, vector<16x4xf32>, vector<16x4xf32>, vector<16x4xf32> -> vector<16x16xf32>
    %c26 = arith.constant 26 : index
    %c0_90 = arith.constant 0 : index
    %c0_91 = arith.constant 0 : index
    %338 = vector.load %arg1[%c26, %c0_90, %c0_91] : memref<64x4x16xf32, #tpu.memory_space<vmem>>, vector<1x4x16xf32>
    %339 = vector.shape_cast %338 : vector<1x4x16xf32> to vector<4x16xf32>
    %cst_92 = arith.constant dense<0.000000e+00> : vector<4x16xf32>
    %340 = tpu.matmul %339, %337, %cst_92 {dimension_numbers = #tpu.dot_dimension_numbers<[1], [0], [0], [1], [0, 0, 1, 1], [], []>} : vector<4x16xf32>, vector<16x16xf32>, vector<4x16xf32> -> vector<4x16xf32>
    %341 = vector.extract_strided_slice %4 {offsets = [0, 0, 108], sizes = [1, 16, 4], strides = [1, 1, 1]} : vector<4x16x256xf32> to vector<1x16x4xf32>
    %342 = vector.shape_cast %341 : vector<1x16x4xf32> to vector<16x4xf32>
    %343 = vector.extract_strided_slice %4 {offsets = [1, 0, 108], sizes = [1, 16, 4], strides = [1, 1, 1]} : vector<4x16x256xf32> to vector<1x16x4xf32>
    %344 = vector.shape_cast %343 : vector<1x16x4xf32> to vector<16x4xf32>
    %345 = vector.extract_strided_slice %4 {offsets = [2, 0, 108], sizes = [1, 16, 4], strides = [1, 1, 1]} : vector<4x16x256xf32> to vector<1x16x4xf32>
    %346 = vector.shape_cast %345 : vector<1x16x4xf32> to vector<16x4xf32>
    %347 = vector.extract_strided_slice %4 {offsets = [3, 0, 108], sizes = [1, 16, 4], strides = [1, 1, 1]} : vector<4x16x256xf32> to vector<1x16x4xf32>
    %348 = vector.shape_cast %347 : vector<1x16x4xf32> to vector<16x4xf32>
    %349 = tpu.concatenate %342, %344, %346, %348 in 1 : vector<16x4xf32>, vector<16x4xf32>, vector<16x4xf32>, vector<16x4xf32> -> vector<16x16xf32>
    %c27 = arith.constant 27 : index
    %c0_93 = arith.constant 0 : index
    %c0_94 = arith.constant 0 : index
    %350 = vector.load %arg1[%c27, %c0_93, %c0_94] : memref<64x4x16xf32, #tpu.memory_space<vmem>>, vector<1x4x16xf32>
    %351 = vector.shape_cast %350 : vector<1x4x16xf32> to vector<4x16xf32>
    %cst_95 = arith.constant dense<0.000000e+00> : vector<4x16xf32>
    %352 = tpu.matmul %351, %349, %cst_95 {dimension_numbers = #tpu.dot_dimension_numbers<[1], [0], [0], [1], [0, 0, 1, 1], [], []>} : vector<4x16xf32>, vector<16x16xf32>, vector<4x16xf32> -> vector<4x16xf32>
    %353 = vector.extract_strided_slice %4 {offsets = [0, 0, 112], sizes = [1, 16, 4], strides = [1, 1, 1]} : vector<4x16x256xf32> to vector<1x16x4xf32>
    %354 = vector.shape_cast %353 : vector<1x16x4xf32> to vector<16x4xf32>
    %355 = vector.extract_strided_slice %4 {offsets = [1, 0, 112], sizes = [1, 16, 4], strides = [1, 1, 1]} : vector<4x16x256xf32> to vector<1x16x4xf32>
    %356 = vector.shape_cast %355 : vector<1x16x4xf32> to vector<16x4xf32>
    %357 = vector.extract_strided_slice %4 {offsets = [2, 0, 112], sizes = [1, 16, 4], strides = [1, 1, 1]} : vector<4x16x256xf32> to vector<1x16x4xf32>
    %358 = vector.shape_cast %357 : vector<1x16x4xf32> to vector<16x4xf32>
    %359 = vector.extract_strided_slice %4 {offsets = [3, 0, 112], sizes = [1, 16, 4], strides = [1, 1, 1]} : vector<4x16x256xf32> to vector<1x16x4xf32>
    %360 = vector.shape_cast %359 : vector<1x16x4xf32> to vector<16x4xf32>
    %361 = tpu.concatenate %354, %356, %358, %360 in 1 : vector<16x4xf32>, vector<16x4xf32>, vector<16x4xf32>, vector<16x4xf32> -> vector<16x16xf32>
    %c28 = arith.constant 28 : index
    %c0_96 = arith.constant 0 : index
    %c0_97 = arith.constant 0 : index
    %362 = vector.load %arg1[%c28, %c0_96, %c0_97] : memref<64x4x16xf32, #tpu.memory_space<vmem>>, vector<1x4x16xf32>
    %363 = vector.shape_cast %362 : vector<1x4x16xf32> to vector<4x16xf32>
    %cst_98 = arith.constant dense<0.000000e+00> : vector<4x16xf32>
    %364 = tpu.matmul %363, %361, %cst_98 {dimension_numbers = #tpu.dot_dimension_numbers<[1], [0], [0], [1], [0, 0, 1, 1], [], []>} : vector<4x16xf32>, vector<16x16xf32>, vector<4x16xf32> -> vector<4x16xf32>
    %365 = vector.extract_strided_slice %4 {offsets = [0, 0, 116], sizes = [1, 16, 4], strides = [1, 1, 1]} : vector<4x16x256xf32> to vector<1x16x4xf32>
    %366 = vector.shape_cast %365 : vector<1x16x4xf32> to vector<16x4xf32>
    %367 = vector.extract_strided_slice %4 {offsets = [1, 0, 116], sizes = [1, 16, 4], strides = [1, 1, 1]} : vector<4x16x256xf32> to vector<1x16x4xf32>
    %368 = vector.shape_cast %367 : vector<1x16x4xf32> to vector<16x4xf32>
    %369 = vector.extract_strided_slice %4 {offsets = [2, 0, 116], sizes = [1, 16, 4], strides = [1, 1, 1]} : vector<4x16x256xf32> to vector<1x16x4xf32>
    %370 = vector.shape_cast %369 : vector<1x16x4xf32> to vector<16x4xf32>
    %371 = vector.extract_strided_slice %4 {offsets = [3, 0, 116], sizes = [1, 16, 4], strides = [1, 1, 1]} : vector<4x16x256xf32> to vector<1x16x4xf32>
    %372 = vector.shape_cast %371 : vector<1x16x4xf32> to vector<16x4xf32>
    %373 = tpu.concatenate %366, %368, %370, %372 in 1 : vector<16x4xf32>, vector<16x4xf32>, vector<16x4xf32>, vector<16x4xf32> -> vector<16x16xf32>
    %c29 = arith.constant 29 : index
    %c0_99 = arith.constant 0 : index
    %c0_100 = arith.constant 0 : index
    %374 = vector.load %arg1[%c29, %c0_99, %c0_100] : memref<64x4x16xf32, #tpu.memory_space<vmem>>, vector<1x4x16xf32>
    %375 = vector.shape_cast %374 : vector<1x4x16xf32> to vector<4x16xf32>
    %cst_101 = arith.constant dense<0.000000e+00> : vector<4x16xf32>
    %376 = tpu.matmul %375, %373, %cst_101 {dimension_numbers = #tpu.dot_dimension_numbers<[1], [0], [0], [1], [0, 0, 1, 1], [], []>} : vector<4x16xf32>, vector<16x16xf32>, vector<4x16xf32> -> vector<4x16xf32>
    %377 = vector.extract_strided_slice %4 {offsets = [0, 0, 120], sizes = [1, 16, 4], strides = [1, 1, 1]} : vector<4x16x256xf32> to vector<1x16x4xf32>
    %378 = vector.shape_cast %377 : vector<1x16x4xf32> to vector<16x4xf32>
    %379 = vector.extract_strided_slice %4 {offsets = [1, 0, 120], sizes = [1, 16, 4], strides = [1, 1, 1]} : vector<4x16x256xf32> to vector<1x16x4xf32>
    %380 = vector.shape_cast %379 : vector<1x16x4xf32> to vector<16x4xf32>
    %381 = vector.extract_strided_slice %4 {offsets = [2, 0, 120], sizes = [1, 16, 4], strides = [1, 1, 1]} : vector<4x16x256xf32> to vector<1x16x4xf32>
    %382 = vector.shape_cast %381 : vector<1x16x4xf32> to vector<16x4xf32>
    %383 = vector.extract_strided_slice %4 {offsets = [3, 0, 120], sizes = [1, 16, 4], strides = [1, 1, 1]} : vector<4x16x256xf32> to vector<1x16x4xf32>
    %384 = vector.shape_cast %383 : vector<1x16x4xf32> to vector<16x4xf32>
    %385 = tpu.concatenate %378, %380, %382, %384 in 1 : vector<16x4xf32>, vector<16x4xf32>, vector<16x4xf32>, vector<16x4xf32> -> vector<16x16xf32>
    %c30 = arith.constant 30 : index
    %c0_102 = arith.constant 0 : index
    %c0_103 = arith.constant 0 : index
    %386 = vector.load %arg1[%c30, %c0_102, %c0_103] : memref<64x4x16xf32, #tpu.memory_space<vmem>>, vector<1x4x16xf32>
    %387 = vector.shape_cast %386 : vector<1x4x16xf32> to vector<4x16xf32>
    %cst_104 = arith.constant dense<0.000000e+00> : vector<4x16xf32>
    %388 = tpu.matmul %387, %385, %cst_104 {dimension_numbers = #tpu.dot_dimension_numbers<[1], [0], [0], [1], [0, 0, 1, 1], [], []>} : vector<4x16xf32>, vector<16x16xf32>, vector<4x16xf32> -> vector<4x16xf32>
    %389 = vector.extract_strided_slice %4 {offsets = [0, 0, 124], sizes = [1, 16, 4], strides = [1, 1, 1]} : vector<4x16x256xf32> to vector<1x16x4xf32>
    %390 = vector.shape_cast %389 : vector<1x16x4xf32> to vector<16x4xf32>
    %391 = vector.extract_strided_slice %4 {offsets = [1, 0, 124], sizes = [1, 16, 4], strides = [1, 1, 1]} : vector<4x16x256xf32> to vector<1x16x4xf32>
    %392 = vector.shape_cast %391 : vector<1x16x4xf32> to vector<16x4xf32>
    %393 = vector.extract_strided_slice %4 {offsets = [2, 0, 124], sizes = [1, 16, 4], strides = [1, 1, 1]} : vector<4x16x256xf32> to vector<1x16x4xf32>
    %394 = vector.shape_cast %393 : vector<1x16x4xf32> to vector<16x4xf32>
    %395 = vector.extract_strided_slice %4 {offsets = [3, 0, 124], sizes = [1, 16, 4], strides = [1, 1, 1]} : vector<4x16x256xf32> to vector<1x16x4xf32>
    %396 = vector.shape_cast %395 : vector<1x16x4xf32> to vector<16x4xf32>
    %397 = tpu.concatenate %390, %392, %394, %396 in 1 : vector<16x4xf32>, vector<16x4xf32>, vector<16x4xf32>, vector<16x4xf32> -> vector<16x16xf32>
    %c31 = arith.constant 31 : index
    %c0_105 = arith.constant 0 : index
    %c0_106 = arith.constant 0 : index
    %398 = vector.load %arg1[%c31, %c0_105, %c0_106] : memref<64x4x16xf32, #tpu.memory_space<vmem>>, vector<1x4x16xf32>
    %399 = vector.shape_cast %398 : vector<1x4x16xf32> to vector<4x16xf32>
    %cst_107 = arith.constant dense<0.000000e+00> : vector<4x16xf32>
    %400 = tpu.matmul %399, %397, %cst_107 {dimension_numbers = #tpu.dot_dimension_numbers<[1], [0], [0], [1], [0, 0, 1, 1], [], []>} : vector<4x16xf32>, vector<16x16xf32>, vector<4x16xf32> -> vector<4x16xf32>
    %401 = tpu.concatenate %316, %328, %340, %352, %364, %376, %388, %400 in 1 : vector<4x16xf32>, vector<4x16xf32>, vector<4x16xf32>, vector<4x16xf32>, vector<4x16xf32>, vector<4x16xf32>, vector<4x16xf32>, vector<4x16xf32> -> vector<4x128xf32>
    %c0_108 = arith.constant 0 : index
    %c0_109 = arith.constant 0 : index
    %c384 = arith.constant 384 : index
    %402 = vector.load %arg4[%c0_108, %c0_109, %c384] : memref<1x4x1024xf32, #tpu.memory_space<vmem>>, vector<1x4x128xf32>
    %403 = vector.shape_cast %402 : vector<1x4x128xf32> to vector<4x128xf32>
    %404 = vector.shape_cast %401 : vector<4x128xf32> to vector<1x4x128xf32>
    tpu.vector_store %arg4[%c0_108, %c0_109, %c384], %404 {strides = array<i32>} : memref<1x4x1024xf32, #tpu.memory_space<vmem>>, vector<1x4x128xf32>,
    %405 = vector.extract_strided_slice %4 {offsets = [0, 0, 128], sizes = [1, 16, 4], strides = [1, 1, 1]} : vector<4x16x256xf32> to vector<1x16x4xf32>
    %406 = vector.shape_cast %405 : vector<1x16x4xf32> to vector<16x4xf32>
    %407 = vector.extract_strided_slice %4 {offsets = [1, 0, 128], sizes = [1, 16, 4], strides = [1, 1, 1]} : vector<4x16x256xf32> to vector<1x16x4xf32>
    %408 = vector.shape_cast %407 : vector<1x16x4xf32> to vector<16x4xf32>
    %409 = vector.extract_strided_slice %4 {offsets = [2, 0, 128], sizes = [1, 16, 4], strides = [1, 1, 1]} : vector<4x16x256xf32> to vector<1x16x4xf32>
    %410 = vector.shape_cast %409 : vector<1x16x4xf32> to vector<16x4xf32>
    %411 = vector.extract_strided_slice %4 {offsets = [3, 0, 128], sizes = [1, 16, 4], strides = [1, 1, 1]} : vector<4x16x256xf32> to vector<1x16x4xf32>
    %412 = vector.shape_cast %411 : vector<1x16x4xf32> to vector<16x4xf32>
    %413 = tpu.concatenate %406, %408, %410, %412 in 1 : vector<16x4xf32>, vector<16x4xf32>, vector<16x4xf32>, vector<16x4xf32> -> vector<16x16xf32>
    %c32 = arith.constant 32 : index
    %c0_110 = arith.constant 0 : index
    %c0_111 = arith.constant 0 : index
    %414 = vector.load %arg1[%c32, %c0_110, %c0_111] : memref<64x4x16xf32, #tpu.memory_space<vmem>>, vector<1x4x16xf32>
    %415 = vector.shape_cast %414 : vector<1x4x16xf32> to vector<4x16xf32>
    %cst_112 = arith.constant dense<0.000000e+00> : vector<4x16xf32>
    %416 = tpu.matmul %415, %413, %cst_112 {dimension_numbers = #tpu.dot_dimension_numbers<[1], [0], [0], [1], [0, 0, 1, 1], [], []>} : vector<4x16xf32>, vector<16x16xf32>, vector<4x16xf32> -> vector<4x16xf32>
    %417 = vector.extract_strided_slice %4 {offsets = [0, 0, 132], sizes = [1, 16, 4], strides = [1, 1, 1]} : vector<4x16x256xf32> to vector<1x16x4xf32>
    %418 = vector.shape_cast %417 : vector<1x16x4xf32> to vector<16x4xf32>
    %419 = vector.extract_strided_slice %4 {offsets = [1, 0, 132], sizes = [1, 16, 4], strides = [1, 1, 1]} : vector<4x16x256xf32> to vector<1x16x4xf32>
    %420 = vector.shape_cast %419 : vector<1x16x4xf32> to vector<16x4xf32>
    %421 = vector.extract_strided_slice %4 {offsets = [2, 0, 132], sizes = [1, 16, 4], strides = [1, 1, 1]} : vector<4x16x256xf32> to vector<1x16x4xf32>
    %422 = vector.shape_cast %421 : vector<1x16x4xf32> to vector<16x4xf32>
    %423 = vector.extract_strided_slice %4 {offsets = [3, 0, 132], sizes = [1, 16, 4], strides = [1, 1, 1]} : vector<4x16x256xf32> to vector<1x16x4xf32>
    %424 = vector.shape_cast %423 : vector<1x16x4xf32> to vector<16x4xf32>
    %425 = tpu.concatenate %418, %420, %422, %424 in 1 : vector<16x4xf32>, vector<16x4xf32>, vector<16x4xf32>, vector<16x4xf32> -> vector<16x16xf32>
    %c33 = arith.constant 33 : index
    %c0_113 = arith.constant 0 : index
    %c0_114 = arith.constant 0 : index
    %426 = vector.load %arg1[%c33, %c0_113, %c0_114] : memref<64x4x16xf32, #tpu.memory_space<vmem>>, vector<1x4x16xf32>
    %427 = vector.shape_cast %426 : vector<1x4x16xf32> to vector<4x16xf32>
    %cst_115 = arith.constant dense<0.000000e+00> : vector<4x16xf32>
    %428 = tpu.matmul %427, %425, %cst_115 {dimension_numbers = #tpu.dot_dimension_numbers<[1], [0], [0], [1], [0, 0, 1, 1], [], []>} : vector<4x16xf32>, vector<16x16xf32>, vector<4x16xf32> -> vector<4x16xf32>
    %429 = vector.extract_strided_slice %4 {offsets = [0, 0, 136], sizes = [1, 16, 4], strides = [1, 1, 1]} : vector<4x16x256xf32> to vector<1x16x4xf32>
    %430 = vector.shape_cast %429 : vector<1x16x4xf32> to vector<16x4xf32>
    %431 = vector.extract_strided_slice %4 {offsets = [1, 0, 136], sizes = [1, 16, 4], strides = [1, 1, 1]} : vector<4x16x256xf32> to vector<1x16x4xf32>
    %432 = vector.shape_cast %431 : vector<1x16x4xf32> to vector<16x4xf32>
    %433 = vector.extract_strided_slice %4 {offsets = [2, 0, 136], sizes = [1, 16, 4], strides = [1, 1, 1]} : vector<4x16x256xf32> to vector<1x16x4xf32>
    %434 = vector.shape_cast %433 : vector<1x16x4xf32> to vector<16x4xf32>
    %435 = vector.extract_strided_slice %4 {offsets = [3, 0, 136], sizes = [1, 16, 4], strides = [1, 1, 1]} : vector<4x16x256xf32> to vector<1x16x4xf32>
    %436 = vector.shape_cast %435 : vector<1x16x4xf32> to vector<16x4xf32>
    %437 = tpu.concatenate %430, %432, %434, %436 in 1 : vector<16x4xf32>, vector<16x4xf32>, vector<16x4xf32>, vector<16x4xf32> -> vector<16x16xf32>
    %c34 = arith.constant 34 : index
    %c0_116 = arith.constant 0 : index
    %c0_117 = arith.constant 0 : index
    %438 = vector.load %arg1[%c34, %c0_116, %c0_117] : memref<64x4x16xf32, #tpu.memory_space<vmem>>, vector<1x4x16xf32>
    %439 = vector.shape_cast %438 : vector<1x4x16xf32> to vector<4x16xf32>
    %cst_118 = arith.constant dense<0.000000e+00> : vector<4x16xf32>
    %440 = tpu.matmul %439, %437, %cst_118 {dimension_numbers = #tpu.dot_dimension_numbers<[1], [0], [0], [1], [0, 0, 1, 1], [], []>} : vector<4x16xf32>, vector<16x16xf32>, vector<4x16xf32> -> vector<4x16xf32>
    %441 = vector.extract_strided_slice %4 {offsets = [0, 0, 140], sizes = [1, 16, 4], strides = [1, 1, 1]} : vector<4x16x256xf32> to vector<1x16x4xf32>
    %442 = vector.shape_cast %441 : vector<1x16x4xf32> to vector<16x4xf32>
    %443 = vector.extract_strided_slice %4 {offsets = [1, 0, 140], sizes = [1, 16, 4], strides = [1, 1, 1]} : vector<4x16x256xf32> to vector<1x16x4xf32>
    %444 = vector.shape_cast %443 : vector<1x16x4xf32> to vector<16x4xf32>
    %445 = vector.extract_strided_slice %4 {offsets = [2, 0, 140], sizes = [1, 16, 4], strides = [1, 1, 1]} : vector<4x16x256xf32> to vector<1x16x4xf32>
    %446 = vector.shape_cast %445 : vector<1x16x4xf32> to vector<16x4xf32>
    %447 = vector.extract_strided_slice %4 {offsets = [3, 0, 140], sizes = [1, 16, 4], strides = [1, 1, 1]} : vector<4x16x256xf32> to vector<1x16x4xf32>
    %448 = vector.shape_cast %447 : vector<1x16x4xf32> to vector<16x4xf32>
    %449 = tpu.concatenate %442, %444, %446, %448 in 1 : vector<16x4xf32>, vector<16x4xf32>, vector<16x4xf32>, vector<16x4xf32> -> vector<16x16xf32>
    %c35 = arith.constant 35 : index
    %c0_119 = arith.constant 0 : index
    %c0_120 = arith.constant 0 : index
    %450 = vector.load %arg1[%c35, %c0_119, %c0_120] : memref<64x4x16xf32, #tpu.memory_space<vmem>>, vector<1x4x16xf32>
    %451 = vector.shape_cast %450 : vector<1x4x16xf32> to vector<4x16xf32>
    %cst_121 = arith.constant dense<0.000000e+00> : vector<4x16xf32>
    %452 = tpu.matmul %451, %449, %cst_121 {dimension_numbers = #tpu.dot_dimension_numbers<[1], [0], [0], [1], [0, 0, 1, 1], [], []>} : vector<4x16xf32>, vector<16x16xf32>, vector<4x16xf32> -> vector<4x16xf32>
    %453 = vector.extract_strided_slice %4 {offsets = [0, 0, 144], sizes = [1, 16, 4], strides = [1, 1, 1]} : vector<4x16x256xf32> to vector<1x16x4xf32>
    %454 = vector.shape_cast %453 : vector<1x16x4xf32> to vector<16x4xf32>
    %455 = vector.extract_strided_slice %4 {offsets = [1, 0, 144], sizes = [1, 16, 4], strides = [1, 1, 1]} : vector<4x16x256xf32> to vector<1x16x4xf32>
    %456 = vector.shape_cast %455 : vector<1x16x4xf32> to vector<16x4xf32>
    %457 = vector.extract_strided_slice %4 {offsets = [2, 0, 144], sizes = [1, 16, 4], strides = [1, 1, 1]} : vector<4x16x256xf32> to vector<1x16x4xf32>
    %458 = vector.shape_cast %457 : vector<1x16x4xf32> to vector<16x4xf32>
    %459 = vector.extract_strided_slice %4 {offsets = [3, 0, 144], sizes = [1, 16, 4], strides = [1, 1, 1]} : vector<4x16x256xf32> to vector<1x16x4xf32>
    %460 = vector.shape_cast %459 : vector<1x16x4xf32> to vector<16x4xf32>
    %461 = tpu.concatenate %454, %456, %458, %460 in 1 : vector<16x4xf32>, vector<16x4xf32>, vector<16x4xf32>, vector<16x4xf32> -> vector<16x16xf32>
    %c36 = arith.constant 36 : index
    %c0_122 = arith.constant 0 : index
    %c0_123 = arith.constant 0 : index
    %462 = vector.load %arg1[%c36, %c0_122, %c0_123] : memref<64x4x16xf32, #tpu.memory_space<vmem>>, vector<1x4x16xf32>
    %463 = vector.shape_cast %462 : vector<1x4x16xf32> to vector<4x16xf32>
    %cst_124 = arith.constant dense<0.000000e+00> : vector<4x16xf32>
    %464 = tpu.matmul %463, %461, %cst_124 {dimension_numbers = #tpu.dot_dimension_numbers<[1], [0], [0], [1], [0, 0, 1, 1], [], []>} : vector<4x16xf32>, vector<16x16xf32>, vector<4x16xf32> -> vector<4x16xf32>
    %465 = vector.extract_strided_slice %4 {offsets = [0, 0, 148], sizes = [1, 16, 4], strides = [1, 1, 1]} : vector<4x16x256xf32> to vector<1x16x4xf32>
    %466 = vector.shape_cast %465 : vector<1x16x4xf32> to vector<16x4xf32>
    %467 = vector.extract_strided_slice %4 {offsets = [1, 0, 148], sizes = [1, 16, 4], strides = [1, 1, 1]} : vector<4x16x256xf32> to vector<1x16x4xf32>
    %468 = vector.shape_cast %467 : vector<1x16x4xf32> to vector<16x4xf32>
    %469 = vector.extract_strided_slice %4 {offsets = [2, 0, 148], sizes = [1, 16, 4], strides = [1, 1, 1]} : vector<4x16x256xf32> to vector<1x16x4xf32>
    %470 = vector.shape_cast %469 : vector<1x16x4xf32> to vector<16x4xf32>
    %471 = vector.extract_strided_slice %4 {offsets = [3, 0, 148], sizes = [1, 16, 4], strides = [1, 1, 1]} : vector<4x16x256xf32> to vector<1x16x4xf32>
    %472 = vector.shape_cast %471 : vector<1x16x4xf32> to vector<16x4xf32>
    %473 = tpu.concatenate %466, %468, %470, %472 in 1 : vector<16x4xf32>, vector<16x4xf32>, vector<16x4xf32>, vector<16x4xf32> -> vector<16x16xf32>
    %c37 = arith.constant 37 : index
    %c0_125 = arith.constant 0 : index
    %c0_126 = arith.constant 0 : index
    %474 = vector.load %arg1[%c37, %c0_125, %c0_126] : memref<64x4x16xf32, #tpu.memory_space<vmem>>, vector<1x4x16xf32>
    %475 = vector.shape_cast %474 : vector<1x4x16xf32> to vector<4x16xf32>
    %cst_127 = arith.constant dense<0.000000e+00> : vector<4x16xf32>
    %476 = tpu.matmul %475, %473, %cst_127 {dimension_numbers = #tpu.dot_dimension_numbers<[1], [0], [0], [1], [0, 0, 1, 1], [], []>} : vector<4x16xf32>, vector<16x16xf32>, vector<4x16xf32> -> vector<4x16xf32>
    %477 = vector.extract_strided_slice %4 {offsets = [0, 0, 152], sizes = [1, 16, 4], strides = [1, 1, 1]} : vector<4x16x256xf32> to vector<1x16x4xf32>
    %478 = vector.shape_cast %477 : vector<1x16x4xf32> to vector<16x4xf32>
    %479 = vector.extract_strided_slice %4 {offsets = [1, 0, 152], sizes = [1, 16, 4], strides = [1, 1, 1]} : vector<4x16x256xf32> to vector<1x16x4xf32>
    %480 = vector.shape_cast %479 : vector<1x16x4xf32> to vector<16x4xf32>
    %481 = vector.extract_strided_slice %4 {offsets = [2, 0, 152], sizes = [1, 16, 4], strides = [1, 1, 1]} : vector<4x16x256xf32> to vector<1x16x4xf32>
    %482 = vector.shape_cast %481 : vector<1x16x4xf32> to vector<16x4xf32>
    %483 = vector.extract_strided_slice %4 {offsets = [3, 0, 152], sizes = [1, 16, 4], strides = [1, 1, 1]} : vector<4x16x256xf32> to vector<1x16x4xf32>
    %484 = vector.shape_cast %483 : vector<1x16x4xf32> to vector<16x4xf32>
    %485 = tpu.concatenate %478, %480, %482, %484 in 1 : vector<16x4xf32>, vector<16x4xf32>, vector<16x4xf32>, vector<16x4xf32> -> vector<16x16xf32>
    %c38 = arith.constant 38 : index
    %c0_128 = arith.constant 0 : index
    %c0_129 = arith.constant 0 : index
    %486 = vector.load %arg1[%c38, %c0_128, %c0_129] : memref<64x4x16xf32, #tpu.memory_space<vmem>>, vector<1x4x16xf32>
    %487 = vector.shape_cast %486 : vector<1x4x16xf32> to vector<4x16xf32>
    %cst_130 = arith.constant dense<0.000000e+00> : vector<4x16xf32>
    %488 = tpu.matmul %487, %485, %cst_130 {dimension_numbers = #tpu.dot_dimension_numbers<[1], [0], [0], [1], [0, 0, 1, 1], [], []>} : vector<4x16xf32>, vector<16x16xf32>, vector<4x16xf32> -> vector<4x16xf32>
    %489 = vector.extract_strided_slice %4 {offsets = [0, 0, 156], sizes = [1, 16, 4], strides = [1, 1, 1]} : vector<4x16x256xf32> to vector<1x16x4xf32>
    %490 = vector.shape_cast %489 : vector<1x16x4xf32> to vector<16x4xf32>
    %491 = vector.extract_strided_slice %4 {offsets = [1, 0, 156], sizes = [1, 16, 4], strides = [1, 1, 1]} : vector<4x16x256xf32> to vector<1x16x4xf32>
    %492 = vector.shape_cast %491 : vector<1x16x4xf32> to vector<16x4xf32>
    %493 = vector.extract_strided_slice %4 {offsets = [2, 0, 156], sizes = [1, 16, 4], strides = [1, 1, 1]} : vector<4x16x256xf32> to vector<1x16x4xf32>
    %494 = vector.shape_cast %493 : vector<1x16x4xf32> to vector<16x4xf32>
    %495 = vector.extract_strided_slice %4 {offsets = [3, 0, 156], sizes = [1, 16, 4], strides = [1, 1, 1]} : vector<4x16x256xf32> to vector<1x16x4xf32>
    %496 = vector.shape_cast %495 : vector<1x16x4xf32> to vector<16x4xf32>
    %497 = tpu.concatenate %490, %492, %494, %496 in 1 : vector<16x4xf32>, vector<16x4xf32>, vector<16x4xf32>, vector<16x4xf32> -> vector<16x16xf32>
    %c39 = arith.constant 39 : index
    %c0_131 = arith.constant 0 : index
    %c0_132 = arith.constant 0 : index
    %498 = vector.load %arg1[%c39, %c0_131, %c0_132] : memref<64x4x16xf32, #tpu.memory_space<vmem>>, vector<1x4x16xf32>
    %499 = vector.shape_cast %498 : vector<1x4x16xf32> to vector<4x16xf32>
    %cst_133 = arith.constant dense<0.000000e+00> : vector<4x16xf32>
    %500 = tpu.matmul %499, %497, %cst_133 {dimension_numbers = #tpu.dot_dimension_numbers<[1], [0], [0], [1], [0, 0, 1, 1], [], []>} : vector<4x16xf32>, vector<16x16xf32>, vector<4x16xf32> -> vector<4x16xf32>
    %501 = tpu.concatenate %416, %428, %440, %452, %464, %476, %488, %500 in 1 : vector<4x16xf32>, vector<4x16xf32>, vector<4x16xf32>, vector<4x16xf32>, vector<4x16xf32>, vector<4x16xf32>, vector<4x16xf32>, vector<4x16xf32> -> vector<4x128xf32>
    %c0_134 = arith.constant 0 : index
    %c0_135 = arith.constant 0 : index
    %c512 = arith.constant 512 : index
    %502 = vector.load %arg4[%c0_134, %c0_135, %c512] : memref<1x4x1024xf32, #tpu.memory_space<vmem>>, vector<1x4x128xf32>
    %503 = vector.shape_cast %502 : vector<1x4x128xf32> to vector<4x128xf32>
    %504 = vector.shape_cast %501 : vector<4x128xf32> to vector<1x4x128xf32>
    tpu.vector_store %arg4[%c0_134, %c0_135, %c512], %504 {strides = array<i32>} : memref<1x4x1024xf32, #tpu.memory_space<vmem>>, vector<1x4x128xf32>,
    %505 = vector.extract_strided_slice %4 {offsets = [0, 0, 160], sizes = [1, 16, 4], strides = [1, 1, 1]} : vector<4x16x256xf32> to vector<1x16x4xf32>
    %506 = vector.shape_cast %505 : vector<1x16x4xf32> to vector<16x4xf32>
    %507 = vector.extract_strided_slice %4 {offsets = [1, 0, 160], sizes = [1, 16, 4], strides = [1, 1, 1]} : vector<4x16x256xf32> to vector<1x16x4xf32>
    %508 = vector.shape_cast %507 : vector<1x16x4xf32> to vector<16x4xf32>
    %509 = vector.extract_strided_slice %4 {offsets = [2, 0, 160], sizes = [1, 16, 4], strides = [1, 1, 1]} : vector<4x16x256xf32> to vector<1x16x4xf32>
    %510 = vector.shape_cast %509 : vector<1x16x4xf32> to vector<16x4xf32>
    %511 = vector.extract_strided_slice %4 {offsets = [3, 0, 160], sizes = [1, 16, 4], strides = [1, 1, 1]} : vector<4x16x256xf32> to vector<1x16x4xf32>
    %512 = vector.shape_cast %511 : vector<1x16x4xf32> to vector<16x4xf32>
    %513 = tpu.concatenate %506, %508, %510, %512 in 1 : vector<16x4xf32>, vector<16x4xf32>, vector<16x4xf32>, vector<16x4xf32> -> vector<16x16xf32>
    %c40 = arith.constant 40 : index
    %c0_136 = arith.constant 0 : index
    %c0_137 = arith.constant 0 : index
    %514 = vector.load %arg1[%c40, %c0_136, %c0_137] : memref<64x4x16xf32, #tpu.memory_space<vmem>>, vector<1x4x16xf32>
    %515 = vector.shape_cast %514 : vector<1x4x16xf32> to vector<4x16xf32>
    %cst_138 = arith.constant dense<0.000000e+00> : vector<4x16xf32>
    %516 = tpu.matmul %515, %513, %cst_138 {dimension_numbers = #tpu.dot_dimension_numbers<[1], [0], [0], [1], [0, 0, 1, 1], [], []>} : vector<4x16xf32>, vector<16x16xf32>, vector<4x16xf32> -> vector<4x16xf32>
    %517 = vector.extract_strided_slice %4 {offsets = [0, 0, 164], sizes = [1, 16, 4], strides = [1, 1, 1]} : vector<4x16x256xf32> to vector<1x16x4xf32>
    %518 = vector.shape_cast %517 : vector<1x16x4xf32> to vector<16x4xf32>
    %519 = vector.extract_strided_slice %4 {offsets = [1, 0, 164], sizes = [1, 16, 4], strides = [1, 1, 1]} : vector<4x16x256xf32> to vector<1x16x4xf32>
    %520 = vector.shape_cast %519 : vector<1x16x4xf32> to vector<16x4xf32>
    %521 = vector.extract_strided_slice %4 {offsets = [2, 0, 164], sizes = [1, 16, 4], strides = [1, 1, 1]} : vector<4x16x256xf32> to vector<1x16x4xf32>
    %522 = vector.shape_cast %521 : vector<1x16x4xf32> to vector<16x4xf32>
    %523 = vector.extract_strided_slice %4 {offsets = [3, 0, 164], sizes = [1, 16, 4], strides = [1, 1, 1]} : vector<4x16x256xf32> to vector<1x16x4xf32>
    %524 = vector.shape_cast %523 : vector<1x16x4xf32> to vector<16x4xf32>
    %525 = tpu.concatenate %518, %520, %522, %524 in 1 : vector<16x4xf32>, vector<16x4xf32>, vector<16x4xf32>, vector<16x4xf32> -> vector<16x16xf32>
    %c41 = arith.constant 41 : index
    %c0_139 = arith.constant 0 : index
    %c0_140 = arith.constant 0 : index
    %526 = vector.load %arg1[%c41, %c0_139, %c0_140] : memref<64x4x16xf32, #tpu.memory_space<vmem>>, vector<1x4x16xf32>
    %527 = vector.shape_cast %526 : vector<1x4x16xf32> to vector<4x16xf32>
    %cst_141 = arith.constant dense<0.000000e+00> : vector<4x16xf32>
    %528 = tpu.matmul %527, %525, %cst_141 {dimension_numbers = #tpu.dot_dimension_numbers<[1], [0], [0], [1], [0, 0, 1, 1], [], []>} : vector<4x16xf32>, vector<16x16xf32>, vector<4x16xf32> -> vector<4x16xf32>
    %529 = vector.extract_strided_slice %4 {offsets = [0, 0, 168], sizes = [1, 16, 4], strides = [1, 1, 1]} : vector<4x16x256xf32> to vector<1x16x4xf32>
    %530 = vector.shape_cast %529 : vector<1x16x4xf32> to vector<16x4xf32>
    %531 = vector.extract_strided_slice %4 {offsets = [1, 0, 168], sizes = [1, 16, 4], strides = [1, 1, 1]} : vector<4x16x256xf32> to vector<1x16x4xf32>
    %532 = vector.shape_cast %531 : vector<1x16x4xf32> to vector<16x4xf32>
    %533 = vector.extract_strided_slice %4 {offsets = [2, 0, 168], sizes = [1, 16, 4], strides = [1, 1, 1]} : vector<4x16x256xf32> to vector<1x16x4xf32>
    %534 = vector.shape_cast %533 : vector<1x16x4xf32> to vector<16x4xf32>
    %535 = vector.extract_strided_slice %4 {offsets = [3, 0, 168], sizes = [1, 16, 4], strides = [1, 1, 1]} : vector<4x16x256xf32> to vector<1x16x4xf32>
    %536 = vector.shape_cast %535 : vector<1x16x4xf32> to vector<16x4xf32>
    %537 = tpu.concatenate %530, %532, %534, %536 in 1 : vector<16x4xf32>, vector<16x4xf32>, vector<16x4xf32>, vector<16x4xf32> -> vector<16x16xf32>
    %c42 = arith.constant 42 : index
    %c0_142 = arith.constant 0 : index
    %c0_143 = arith.constant 0 : index
    %538 = vector.load %arg1[%c42, %c0_142, %c0_143] : memref<64x4x16xf32, #tpu.memory_space<vmem>>, vector<1x4x16xf32>
    %539 = vector.shape_cast %538 : vector<1x4x16xf32> to vector<4x16xf32>
    %cst_144 = arith.constant dense<0.000000e+00> : vector<4x16xf32>
    %540 = tpu.matmul %539, %537, %cst_144 {dimension_numbers = #tpu.dot_dimension_numbers<[1], [0], [0], [1], [0, 0, 1, 1], [], []>} : vector<4x16xf32>, vector<16x16xf32>, vector<4x16xf32> -> vector<4x16xf32>
    %541 = vector.extract_strided_slice %4 {offsets = [0, 0, 172], sizes = [1, 16, 4], strides = [1, 1, 1]} : vector<4x16x256xf32> to vector<1x16x4xf32>
    %542 = vector.shape_cast %541 : vector<1x16x4xf32> to vector<16x4xf32>
    %543 = vector.extract_strided_slice %4 {offsets = [1, 0, 172], sizes = [1, 16, 4], strides = [1, 1, 1]} : vector<4x16x256xf32> to vector<1x16x4xf32>
    %544 = vector.shape_cast %543 : vector<1x16x4xf32> to vector<16x4xf32>
    %545 = vector.extract_strided_slice %4 {offsets = [2, 0, 172], sizes = [1, 16, 4], strides = [1, 1, 1]} : vector<4x16x256xf32> to vector<1x16x4xf32>
    %546 = vector.shape_cast %545 : vector<1x16x4xf32> to vector<16x4xf32>
    %547 = vector.extract_strided_slice %4 {offsets = [3, 0, 172], sizes = [1, 16, 4], strides = [1, 1, 1]} : vector<4x16x256xf32> to vector<1x16x4xf32>
    %548 = vector.shape_cast %547 : vector<1x16x4xf32> to vector<16x4xf32>
    %549 = tpu.concatenate %542, %544, %546, %548 in 1 : vector<16x4xf32>, vector<16x4xf32>, vector<16x4xf32>, vector<16x4xf32> -> vector<16x16xf32>
    %c43 = arith.constant 43 : index
    %c0_145 = arith.constant 0 : index
    %c0_146 = arith.constant 0 : index
    %550 = vector.load %arg1[%c43, %c0_145, %c0_146] : memref<64x4x16xf32, #tpu.memory_space<vmem>>, vector<1x4x16xf32>
    %551 = vector.shape_cast %550 : vector<1x4x16xf32> to vector<4x16xf32>
    %cst_147 = arith.constant dense<0.000000e+00> : vector<4x16xf32>
    %552 = tpu.matmul %551, %549, %cst_147 {dimension_numbers = #tpu.dot_dimension_numbers<[1], [0], [0], [1], [0, 0, 1, 1], [], []>} : vector<4x16xf32>, vector<16x16xf32>, vector<4x16xf32> -> vector<4x16xf32>
    %553 = vector.extract_strided_slice %4 {offsets = [0, 0, 176], sizes = [1, 16, 4], strides = [1, 1, 1]} : vector<4x16x256xf32> to vector<1x16x4xf32>
    %554 = vector.shape_cast %553 : vector<1x16x4xf32> to vector<16x4xf32>
    %555 = vector.extract_strided_slice %4 {offsets = [1, 0, 176], sizes = [1, 16, 4], strides = [1, 1, 1]} : vector<4x16x256xf32> to vector<1x16x4xf32>
    %556 = vector.shape_cast %555 : vector<1x16x4xf32> to vector<16x4xf32>
    %557 = vector.extract_strided_slice %4 {offsets = [2, 0, 176], sizes = [1, 16, 4], strides = [1, 1, 1]} : vector<4x16x256xf32> to vector<1x16x4xf32>
    %558 = vector.shape_cast %557 : vector<1x16x4xf32> to vector<16x4xf32>
    %559 = vector.extract_strided_slice %4 {offsets = [3, 0, 176], sizes = [1, 16, 4], strides = [1, 1, 1]} : vector<4x16x256xf32> to vector<1x16x4xf32>
    %560 = vector.shape_cast %559 : vector<1x16x4xf32> to vector<16x4xf32>
    %561 = tpu.concatenate %554, %556, %558, %560 in 1 : vector<16x4xf32>, vector<16x4xf32>, vector<16x4xf32>, vector<16x4xf32> -> vector<16x16xf32>
    %c44 = arith.constant 44 : index
    %c0_148 = arith.constant 0 : index
    %c0_149 = arith.constant 0 : index
    %562 = vector.load %arg1[%c44, %c0_148, %c0_149] : memref<64x4x16xf32, #tpu.memory_space<vmem>>, vector<1x4x16xf32>
    %563 = vector.shape_cast %562 : vector<1x4x16xf32> to vector<4x16xf32>
    %cst_150 = arith.constant dense<0.000000e+00> : vector<4x16xf32>
    %564 = tpu.matmul %563, %561, %cst_150 {dimension_numbers = #tpu.dot_dimension_numbers<[1], [0], [0], [1], [0, 0, 1, 1], [], []>} : vector<4x16xf32>, vector<16x16xf32>, vector<4x16xf32> -> vector<4x16xf32>
    %565 = vector.extract_strided_slice %4 {offsets = [0, 0, 180], sizes = [1, 16, 4], strides = [1, 1, 1]} : vector<4x16x256xf32> to vector<1x16x4xf32>
    %566 = vector.shape_cast %565 : vector<1x16x4xf32> to vector<16x4xf32>
    %567 = vector.extract_strided_slice %4 {offsets = [1, 0, 180], sizes = [1, 16, 4], strides = [1, 1, 1]} : vector<4x16x256xf32> to vector<1x16x4xf32>
    %568 = vector.shape_cast %567 : vector<1x16x4xf32> to vector<16x4xf32>
    %569 = vector.extract_strided_slice %4 {offsets = [2, 0, 180], sizes = [1, 16, 4], strides = [1, 1, 1]} : vector<4x16x256xf32> to vector<1x16x4xf32>
    %570 = vector.shape_cast %569 : vector<1x16x4xf32> to vector<16x4xf32>
    %571 = vector.extract_strided_slice %4 {offsets = [3, 0, 180], sizes = [1, 16, 4], strides = [1, 1, 1]} : vector<4x16x256xf32> to vector<1x16x4xf32>
    %572 = vector.shape_cast %571 : vector<1x16x4xf32> to vector<16x4xf32>
    %573 = tpu.concatenate %566, %568, %570, %572 in 1 : vector<16x4xf32>, vector<16x4xf32>, vector<16x4xf32>, vector<16x4xf32> -> vector<16x16xf32>
    %c45 = arith.constant 45 : index
    %c0_151 = arith.constant 0 : index
    %c0_152 = arith.constant 0 : index
    %574 = vector.load %arg1[%c45, %c0_151, %c0_152] : memref<64x4x16xf32, #tpu.memory_space<vmem>>, vector<1x4x16xf32>
    %575 = vector.shape_cast %574 : vector<1x4x16xf32> to vector<4x16xf32>
    %cst_153 = arith.constant dense<0.000000e+00> : vector<4x16xf32>
    %576 = tpu.matmul %575, %573, %cst_153 {dimension_numbers = #tpu.dot_dimension_numbers<[1], [0], [0], [1], [0, 0, 1, 1], [], []>} : vector<4x16xf32>, vector<16x16xf32>, vector<4x16xf32> -> vector<4x16xf32>
    %577 = vector.extract_strided_slice %4 {offsets = [0, 0, 184], sizes = [1, 16, 4], strides = [1, 1, 1]} : vector<4x16x256xf32> to vector<1x16x4xf32>
    %578 = vector.shape_cast %577 : vector<1x16x4xf32> to vector<16x4xf32>
    %579 = vector.extract_strided_slice %4 {offsets = [1, 0, 184], sizes = [1, 16, 4], strides = [1, 1, 1]} : vector<4x16x256xf32> to vector<1x16x4xf32>
    %580 = vector.shape_cast %579 : vector<1x16x4xf32> to vector<16x4xf32>
    %581 = vector.extract_strided_slice %4 {offsets = [2, 0, 184], sizes = [1, 16, 4], strides = [1, 1, 1]} : vector<4x16x256xf32> to vector<1x16x4xf32>
    %582 = vector.shape_cast %581 : vector<1x16x4xf32> to vector<16x4xf32>
    %583 = vector.extract_strided_slice %4 {offsets = [3, 0, 184], sizes = [1, 16, 4], strides = [1, 1, 1]} : vector<4x16x256xf32> to vector<1x16x4xf32>
    %584 = vector.shape_cast %583 : vector<1x16x4xf32> to vector<16x4xf32>
    %585 = tpu.concatenate %578, %580, %582, %584 in 1 : vector<16x4xf32>, vector<16x4xf32>, vector<16x4xf32>, vector<16x4xf32> -> vector<16x16xf32>
    %c46 = arith.constant 46 : index
    %c0_154 = arith.constant 0 : index
    %c0_155 = arith.constant 0 : index
    %586 = vector.load %arg1[%c46, %c0_154, %c0_155] : memref<64x4x16xf32, #tpu.memory_space<vmem>>, vector<1x4x16xf32>
    %587 = vector.shape_cast %586 : vector<1x4x16xf32> to vector<4x16xf32>
    %cst_156 = arith.constant dense<0.000000e+00> : vector<4x16xf32>
    %588 = tpu.matmul %587, %585, %cst_156 {dimension_numbers = #tpu.dot_dimension_numbers<[1], [0], [0], [1], [0, 0, 1, 1], [], []>} : vector<4x16xf32>, vector<16x16xf32>, vector<4x16xf32> -> vector<4x16xf32>
    %589 = vector.extract_strided_slice %4 {offsets = [0, 0, 188], sizes = [1, 16, 4], strides = [1, 1, 1]} : vector<4x16x256xf32> to vector<1x16x4xf32>
    %590 = vector.shape_cast %589 : vector<1x16x4xf32> to vector<16x4xf32>
    %591 = vector.extract_strided_slice %4 {offsets = [1, 0, 188], sizes = [1, 16, 4], strides = [1, 1, 1]} : vector<4x16x256xf32> to vector<1x16x4xf32>
    %592 = vector.shape_cast %591 : vector<1x16x4xf32> to vector<16x4xf32>
    %593 = vector.extract_strided_slice %4 {offsets = [2, 0, 188], sizes = [1, 16, 4], strides = [1, 1, 1]} : vector<4x16x256xf32> to vector<1x16x4xf32>
    %594 = vector.shape_cast %593 : vector<1x16x4xf32> to vector<16x4xf32>
    %595 = vector.extract_strided_slice %4 {offsets = [3, 0, 188], sizes = [1, 16, 4], strides = [1, 1, 1]} : vector<4x16x256xf32> to vector<1x16x4xf32>
    %596 = vector.shape_cast %595 : vector<1x16x4xf32> to vector<16x4xf32>
    %597 = tpu.concatenate %590, %592, %594, %596 in 1 : vector<16x4xf32>, vector<16x4xf32>, vector<16x4xf32>, vector<16x4xf32> -> vector<16x16xf32>
    %c47 = arith.constant 47 : index
    %c0_157 = arith.constant 0 : index
    %c0_158 = arith.constant 0 : index
    %598 = vector.load %arg1[%c47, %c0_157, %c0_158] : memref<64x4x16xf32, #tpu.memory_space<vmem>>, vector<1x4x16xf32>
    %599 = vector.shape_cast %598 : vector<1x4x16xf32> to vector<4x16xf32>
    %cst_159 = arith.constant dense<0.000000e+00> : vector<4x16xf32>
    %600 = tpu.matmul %599, %597, %cst_159 {dimension_numbers = #tpu.dot_dimension_numbers<[1], [0], [0], [1], [0, 0, 1, 1], [], []>} : vector<4x16xf32>, vector<16x16xf32>, vector<4x16xf32> -> vector<4x16xf32>
    %601 = tpu.concatenate %516, %528, %540, %552, %564, %576, %588, %600 in 1 : vector<4x16xf32>, vector<4x16xf32>, vector<4x16xf32>, vector<4x16xf32>, vector<4x16xf32>, vector<4x16xf32>, vector<4x16xf32>, vector<4x16xf32> -> vector<4x128xf32>
    %c0_160 = arith.constant 0 : index
    %c0_161 = arith.constant 0 : index
    %c640 = arith.constant 640 : index
    %602 = vector.load %arg4[%c0_160, %c0_161, %c640] : memref<1x4x1024xf32, #tpu.memory_space<vmem>>, vector<1x4x128xf32>
    %603 = vector.shape_cast %602 : vector<1x4x128xf32> to vector<4x128xf32>
    %604 = vector.shape_cast %601 : vector<4x128xf32> to vector<1x4x128xf32>
    tpu.vector_store %arg4[%c0_160, %c0_161, %c640], %604 {strides = array<i32>} : memref<1x4x1024xf32, #tpu.memory_space<vmem>>, vector<1x4x128xf32>,
    %605 = vector.extract_strided_slice %4 {offsets = [0, 0, 192], sizes = [1, 16, 4], strides = [1, 1, 1]} : vector<4x16x256xf32> to vector<1x16x4xf32>
    %606 = vector.shape_cast %605 : vector<1x16x4xf32> to vector<16x4xf32>
    %607 = vector.extract_strided_slice %4 {offsets = [1, 0, 192], sizes = [1, 16, 4], strides = [1, 1, 1]} : vector<4x16x256xf32> to vector<1x16x4xf32>
    %608 = vector.shape_cast %607 : vector<1x16x4xf32> to vector<16x4xf32>
    %609 = vector.extract_strided_slice %4 {offsets = [2, 0, 192], sizes = [1, 16, 4], strides = [1, 1, 1]} : vector<4x16x256xf32> to vector<1x16x4xf32>
    %610 = vector.shape_cast %609 : vector<1x16x4xf32> to vector<16x4xf32>
    %611 = vector.extract_strided_slice %4 {offsets = [3, 0, 192], sizes = [1, 16, 4], strides = [1, 1, 1]} : vector<4x16x256xf32> to vector<1x16x4xf32>
    %612 = vector.shape_cast %611 : vector<1x16x4xf32> to vector<16x4xf32>
    %613 = tpu.concatenate %606, %608, %610, %612 in 1 : vector<16x4xf32>, vector<16x4xf32>, vector<16x4xf32>, vector<16x4xf32> -> vector<16x16xf32>
    %c48 = arith.constant 48 : index
    %c0_162 = arith.constant 0 : index
    %c0_163 = arith.constant 0 : index
    %614 = vector.load %arg1[%c48, %c0_162, %c0_163] : memref<64x4x16xf32, #tpu.memory_space<vmem>>, vector<1x4x16xf32>
    %615 = vector.shape_cast %614 : vector<1x4x16xf32> to vector<4x16xf32>
    %cst_164 = arith.constant dense<0.000000e+00> : vector<4x16xf32>
    %616 = tpu.matmul %615, %613, %cst_164 {dimension_numbers = #tpu.dot_dimension_numbers<[1], [0], [0], [1], [0, 0, 1, 1], [], []>} : vector<4x16xf32>, vector<16x16xf32>, vector<4x16xf32> -> vector<4x16xf32>
    %617 = vector.extract_strided_slice %4 {offsets = [0, 0, 196], sizes = [1, 16, 4], strides = [1, 1, 1]} : vector<4x16x256xf32> to vector<1x16x4xf32>
    %618 = vector.shape_cast %617 : vector<1x16x4xf32> to vector<16x4xf32>
    %619 = vector.extract_strided_slice %4 {offsets = [1, 0, 196], sizes = [1, 16, 4], strides = [1, 1, 1]} : vector<4x16x256xf32> to vector<1x16x4xf32>
    %620 = vector.shape_cast %619 : vector<1x16x4xf32> to vector<16x4xf32>
    %621 = vector.extract_strided_slice %4 {offsets = [2, 0, 196], sizes = [1, 16, 4], strides = [1, 1, 1]} : vector<4x16x256xf32> to vector<1x16x4xf32>
    %622 = vector.shape_cast %621 : vector<1x16x4xf32> to vector<16x4xf32>
    %623 = vector.extract_strided_slice %4 {offsets = [3, 0, 196], sizes = [1, 16, 4], strides = [1, 1, 1]} : vector<4x16x256xf32> to vector<1x16x4xf32>
    %624 = vector.shape_cast %623 : vector<1x16x4xf32> to vector<16x4xf32>
    %625 = tpu.concatenate %618, %620, %622, %624 in 1 : vector<16x4xf32>, vector<16x4xf32>, vector<16x4xf32>, vector<16x4xf32> -> vector<16x16xf32>
    %c49 = arith.constant 49 : index
    %c0_165 = arith.constant 0 : index
    %c0_166 = arith.constant 0 : index
    %626 = vector.load %arg1[%c49, %c0_165, %c0_166] : memref<64x4x16xf32, #tpu.memory_space<vmem>>, vector<1x4x16xf32>
    %627 = vector.shape_cast %626 : vector<1x4x16xf32> to vector<4x16xf32>
    %cst_167 = arith.constant dense<0.000000e+00> : vector<4x16xf32>
    %628 = tpu.matmul %627, %625, %cst_167 {dimension_numbers = #tpu.dot_dimension_numbers<[1], [0], [0], [1], [0, 0, 1, 1], [], []>} : vector<4x16xf32>, vector<16x16xf32>, vector<4x16xf32> -> vector<4x16xf32>
    %629 = vector.extract_strided_slice %4 {offsets = [0, 0, 200], sizes = [1, 16, 4], strides = [1, 1, 1]} : vector<4x16x256xf32> to vector<1x16x4xf32>
    %630 = vector.shape_cast %629 : vector<1x16x4xf32> to vector<16x4xf32>
    %631 = vector.extract_strided_slice %4 {offsets = [1, 0, 200], sizes = [1, 16, 4], strides = [1, 1, 1]} : vector<4x16x256xf32> to vector<1x16x4xf32>
    %632 = vector.shape_cast %631 : vector<1x16x4xf32> to vector<16x4xf32>
    %633 = vector.extract_strided_slice %4 {offsets = [2, 0, 200], sizes = [1, 16, 4], strides = [1, 1, 1]} : vector<4x16x256xf32> to vector<1x16x4xf32>
    %634 = vector.shape_cast %633 : vector<1x16x4xf32> to vector<16x4xf32>
    %635 = vector.extract_strided_slice %4 {offsets = [3, 0, 200], sizes = [1, 16, 4], strides = [1, 1, 1]} : vector<4x16x256xf32> to vector<1x16x4xf32>
    %636 = vector.shape_cast %635 : vector<1x16x4xf32> to vector<16x4xf32>
    %637 = tpu.concatenate %630, %632, %634, %636 in 1 : vector<16x4xf32>, vector<16x4xf32>, vector<16x4xf32>, vector<16x4xf32> -> vector<16x16xf32>
    %c50 = arith.constant 50 : index
    %c0_168 = arith.constant 0 : index
    %c0_169 = arith.constant 0 : index
    %638 = vector.load %arg1[%c50, %c0_168, %c0_169] : memref<64x4x16xf32, #tpu.memory_space<vmem>>, vector<1x4x16xf32>
    %639 = vector.shape_cast %638 : vector<1x4x16xf32> to vector<4x16xf32>
    %cst_170 = arith.constant dense<0.000000e+00> : vector<4x16xf32>
    %640 = tpu.matmul %639, %637, %cst_170 {dimension_numbers = #tpu.dot_dimension_numbers<[1], [0], [0], [1], [0, 0, 1, 1], [], []>} : vector<4x16xf32>, vector<16x16xf32>, vector<4x16xf32> -> vector<4x16xf32>
    %641 = vector.extract_strided_slice %4 {offsets = [0, 0, 204], sizes = [1, 16, 4], strides = [1, 1, 1]} : vector<4x16x256xf32> to vector<1x16x4xf32>
    %642 = vector.shape_cast %641 : vector<1x16x4xf32> to vector<16x4xf32>
    %643 = vector.extract_strided_slice %4 {offsets = [1, 0, 204], sizes = [1, 16, 4], strides = [1, 1, 1]} : vector<4x16x256xf32> to vector<1x16x4xf32>
    %644 = vector.shape_cast %643 : vector<1x16x4xf32> to vector<16x4xf32>
    %645 = vector.extract_strided_slice %4 {offsets = [2, 0, 204], sizes = [1, 16, 4], strides = [1, 1, 1]} : vector<4x16x256xf32> to vector<1x16x4xf32>
    %646 = vector.shape_cast %645 : vector<1x16x4xf32> to vector<16x4xf32>
    %647 = vector.extract_strided_slice %4 {offsets = [3, 0, 204], sizes = [1, 16, 4], strides = [1, 1, 1]} : vector<4x16x256xf32> to vector<1x16x4xf32>
    %648 = vector.shape_cast %647 : vector<1x16x4xf32> to vector<16x4xf32>
    %649 = tpu.concatenate %642, %644, %646, %648 in 1 : vector<16x4xf32>, vector<16x4xf32>, vector<16x4xf32>, vector<16x4xf32> -> vector<16x16xf32>
    %c51 = arith.constant 51 : index
    %c0_171 = arith.constant 0 : index
    %c0_172 = arith.constant 0 : index
    %650 = vector.load %arg1[%c51, %c0_171, %c0_172] : memref<64x4x16xf32, #tpu.memory_space<vmem>>, vector<1x4x16xf32>
    %651 = vector.shape_cast %650 : vector<1x4x16xf32> to vector<4x16xf32>
    %cst_173 = arith.constant dense<0.000000e+00> : vector<4x16xf32>
    %652 = tpu.matmul %651, %649, %cst_173 {dimension_numbers = #tpu.dot_dimension_numbers<[1], [0], [0], [1], [0, 0, 1, 1], [], []>} : vector<4x16xf32>, vector<16x16xf32>, vector<4x16xf32> -> vector<4x16xf32>
    %653 = vector.extract_strided_slice %4 {offsets = [0, 0, 208], sizes = [1, 16, 4], strides = [1, 1, 1]} : vector<4x16x256xf32> to vector<1x16x4xf32>
    %654 = vector.shape_cast %653 : vector<1x16x4xf32> to vector<16x4xf32>
    %655 = vector.extract_strided_slice %4 {offsets = [1, 0, 208], sizes = [1, 16, 4], strides = [1, 1, 1]} : vector<4x16x256xf32> to vector<1x16x4xf32>
    %656 = vector.shape_cast %655 : vector<1x16x4xf32> to vector<16x4xf32>
    %657 = vector.extract_strided_slice %4 {offsets = [2, 0, 208], sizes = [1, 16, 4], strides = [1, 1, 1]} : vector<4x16x256xf32> to vector<1x16x4xf32>
    %658 = vector.shape_cast %657 : vector<1x16x4xf32> to vector<16x4xf32>
    %659 = vector.extract_strided_slice %4 {offsets = [3, 0, 208], sizes = [1, 16, 4], strides = [1, 1, 1]} : vector<4x16x256xf32> to vector<1x16x4xf32>
    %660 = vector.shape_cast %659 : vector<1x16x4xf32> to vector<16x4xf32>
    %661 = tpu.concatenate %654, %656, %658, %660 in 1 : vector<16x4xf32>, vector<16x4xf32>, vector<16x4xf32>, vector<16x4xf32> -> vector<16x16xf32>
    %c52 = arith.constant 52 : index
    %c0_174 = arith.constant 0 : index
    %c0_175 = arith.constant 0 : index
    %662 = vector.load %arg1[%c52, %c0_174, %c0_175] : memref<64x4x16xf32, #tpu.memory_space<vmem>>, vector<1x4x16xf32>
    %663 = vector.shape_cast %662 : vector<1x4x16xf32> to vector<4x16xf32>
    %cst_176 = arith.constant dense<0.000000e+00> : vector<4x16xf32>
    %664 = tpu.matmul %663, %661, %cst_176 {dimension_numbers = #tpu.dot_dimension_numbers<[1], [0], [0], [1], [0, 0, 1, 1], [], []>} : vector<4x16xf32>, vector<16x16xf32>, vector<4x16xf32> -> vector<4x16xf32>
    %665 = vector.extract_strided_slice %4 {offsets = [0, 0, 212], sizes = [1, 16, 4], strides = [1, 1, 1]} : vector<4x16x256xf32> to vector<1x16x4xf32>
    %666 = vector.shape_cast %665 : vector<1x16x4xf32> to vector<16x4xf32>
    %667 = vector.extract_strided_slice %4 {offsets = [1, 0, 212], sizes = [1, 16, 4], strides = [1, 1, 1]} : vector<4x16x256xf32> to vector<1x16x4xf32>
    %668 = vector.shape_cast %667 : vector<1x16x4xf32> to vector<16x4xf32>
    %669 = vector.extract_strided_slice %4 {offsets = [2, 0, 212], sizes = [1, 16, 4], strides = [1, 1, 1]} : vector<4x16x256xf32> to vector<1x16x4xf32>
    %670 = vector.shape_cast %669 : vector<1x16x4xf32> to vector<16x4xf32>
    %671 = vector.extract_strided_slice %4 {offsets = [3, 0, 212], sizes = [1, 16, 4], strides = [1, 1, 1]} : vector<4x16x256xf32> to vector<1x16x4xf32>
    %672 = vector.shape_cast %671 : vector<1x16x4xf32> to vector<16x4xf32>
    %673 = tpu.concatenate %666, %668, %670, %672 in 1 : vector<16x4xf32>, vector<16x4xf32>, vector<16x4xf32>, vector<16x4xf32> -> vector<16x16xf32>
    %c53 = arith.constant 53 : index
    %c0_177 = arith.constant 0 : index
    %c0_178 = arith.constant 0 : index
    %674 = vector.load %arg1[%c53, %c0_177, %c0_178] : memref<64x4x16xf32, #tpu.memory_space<vmem>>, vector<1x4x16xf32>
    %675 = vector.shape_cast %674 : vector<1x4x16xf32> to vector<4x16xf32>
    %cst_179 = arith.constant dense<0.000000e+00> : vector<4x16xf32>
    %676 = tpu.matmul %675, %673, %cst_179 {dimension_numbers = #tpu.dot_dimension_numbers<[1], [0], [0], [1], [0, 0, 1, 1], [], []>} : vector<4x16xf32>, vector<16x16xf32>, vector<4x16xf32> -> vector<4x16xf32>
    %677 = vector.extract_strided_slice %4 {offsets = [0, 0, 216], sizes = [1, 16, 4], strides = [1, 1, 1]} : vector<4x16x256xf32> to vector<1x16x4xf32>
    %678 = vector.shape_cast %677 : vector<1x16x4xf32> to vector<16x4xf32>
    %679 = vector.extract_strided_slice %4 {offsets = [1, 0, 216], sizes = [1, 16, 4], strides = [1, 1, 1]} : vector<4x16x256xf32> to vector<1x16x4xf32>
    %680 = vector.shape_cast %679 : vector<1x16x4xf32> to vector<16x4xf32>
    %681 = vector.extract_strided_slice %4 {offsets = [2, 0, 216], sizes = [1, 16, 4], strides = [1, 1, 1]} : vector<4x16x256xf32> to vector<1x16x4xf32>
    %682 = vector.shape_cast %681 : vector<1x16x4xf32> to vector<16x4xf32>
    %683 = vector.extract_strided_slice %4 {offsets = [3, 0, 216], sizes = [1, 16, 4], strides = [1, 1, 1]} : vector<4x16x256xf32> to vector<1x16x4xf32>
    %684 = vector.shape_cast %683 : vector<1x16x4xf32> to vector<16x4xf32>
    %685 = tpu.concatenate %678, %680, %682, %684 in 1 : vector<16x4xf32>, vector<16x4xf32>, vector<16x4xf32>, vector<16x4xf32> -> vector<16x16xf32>
    %c54 = arith.constant 54 : index
    %c0_180 = arith.constant 0 : index
    %c0_181 = arith.constant 0 : index
    %686 = vector.load %arg1[%c54, %c0_180, %c0_181] : memref<64x4x16xf32, #tpu.memory_space<vmem>>, vector<1x4x16xf32>
    %687 = vector.shape_cast %686 : vector<1x4x16xf32> to vector<4x16xf32>
    %cst_182 = arith.constant dense<0.000000e+00> : vector<4x16xf32>
    %688 = tpu.matmul %687, %685, %cst_182 {dimension_numbers = #tpu.dot_dimension_numbers<[1], [0], [0], [1], [0, 0, 1, 1], [], []>} : vector<4x16xf32>, vector<16x16xf32>, vector<4x16xf32> -> vector<4x16xf32>
    %689 = vector.extract_strided_slice %4 {offsets = [0, 0, 220], sizes = [1, 16, 4], strides = [1, 1, 1]} : vector<4x16x256xf32> to vector<1x16x4xf32>
    %690 = vector.shape_cast %689 : vector<1x16x4xf32> to vector<16x4xf32>
    %691 = vector.extract_strided_slice %4 {offsets = [1, 0, 220], sizes = [1, 16, 4], strides = [1, 1, 1]} : vector<4x16x256xf32> to vector<1x16x4xf32>
    %692 = vector.shape_cast %691 : vector<1x16x4xf32> to vector<16x4xf32>
    %693 = vector.extract_strided_slice %4 {offsets = [2, 0, 220], sizes = [1, 16, 4], strides = [1, 1, 1]} : vector<4x16x256xf32> to vector<1x16x4xf32>
    %694 = vector.shape_cast %693 : vector<1x16x4xf32> to vector<16x4xf32>
    %695 = vector.extract_strided_slice %4 {offsets = [3, 0, 220], sizes = [1, 16, 4], strides = [1, 1, 1]} : vector<4x16x256xf32> to vector<1x16x4xf32>
    %696 = vector.shape_cast %695 : vector<1x16x4xf32> to vector<16x4xf32>
    %697 = tpu.concatenate %690, %692, %694, %696 in 1 : vector<16x4xf32>, vector<16x4xf32>, vector<16x4xf32>, vector<16x4xf32> -> vector<16x16xf32>
    %c55 = arith.constant 55 : index
    %c0_183 = arith.constant 0 : index
    %c0_184 = arith.constant 0 : index
    %698 = vector.load %arg1[%c55, %c0_183, %c0_184] : memref<64x4x16xf32, #tpu.memory_space<vmem>>, vector<1x4x16xf32>
    %699 = vector.shape_cast %698 : vector<1x4x16xf32> to vector<4x16xf32>
    %cst_185 = arith.constant dense<0.000000e+00> : vector<4x16xf32>
    %700 = tpu.matmul %699, %697, %cst_185 {dimension_numbers = #tpu.dot_dimension_numbers<[1], [0], [0], [1], [0, 0, 1, 1], [], []>} : vector<4x16xf32>, vector<16x16xf32>, vector<4x16xf32> -> vector<4x16xf32>
    %701 = tpu.concatenate %616, %628, %640, %652, %664, %676, %688, %700 in 1 : vector<4x16xf32>, vector<4x16xf32>, vector<4x16xf32>, vector<4x16xf32>, vector<4x16xf32>, vector<4x16xf32>, vector<4x16xf32>, vector<4x16xf32> -> vector<4x128xf32>
    %c0_186 = arith.constant 0 : index
    %c0_187 = arith.constant 0 : index
    %c768 = arith.constant 768 : index
    %702 = vector.load %arg4[%c0_186, %c0_187, %c768] : memref<1x4x1024xf32, #tpu.memory_space<vmem>>, vector<1x4x128xf32>
    %703 = vector.shape_cast %702 : vector<1x4x128xf32> to vector<4x128xf32>
    %704 = vector.shape_cast %701 : vector<4x128xf32> to vector<1x4x128xf32>
    tpu.vector_store %arg4[%c0_186, %c0_187, %c768], %704 {strides = array<i32>} : memref<1x4x1024xf32, #tpu.memory_space<vmem>>, vector<1x4x128xf32>,
    %705 = vector.extract_strided_slice %4 {offsets = [0, 0, 224], sizes = [1, 16, 4], strides = [1, 1, 1]} : vector<4x16x256xf32> to vector<1x16x4xf32>
    %706 = vector.shape_cast %705 : vector<1x16x4xf32> to vector<16x4xf32>
    %707 = vector.extract_strided_slice %4 {offsets = [1, 0, 224], sizes = [1, 16, 4], strides = [1, 1, 1]} : vector<4x16x256xf32> to vector<1x16x4xf32>
    %708 = vector.shape_cast %707 : vector<1x16x4xf32> to vector<16x4xf32>
    %709 = vector.extract_strided_slice %4 {offsets = [2, 0, 224], sizes = [1, 16, 4], strides = [1, 1, 1]} : vector<4x16x256xf32> to vector<1x16x4xf32>
    %710 = vector.shape_cast %709 : vector<1x16x4xf32> to vector<16x4xf32>
    %711 = vector.extract_strided_slice %4 {offsets = [3, 0, 224], sizes = [1, 16, 4], strides = [1, 1, 1]} : vector<4x16x256xf32> to vector<1x16x4xf32>
    %712 = vector.shape_cast %711 : vector<1x16x4xf32> to vector<16x4xf32>
    %713 = tpu.concatenate %706, %708, %710, %712 in 1 : vector<16x4xf32>, vector<16x4xf32>, vector<16x4xf32>, vector<16x4xf32> -> vector<16x16xf32>
    %c56 = arith.constant 56 : index
    %c0_188 = arith.constant 0 : index
    %c0_189 = arith.constant 0 : index
    %714 = vector.load %arg1[%c56, %c0_188, %c0_189] : memref<64x4x16xf32, #tpu.memory_space<vmem>>, vector<1x4x16xf32>
    %715 = vector.shape_cast %714 : vector<1x4x16xf32> to vector<4x16xf32>
    %cst_190 = arith.constant dense<0.000000e+00> : vector<4x16xf32>
    %716 = tpu.matmul %715, %713, %cst_190 {dimension_numbers = #tpu.dot_dimension_numbers<[1], [0], [0], [1], [0, 0, 1, 1], [], []>} : vector<4x16xf32>, vector<16x16xf32>, vector<4x16xf32> -> vector<4x16xf32>
    %717 = vector.extract_strided_slice %4 {offsets = [0, 0, 228], sizes = [1, 16, 4], strides = [1, 1, 1]} : vector<4x16x256xf32> to vector<1x16x4xf32>
    %718 = vector.shape_cast %717 : vector<1x16x4xf32> to vector<16x4xf32>
    %719 = vector.extract_strided_slice %4 {offsets = [1, 0, 228], sizes = [1, 16, 4], strides = [1, 1, 1]} : vector<4x16x256xf32> to vector<1x16x4xf32>
    %720 = vector.shape_cast %719 : vector<1x16x4xf32> to vector<16x4xf32>
    %721 = vector.extract_strided_slice %4 {offsets = [2, 0, 228], sizes = [1, 16, 4], strides = [1, 1, 1]} : vector<4x16x256xf32> to vector<1x16x4xf32>
    %722 = vector.shape_cast %721 : vector<1x16x4xf32> to vector<16x4xf32>
    %723 = vector.extract_strided_slice %4 {offsets = [3, 0, 228], sizes = [1, 16, 4], strides = [1, 1, 1]} : vector<4x16x256xf32> to vector<1x16x4xf32>
    %724 = vector.shape_cast %723 : vector<1x16x4xf32> to vector<16x4xf32>
    %725 = tpu.concatenate %718, %720, %722, %724 in 1 : vector<16x4xf32>, vector<16x4xf32>, vector<16x4xf32>, vector<16x4xf32> -> vector<16x16xf32>
    %c57 = arith.constant 57 : index
    %c0_191 = arith.constant 0 : index
    %c0_192 = arith.constant 0 : index
    %726 = vector.load %arg1[%c57, %c0_191, %c0_192] : memref<64x4x16xf32, #tpu.memory_space<vmem>>, vector<1x4x16xf32>
    %727 = vector.shape_cast %726 : vector<1x4x16xf32> to vector<4x16xf32>
    %cst_193 = arith.constant dense<0.000000e+00> : vector<4x16xf32>
    %728 = tpu.matmul %727, %725, %cst_193 {dimension_numbers = #tpu.dot_dimension_numbers<[1], [0], [0], [1], [0, 0, 1, 1], [], []>} : vector<4x16xf32>, vector<16x16xf32>, vector<4x16xf32> -> vector<4x16xf32>
    %729 = vector.extract_strided_slice %4 {offsets = [0, 0, 232], sizes = [1, 16, 4], strides = [1, 1, 1]} : vector<4x16x256xf32> to vector<1x16x4xf32>
    %730 = vector.shape_cast %729 : vector<1x16x4xf32> to vector<16x4xf32>
    %731 = vector.extract_strided_slice %4 {offsets = [1, 0, 232], sizes = [1, 16, 4], strides = [1, 1, 1]} : vector<4x16x256xf32> to vector<1x16x4xf32>
    %732 = vector.shape_cast %731 : vector<1x16x4xf32> to vector<16x4xf32>
    %733 = vector.extract_strided_slice %4 {offsets = [2, 0, 232], sizes = [1, 16, 4], strides = [1, 1, 1]} : vector<4x16x256xf32> to vector<1x16x4xf32>
    %734 = vector.shape_cast %733 : vector<1x16x4xf32> to vector<16x4xf32>
    %735 = vector.extract_strided_slice %4 {offsets = [3, 0, 232], sizes = [1, 16, 4], strides = [1, 1, 1]} : vector<4x16x256xf32> to vector<1x16x4xf32>
    %736 = vector.shape_cast %735 : vector<1x16x4xf32> to vector<16x4xf32>
    %737 = tpu.concatenate %730, %732, %734, %736 in 1 : vector<16x4xf32>, vector<16x4xf32>, vector<16x4xf32>, vector<16x4xf32> -> vector<16x16xf32>
    %c58 = arith.constant 58 : index
    %c0_194 = arith.constant 0 : index
    %c0_195 = arith.constant 0 : index
    %738 = vector.load %arg1[%c58, %c0_194, %c0_195] : memref<64x4x16xf32, #tpu.memory_space<vmem>>, vector<1x4x16xf32>
    %739 = vector.shape_cast %738 : vector<1x4x16xf32> to vector<4x16xf32>
    %cst_196 = arith.constant dense<0.000000e+00> : vector<4x16xf32>
    %740 = tpu.matmul %739, %737, %cst_196 {dimension_numbers = #tpu.dot_dimension_numbers<[1], [0], [0], [1], [0, 0, 1, 1], [], []>} : vector<4x16xf32>, vector<16x16xf32>, vector<4x16xf32> -> vector<4x16xf32>
    %741 = vector.extract_strided_slice %4 {offsets = [0, 0, 236], sizes = [1, 16, 4], strides = [1, 1, 1]} : vector<4x16x256xf32> to vector<1x16x4xf32>
    %742 = vector.shape_cast %741 : vector<1x16x4xf32> to vector<16x4xf32>
    %743 = vector.extract_strided_slice %4 {offsets = [1, 0, 236], sizes = [1, 16, 4], strides = [1, 1, 1]} : vector<4x16x256xf32> to vector<1x16x4xf32>
    %744 = vector.shape_cast %743 : vector<1x16x4xf32> to vector<16x4xf32>
    %745 = vector.extract_strided_slice %4 {offsets = [2, 0, 236], sizes = [1, 16, 4], strides = [1, 1, 1]} : vector<4x16x256xf32> to vector<1x16x4xf32>
    %746 = vector.shape_cast %745 : vector<1x16x4xf32> to vector<16x4xf32>
    %747 = vector.extract_strided_slice %4 {offsets = [3, 0, 236], sizes = [1, 16, 4], strides = [1, 1, 1]} : vector<4x16x256xf32> to vector<1x16x4xf32>
    %748 = vector.shape_cast %747 : vector<1x16x4xf32> to vector<16x4xf32>
    %749 = tpu.concatenate %742, %744, %746, %748 in 1 : vector<16x4xf32>, vector<16x4xf32>, vector<16x4xf32>, vector<16x4xf32> -> vector<16x16xf32>
    %c59 = arith.constant 59 : index
    %c0_197 = arith.constant 0 : index
    %c0_198 = arith.constant 0 : index
    %750 = vector.load %arg1[%c59, %c0_197, %c0_198] : memref<64x4x16xf32, #tpu.memory_space<vmem>>, vector<1x4x16xf32>
    %751 = vector.shape_cast %750 : vector<1x4x16xf32> to vector<4x16xf32>
    %cst_199 = arith.constant dense<0.000000e+00> : vector<4x16xf32>
    %752 = tpu.matmul %751, %749, %cst_199 {dimension_numbers = #tpu.dot_dimension_numbers<[1], [0], [0], [1], [0, 0, 1, 1], [], []>} : vector<4x16xf32>, vector<16x16xf32>, vector<4x16xf32> -> vector<4x16xf32>
    %753 = vector.extract_strided_slice %4 {offsets = [0, 0, 240], sizes = [1, 16, 4], strides = [1, 1, 1]} : vector<4x16x256xf32> to vector<1x16x4xf32>
    %754 = vector.shape_cast %753 : vector<1x16x4xf32> to vector<16x4xf32>
    %755 = vector.extract_strided_slice %4 {offsets = [1, 0, 240], sizes = [1, 16, 4], strides = [1, 1, 1]} : vector<4x16x256xf32> to vector<1x16x4xf32>
    %756 = vector.shape_cast %755 : vector<1x16x4xf32> to vector<16x4xf32>
    %757 = vector.extract_strided_slice %4 {offsets = [2, 0, 240], sizes = [1, 16, 4], strides = [1, 1, 1]} : vector<4x16x256xf32> to vector<1x16x4xf32>
    %758 = vector.shape_cast %757 : vector<1x16x4xf32> to vector<16x4xf32>
    %759 = vector.extract_strided_slice %4 {offsets = [3, 0, 240], sizes = [1, 16, 4], strides = [1, 1, 1]} : vector<4x16x256xf32> to vector<1x16x4xf32>
    %760 = vector.shape_cast %759 : vector<1x16x4xf32> to vector<16x4xf32>
    %761 = tpu.concatenate %754, %756, %758, %760 in 1 : vector<16x4xf32>, vector<16x4xf32>, vector<16x4xf32>, vector<16x4xf32> -> vector<16x16xf32>
    %c60 = arith.constant 60 : index
    %c0_200 = arith.constant 0 : index
    %c0_201 = arith.constant 0 : index
    %762 = vector.load %arg1[%c60, %c0_200, %c0_201] : memref<64x4x16xf32, #tpu.memory_space<vmem>>, vector<1x4x16xf32>
    %763 = vector.shape_cast %762 : vector<1x4x16xf32> to vector<4x16xf32>
    %cst_202 = arith.constant dense<0.000000e+00> : vector<4x16xf32>
    %764 = tpu.matmul %763, %761, %cst_202 {dimension_numbers = #tpu.dot_dimension_numbers<[1], [0], [0], [1], [0, 0, 1, 1], [], []>} : vector<4x16xf32>, vector<16x16xf32>, vector<4x16xf32> -> vector<4x16xf32>
    %765 = vector.extract_strided_slice %4 {offsets = [0, 0, 244], sizes = [1, 16, 4], strides = [1, 1, 1]} : vector<4x16x256xf32> to vector<1x16x4xf32>
    %766 = vector.shape_cast %765 : vector<1x16x4xf32> to vector<16x4xf32>
    %767 = vector.extract_strided_slice %4 {offsets = [1, 0, 244], sizes = [1, 16, 4], strides = [1, 1, 1]} : vector<4x16x256xf32> to vector<1x16x4xf32>
    %768 = vector.shape_cast %767 : vector<1x16x4xf32> to vector<16x4xf32>
    %769 = vector.extract_strided_slice %4 {offsets = [2, 0, 244], sizes = [1, 16, 4], strides = [1, 1, 1]} : vector<4x16x256xf32> to vector<1x16x4xf32>
    %770 = vector.shape_cast %769 : vector<1x16x4xf32> to vector<16x4xf32>
    %771 = vector.extract_strided_slice %4 {offsets = [3, 0, 244], sizes = [1, 16, 4], strides = [1, 1, 1]} : vector<4x16x256xf32> to vector<1x16x4xf32>
    %772 = vector.shape_cast %771 : vector<1x16x4xf32> to vector<16x4xf32>
    %773 = tpu.concatenate %766, %768, %770, %772 in 1 : vector<16x4xf32>, vector<16x4xf32>, vector<16x4xf32>, vector<16x4xf32> -> vector<16x16xf32>
    %c61 = arith.constant 61 : index
    %c0_203 = arith.constant 0 : index
    %c0_204 = arith.constant 0 : index
    %774 = vector.load %arg1[%c61, %c0_203, %c0_204] : memref<64x4x16xf32, #tpu.memory_space<vmem>>, vector<1x4x16xf32>
    %775 = vector.shape_cast %774 : vector<1x4x16xf32> to vector<4x16xf32>
    %cst_205 = arith.constant dense<0.000000e+00> : vector<4x16xf32>
    %776 = tpu.matmul %775, %773, %cst_205 {dimension_numbers = #tpu.dot_dimension_numbers<[1], [0], [0], [1], [0, 0, 1, 1], [], []>} : vector<4x16xf32>, vector<16x16xf32>, vector<4x16xf32> -> vector<4x16xf32>
    %777 = vector.extract_strided_slice %4 {offsets = [0, 0, 248], sizes = [1, 16, 4], strides = [1, 1, 1]} : vector<4x16x256xf32> to vector<1x16x4xf32>
    %778 = vector.shape_cast %777 : vector<1x16x4xf32> to vector<16x4xf32>
    %779 = vector.extract_strided_slice %4 {offsets = [1, 0, 248], sizes = [1, 16, 4], strides = [1, 1, 1]} : vector<4x16x256xf32> to vector<1x16x4xf32>
    %780 = vector.shape_cast %779 : vector<1x16x4xf32> to vector<16x4xf32>
    %781 = vector.extract_strided_slice %4 {offsets = [2, 0, 248], sizes = [1, 16, 4], strides = [1, 1, 1]} : vector<4x16x256xf32> to vector<1x16x4xf32>
    %782 = vector.shape_cast %781 : vector<1x16x4xf32> to vector<16x4xf32>
    %783 = vector.extract_strided_slice %4 {offsets = [3, 0, 248], sizes = [1, 16, 4], strides = [1, 1, 1]} : vector<4x16x256xf32> to vector<1x16x4xf32>
    %784 = vector.shape_cast %783 : vector<1x16x4xf32> to vector<16x4xf32>
    %785 = tpu.concatenate %778, %780, %782, %784 in 1 : vector<16x4xf32>, vector<16x4xf32>, vector<16x4xf32>, vector<16x4xf32> -> vector<16x16xf32>
    %c62 = arith.constant 62 : index
    %c0_206 = arith.constant 0 : index
    %c0_207 = arith.constant 0 : index
    %786 = vector.load %arg1[%c62, %c0_206, %c0_207] : memref<64x4x16xf32, #tpu.memory_space<vmem>>, vector<1x4x16xf32>
    %787 = vector.shape_cast %786 : vector<1x4x16xf32> to vector<4x16xf32>
    %cst_208 = arith.constant dense<0.000000e+00> : vector<4x16xf32>
    %788 = tpu.matmul %787, %785, %cst_208 {dimension_numbers = #tpu.dot_dimension_numbers<[1], [0], [0], [1], [0, 0, 1, 1], [], []>} : vector<4x16xf32>, vector<16x16xf32>, vector<4x16xf32> -> vector<4x16xf32>
    %789 = vector.extract_strided_slice %4 {offsets = [0, 0, 252], sizes = [1, 16, 4], strides = [1, 1, 1]} : vector<4x16x256xf32> to vector<1x16x4xf32>
    %790 = vector.shape_cast %789 : vector<1x16x4xf32> to vector<16x4xf32>
    %791 = vector.extract_strided_slice %4 {offsets = [1, 0, 252], sizes = [1, 16, 4], strides = [1, 1, 1]} : vector<4x16x256xf32> to vector<1x16x4xf32>
    %792 = vector.shape_cast %791 : vector<1x16x4xf32> to vector<16x4xf32>
    %793 = vector.extract_strided_slice %4 {offsets = [2, 0, 252], sizes = [1, 16, 4], strides = [1, 1, 1]} : vector<4x16x256xf32> to vector<1x16x4xf32>
    %794 = vector.shape_cast %793 : vector<1x16x4xf32> to vector<16x4xf32>
    %795 = vector.extract_strided_slice %4 {offsets = [3, 0, 252], sizes = [1, 16, 4], strides = [1, 1, 1]} : vector<4x16x256xf32> to vector<1x16x4xf32>
    %796 = vector.shape_cast %795 : vector<1x16x4xf32> to vector<16x4xf32>
    %797 = tpu.concatenate %790, %792, %794, %796 in 1 : vector<16x4xf32>, vector<16x4xf32>, vector<16x4xf32>, vector<16x4xf32> -> vector<16x16xf32>
    %c63 = arith.constant 63 : index
    %c0_209 = arith.constant 0 : index
    %c0_210 = arith.constant 0 : index
    %798 = vector.load %arg1[%c63, %c0_209, %c0_210] : memref<64x4x16xf32, #tpu.memory_space<vmem>>, vector<1x4x16xf32>
    %799 = vector.shape_cast %798 : vector<1x4x16xf32> to vector<4x16xf32>
    %cst_211 = arith.constant dense<0.000000e+00> : vector<4x16xf32>
    %800 = tpu.matmul %799, %797, %cst_211 {dimension_numbers = #tpu.dot_dimension_numbers<[1], [0], [0], [1], [0, 0, 1, 1], [], []>} : vector<4x16xf32>, vector<16x16xf32>, vector<4x16xf32> -> vector<4x16xf32>
    %801 = tpu.concatenate %716, %728, %740, %752, %764, %776, %788, %800 in 1 : vector<4x16xf32>, vector<4x16xf32>, vector<4x16xf32>, vector<4x16xf32>, vector<4x16xf32>, vector<4x16xf32>, vector<4x16xf32>, vector<4x16xf32> -> vector<4x128xf32>
    %c0_212 = arith.constant 0 : index
    %c0_213 = arith.constant 0 : index
    %c896 = arith.constant 896 : index
    %802 = vector.load %arg4[%c0_212, %c0_213, %c896] : memref<1x4x1024xf32, #tpu.memory_space<vmem>>, vector<1x4x128xf32>
    %803 = vector.shape_cast %802 : vector<1x4x128xf32> to vector<4x128xf32>
    %804 = vector.shape_cast %801 : vector<4x128xf32> to vector<1x4x128xf32>
    tpu.vector_store %arg4[%c0_212, %c0_213, %c896], %804 {strides = array<i32>} : memref<1x4x1024xf32, #tpu.memory_space<vmem>>, vector<1x4x128xf32>,
    return
  }
  func.func @transform_0(%arg0: i32) -> (i32, i32, i32) {
    %c0_i32 = arith.constant 0 : i32
    %c0_i32_0 = arith.constant 0 : i32
    %c0_i32_1 = arith.constant 0 : i32
    return %arg0, %c0_i32, %c0_i32_0 : i32, i32, i32
  }
  func.func @transform_1(%arg0: i32) -> (i32, i32, i32) {
    %c0_i32 = arith.constant 0 : i32
    %c0_i32_0 = arith.constant 0 : i32
    %c0_i32_1 = arith.constant 0 : i32
    return %arg0, %c0_i32, %c0_i32_0 : i32, i32, i32
  }
  func.func @transform_2(%arg0: i32) -> (i32, i32) {
    %c0_i32 = arith.constant 0 : i32
    %c0_i32_0 = arith.constant 0 : i32
    %c0_i32_1 = arith.constant 0 : i32
    return %c0_i32, %c0_i32_0 : i32, i32
  }
  func.func @transform_3(%arg0: i32) -> (i32, i32, i32) {
    %c0_i32 = arith.constant 0 : i32
    %c0_i32_0 = arith.constant 0 : i32
    %c0_i32_1 = arith.constant 0 : i32
    return %arg0, %c0_i32, %c0_i32_0 : i32, i32, i32
  }
}

</mosaic_0001>

<bundles_post_ra>
// kernel: roi_align_inner.1
= control target key start
LH: loop header
LB: loop body
LE: loop exit
PB: predicated region body
PF: predicated region fallthrough
CT: control target
= control target key end

     0   :  { %v10586_v3 = vmov 0.0   ;;  %vm30_vm0 = vcmask 261120   ;;  %s7965_s16 = smov 96   ;;  %s7966_s17 = smov 124   ;;  %vm7983_vm1 = vmmov 0   ;;  %vm192_vm2 = vcmask 31744   ;;  %s10582_s1 = inlined_call_operand.vmem [shape: f32[1,32,256], index: 1, kind: input, shape index: {}]   ;;  %s10583_s2 = inlined_call_operand.vmem [shape: f32[64,32], index: 2, kind: input, shape index: {}]   ;;  %s10584_s0 = inlined_call_operand.vmem [shape: f32[64,4,16], index: 0, kind: input, shape index: {}]   ;;  %s10585_s3 = inlined_call_operand.vmem [shape: f32[1,4,1024], index: 3, kind: output, shape index: {}]  }
   0x1   :  { %v29_v0 = vld [vmem:[%s10582_s1 + $0x38] sm:$0xff]  ;;  %v28_v1 = vld [vmem:[%s10582_s1 + $0x30] sm:$0xff]  ;;  %v27_v2 = vld [vmem:[%s10582_s1 + $0x28] sm:$0xff]  ;;  %119 = vmatprep.mubr.f32.mxu0 %v10586_v3  ;;  %7483 = vmatprep.subr.mxu1 %v10586_v3  ;;  %s7967_s18 = smov 92   ;;  %s7968_s19 = smov 120   ;;  %vm195_vm3 = vcmask 64512  }
   0x2   :  { %79 = vmatprep.subr.mxu0 %v29_v0  ;;  %v26_v4 = vld [vmem:[%s10582_s1 + $0x20] sm:$0xff]  ;;  %v25_v5 = vld [vmem:[%s10582_s1 + $0x18] sm:$0xff]  ;;  %v24_v6 = vld [vmem:[%s10582_s1 + $0x10] sm:$0xff]  ;;  %s7970_s20 = smov 116   ;;  %s7971_s21 = smov 84   ;;  %7487 = vmatprep.mubr.msk.f32.mxu1 %vm7983_vm1, %v10586_v3  ;;  %vm198_vm4 = vcmask 97280  }
   0x3   :  { %80 = vmatpush1.msra.mxu0 %v28_v1  ;;  %v23_v7 = vld [vmem:[%s10582_s1 + $0x8] sm:$0xff]  ;;  %v22_v8 = vld [vmem:[%s10582_s1] sm:$0xff]  ;;  %v16_v11 = vld [vmem:[%s10583_s2 + $0x10] sm:$0xff]  ;;  %s7972_s22 = smov 112   ;;  %s7973_s23 = smov 80   ;;  %vm202_vm5 = vcmask 130048  }
   0x4   :  { %81 = vmatprep.subr.mxu0 %v27_v2  ;;  %v14_v9 = vld [vmem:[%s10583_s2] sm:$0xff]  ;;  %v15_v10 = vld [vmem:[%s10583_s2 + $0x8] sm:$0xff]  ;;  %v17_v12 = vld [vmem:[%s10583_s2 + $0x18] sm:$0xff]  ;;  %s7974_s24 = smov 108   ;;  %s7975_s25 = smov 76   ;;  %vm1025_vm6 = vcmask 392192  }
   0x5   :  { %82 = vmatpush1.msra.mxu0 %v26_v4  ;;  %v18_v13 = vld [vmem:[%s10583_s2 + $0x20] sm:$0xff]  ;;  %v19_v14 = vld [vmem:[%s10583_s2 + $0x28] sm:$0xff]  ;;  %v20_v15 = vld [vmem:[%s10583_s2 + $0x30] sm:$0xff]  ;;  %s7976_s26 = smov 104   ;;  %s7977_s27 = smov 72   ;;  %vm1027_vm7 = vcmask 523264  }
   0x6   :  { %83 = vmatprep.subr.mxu0 %v25_v5  ;;  %v21_v16 = vld [vmem:[%s10583_s2 + $0x38] sm:$0xff]  ;;  %s7969_s2 = smov 88   ;;  %s7978_s28 = smov 100   ;;  %vm1029_vm8 = vcmask 654336   ;;  %vm1031_vm9 = vcmask 785408   ;;  %vm1033_vm10 = vcmask 916480  }
   0x7   :  { %84 = vmatpush1.msra.mxu0 %v24_v6  ;;  %s7979_s29 = smov 68   ;;  %s7980_s30 = smov 4  }
   0x8   :  { %85 = vmatprep.subr.mxu0 %v23_v7  ;;  %s7981_s4 = smov 8   ;;  %s7982_s1 = smov 12  }
   0x9   :  { %86 = vmatpush1.msra.mxu0 %v22_v8  ;;  %s7984_s5 = smov 64   ;;  %s7985_s6 = smov 60  }
   0xa   :  { %7156 = vmatmul.mubr.msk.f32.vlgmr.msra.gmra.mxu0 %vm30_vm0, %v14_v9  ;;  %7546 = vmatprep.subr.mxu0 %v10586_v3  ;;  %s7986_s7 = smov 56   ;;  %s10595_s8 = smov 52  }
   0xb   :  { %125 = vmatprep.mubr.f32.mxu0 %v10586_v3  ;;  %s7988_s9 = smov 48   ;;  %s10601_s10 = smov 44  }
   0xc   :  { %s10597_s11 = smov 40   ;;  %s10599_s14 = smov 36  }
   0xd   :  { %s7993_s13 = smov 28   ;;  %s7994_s15 = smov 24  }
   0xe   :  { %7157 = vmatmul.mubr.msk.f32.gmra.mxu0 %vm30_vm0, %v15_v10 }
   0xf   :  { %131 = vmatprep.mubr.f32.mxu0 %v10586_v3 }
  0x12   :  { %7158 = vmatmul.mubr.msk.f32.gmra.mxu0 %vm30_vm0, %v16_v11 }
  0x13   :  { %137 = vmatprep.mubr.f32.mxu0 %v10586_v3 }
  0x16   :  { %7159 = vmatmul.mubr.msk.f32.gmra.mxu0 %vm30_vm0, %v17_v12 }
  0x17   :  { %143 = vmatprep.mubr.f32.mxu0 %v10586_v3 }
  0x1a   :  { %7160 = vmatmul.mubr.msk.f32.gmra.mxu0 %vm30_vm0, %v18_v13 }
  0x1b   :  { %149 = vmatprep.mubr.f32.mxu0 %v10586_v3 }
  0x1e   :  { %7161 = vmatmul.mubr.msk.f32.gmra.mxu0 %vm30_vm0, %v19_v14 }
  0x1f   :  { %155 = vmatprep.mubr.f32.mxu0 %v10586_v3 }
  0x22   :  { %7162 = vmatmul.mubr.msk.f32.gmra.mxu0 %vm30_vm0, %v20_v15 }
  0x23   :  { %161 = vmatprep.mubr.f32.mxu0 %v10586_v3 }
  0x26   :  { %7163 = vmatmul.mubr.msk.f32.gmra.mxu0 %vm30_vm0, %v21_v16 }
  0x27   :  { %7550 = vmatprep.mubr.msk.f32.mxu0 %vm7983_vm1, %v10586_v3 }
  0xca   :  { %v8083_v17 = vpop.f32.mrf.mxu0 }
  0xcb   :  { %1036 = vrot.lane.b32.xlu1 %v8083_v17, %s7965_s16  ;;  %278 = vrot.lane.b32.xlu0 %v8083_v17, %s7966_s17 }
  0xcc   :  { %v8113_v18 = vpop.f32.mrf.mxu0 }
  0xcd   :  { %10603 = vst [vmem:[#allocation2_spill] sm:$0xff] %v8113_v18 }
  0xce   :  { %v8115_v19 = vpop.f32.mrf.mxu0 }
  0xcf   :  { %1141 = vrot.lane.b32.xlu1 %v8083_v17, %s7967_s18  ;;  %377 = vrot.lane.b32.xlu0 %v8083_v17, %s7968_s19 }
  0xd0   :  { %v8149_v20 = vpop.f32.mrf.mxu0 }
  0xd1   :  { %10604 = vst [vmem:[#allocation3_spill] sm:$0xff] %v8149_v20 }
  0xd2   :  { %v8151_v21 = vpop.f32.mrf.mxu0 }
  0xd3   :  { %1246 = vrot.lane.b32.xlu1 %v8083_v17, %s7969_s2  ;;  %476 = vrot.lane.b32.xlu0 %v8083_v17, %s7970_s20 }
  0xd4   :  { %v8181_v22 = vpop.f32.mrf.mxu0 }
  0xd5   :  { %10605 = vst [vmem:[#allocation4_spill] sm:$0xff] %v8181_v22 }
  0xd6   :  { %v8183_v23 = vpop.f32.mrf.mxu0 }
  0xd7   :  { %1351 = vrot.lane.b32.xlu1 %v8083_v17, %s7971_s21  ;;  %575 = vrot.lane.b32.xlu0 %v8083_v17, %s7972_s22 }
  0xd8   :  { %v8209_v24 = vpop.f32.mrf.mxu0 }
  0xd9   :  { %10606 = vst [vmem:[#allocation5_spill] sm:$0xff] %v8209_v24 }
  0xda   :  { %v8215_v25 = vpop.f32.mrf.mxu0 }
  0xdb   :  { %1456 = vrot.lane.b32.xlu1 %v8083_v17, %s7973_s23  ;;  %680 = vrot.lane.b32.xlu0 %v8083_v17, %s7974_s24 }
  0xdc   :  { %v8281_v42 = vpop.f32.mrf.mxu0 }
  0xdd   :  { %10617 = vst [vmem:[#allocation16_spill] sm:$0xff] %v8281_v42 }
  0xde   :  { %v8287_v45 = vpop.f32.mrf.mxu0 }
  0xdf   :  { %1561 = vrot.lane.b32.xlu1 %v8083_v17, %s7975_s25  ;;  %785 = vrot.lane.b32.xlu0 %v8083_v17, %s7976_s26 }
  0xe0   :  { %v8341_v58 = vpop.f32.mrf.mxu0 }
  0xe1   :  { %10624 = vst [vmem:[#allocation23_spill] sm:$0xff] %v8341_v58 }
  0xe2   :  { %v8347_v61 = vpop.f32.mrf.mxu0 }
  0xe3   :  { %1666 = vrot.lane.b32.xlu1 %v8083_v17, %s7977_s27  ;;  %890 = vrot.lane.b32.xlu0 %v8083_v17, %s7978_s28 }
  0xe4   :  { %v8405_v11 = vpop.f32.mrf.mxu0 }
  0xe5   :  { %10632 = vst [vmem:[#allocation31_spill] sm:$0xff] %v8405_v11 }
  0xe6   :  { %v8411_v14 = vpop.f32.mrf.mxu0 }
  0xe7   :  { %1771 = vrot.lane.b32.xlu1 %v8083_v17, %s7979_s29  ;;  %1038 = vrot.lane.b32.xlu0 %v8115_v19, %s7965_s16 }
  0xeb   :  { %1143 = vrot.lane.b32.xlu0 %v8115_v19, %s7967_s18  ;;  %280 = vrot.lane.b32.xlu1 %v8115_v19, %s7966_s17 }
  0xef   :  { %1248 = vrot.lane.b32.xlu0 %v8115_v19, %s7969_s2  ;;  %379 = vrot.lane.b32.xlu1 %v8115_v19, %s7968_s19 }
  0xf3   :  { %1353 = vrot.lane.b32.xlu0 %v8115_v19, %s7971_s21  ;;  %478 = vrot.lane.b32.xlu1 %v8115_v19, %s7970_s20 }
  0xf7   :  { %1458 = vrot.lane.b32.xlu0 %v8115_v19, %s7973_s23  ;;  %577 = vrot.lane.b32.xlu1 %v8115_v19, %s7972_s22 }
  0xfb   :  { %1563 = vrot.lane.b32.xlu0 %v8115_v19, %s7975_s25  ;;  %682 = vrot.lane.b32.xlu1 %v8115_v19, %s7974_s24 }
  0xff   :  { %1668 = vrot.lane.b32.xlu0 %v8115_v19, %s7977_s27  ;;  %787 = vrot.lane.b32.xlu1 %v8115_v19, %s7976_s26 }
 0x103   :  { %1773 = vrot.lane.b32.xlu0 %v8115_v19, %s7979_s29  ;;  %892 = vrot.lane.b32.xlu1 %v8115_v19, %s7978_s28 }
 0x107   :  { %1042 = vrot.lane.b32.xlu1 %v8151_v21, %s7978_s28  ;;  %170 = vrot.lane.b32.xlu0 %v8151_v21, %s7980_s30 }
 0x10b   :  { %1147 = vrot.lane.b32.xlu1 %v8151_v21, %s7965_s16  ;;  %383 = vrot.lane.b32.xlu0 %v8151_v21, %s7966_s17 }
 0x10f   :  { %1252 = vrot.lane.b32.xlu1 %v8151_v21, %s7967_s18  ;;  %482 = vrot.lane.b32.xlu0 %v8151_v21, %s7968_s19 }
 0x113   :  { %1357 = vrot.lane.b32.xlu1 %v8151_v21, %s7969_s2  ;;  %581 = vrot.lane.b32.xlu0 %v8151_v21, %s7970_s20 }
 0x117   :  { %1462 = vrot.lane.b32.xlu1 %v8151_v21, %s7971_s21  ;;  %686 = vrot.lane.b32.xlu0 %v8151_v21, %s7972_s22 }
 0x11b   :  { %1567 = vrot.lane.b32.xlu1 %v8151_v21, %s7973_s23  ;;  %791 = vrot.lane.b32.xlu0 %v8151_v21, %s7974_s24 }
 0x11f   :  { %1672 = vrot.lane.b32.xlu1 %v8151_v21, %s7975_s25  ;;  %896 = vrot.lane.b32.xlu0 %v8151_v21, %s7976_s26 }
 0x123   :  { %1777 = vrot.lane.b32.xlu1 %v8151_v21, %s7977_s27  ;;  %172 = vrot.lane.b32.xlu0 %v8183_v23, %s7980_s30 }
 0x127   :  { %385 = vrot.lane.b32.xlu1 %v8183_v23, %s7966_s17  ;;  %1044 = vrot.lane.b32.xlu0 %v8183_v23, %s7978_s28 }
 0x12b   :  { %484 = vrot.lane.b32.xlu1 %v8183_v23, %s7968_s19  ;;  %1149 = vrot.lane.b32.xlu0 %v8183_v23, %s7965_s16 }
 0x12f   :  { %583 = vrot.lane.b32.xlu1 %v8183_v23, %s7970_s20  ;;  %1254 = vrot.lane.b32.xlu0 %v8183_v23, %s7967_s18 }
 0x133   :  { %688 = vrot.lane.b32.xlu1 %v8183_v23, %s7972_s22  ;;  %1359 = vrot.lane.b32.xlu0 %v8183_v23, %s7969_s2 }
 0x137   :  { %793 = vrot.lane.b32.xlu1 %v8183_v23, %s7974_s24  ;;  %1464 = vrot.lane.b32.xlu0 %v8183_v23, %s7971_s21 }
 0x13b   :  { %898 = vrot.lane.b32.xlu1 %v8183_v23, %s7976_s26  ;;  %1569 = vrot.lane.b32.xlu0 %v8183_v23, %s7973_s23 }
 0x13d   :  { %v8217_v26 = vpop.permute.xlu1 %1036  ;;  %v8219_v27 = vpop.permute.xlu0 %278 }
 0x13e   :  { %10607 = vst [vmem:[#allocation6_spill] sm:$0xff] %v8217_v26 }
 0x13f   :  { %1674 = vrot.lane.b32.xlu0 %v8183_v23, %s7975_s25  ;;  %178 = vrot.lane.b32.xlu1 %v8215_v25, %s7981_s4 }
 0x141   :  { %v8225_v28 = vpop.permute.xlu1 %1141  ;;  %v8227_v29 = vpop.permute.xlu0 %377 }
 0x143   :  { %1779 = vrot.lane.b32.xlu0 %v8183_v23, %s7977_s27  ;;  %1048 = vrot.lane.b32.xlu1 %v8215_v25, %s7976_s26 }
 0x145   :  { %v8233_v30 = vpop.permute.xlu1 %1246  ;;  %v8235_v31 = vpop.permute.xlu0 %476 }
 0x146   :  { %10608 = vst [vmem:[#allocation7_spill] sm:$0xff] %v8233_v30 }
 0x147   :  { %284 = vrot.lane.b32.xlu0 %v8215_v25, %s7980_s30  ;;  %1153 = vrot.lane.b32.xlu1 %v8215_v25, %s7978_s28 }
 0x149   :  { %v8241_v32 = vpop.permute.xlu1 %1351  ;;  %v8243_v33 = vpop.permute.xlu0 %575 }
 0x14b   :  { %488 = vrot.lane.b32.xlu0 %v8215_v25, %s7966_s17  ;;  %1258 = vrot.lane.b32.xlu1 %v8215_v25, %s7965_s16 }
 0x14d   :  { %v8249_v34 = vpop.permute.xlu1 %1456  ;;  %v8251_v35 = vpop.permute.xlu0 %680 }
 0x14e   :  { %10609 = vst [vmem:[#allocation8_spill] sm:$0xff] %v8249_v34  ;;  %10610 = vst [vmem:[#allocation9_spill] sm:$0xff] %v8251_v35 }
 0x14f   :  { %587 = vrot.lane.b32.xlu0 %v8215_v25, %s7968_s19  ;;  %1363 = vrot.lane.b32.xlu1 %v8215_v25, %s7967_s18 }
 0x151   :  { %v8257_v36 = vpop.permute.xlu1 %1561  ;;  %v8259_v37 = vpop.permute.xlu0 %785 }
 0x152   :  { %10611 = vst [vmem:[#allocation10_spill] sm:$0xff] %v8257_v36  ;;  %10612 = vst [vmem:[#allocation11_spill] sm:$0xff] %v8259_v37 }
 0x153   :  { %692 = vrot.lane.b32.xlu0 %v8215_v25, %s7970_s20  ;;  %1468 = vrot.lane.b32.xlu1 %v8215_v25, %s7969_s2 }
 0x155   :  { %v8265_v38 = vpop.permute.xlu1 %1666  ;;  %v8267_v39 = vpop.permute.xlu0 %890 }
 0x156   :  { %10613 = vst [vmem:[#allocation12_spill] sm:$0xff] %v8265_v38  ;;  %10614 = vst [vmem:[#allocation13_spill] sm:$0xff] %v8267_v39 }
 0x157   :  { %797 = vrot.lane.b32.xlu0 %v8215_v25, %s7972_s22  ;;  %1573 = vrot.lane.b32.xlu1 %v8215_v25, %s7971_s21 }
 0x159   :  { %v8273_v40 = vpop.permute.xlu1 %1771  ;;  %v8275_v41 = vpop.permute.xlu0 %1038 }
 0x15a   :  { %10615 = vst [vmem:[#allocation14_spill] sm:$0xff] %v8273_v40  ;;  %10616 = vst [vmem:[#allocation15_spill] sm:$0xff] %v8275_v41 }
 0x15b   :  { %902 = vrot.lane.b32.xlu0 %v8215_v25, %s7974_s24  ;;  %1678 = vrot.lane.b32.xlu1 %v8215_v25, %s7973_s23 }
 0x15d   :  { %v8283_v43 = vpop.permute.xlu0 %1143  ;;  %v8285_v44 = vpop.permute.xlu1 %280 }
 0x15f   :  { %1050 = vrot.lane.b32.xlu0 %v8287_v45, %s7976_s26  ;;  %180 = vrot.lane.b32.xlu1 %v8287_v45, %s7981_s4 }
 0x161   :  { %v8293_v46 = vpop.permute.xlu0 %1248  ;;  %v8295_v47 = vpop.permute.xlu1 %379 }
 0x162   :  { %10618 = vst [vmem:[#allocation17_spill] sm:$0xff] %v8293_v46 }
 0x163   :  { %1155 = vrot.lane.b32.xlu0 %v8287_v45, %s7978_s28  ;;  %286 = vrot.lane.b32.xlu1 %v8287_v45, %s7980_s30 }
 0x165   :  { %v8301_v48 = vpop.permute.xlu0 %1353  ;;  %v8303_v49 = vpop.permute.xlu1 %478 }
 0x167   :  { %1260 = vrot.lane.b32.xlu0 %v8287_v45, %s7965_s16  ;;  %490 = vrot.lane.b32.xlu1 %v8287_v45, %s7966_s17 }
 0x169   :  { %v8309_v50 = vpop.permute.xlu0 %1458  ;;  %v8311_v51 = vpop.permute.xlu1 %577 }
 0x16a   :  { %10619 = vst [vmem:[#allocation18_spill] sm:$0xff] %v8309_v50 }
 0x16b   :  { %1365 = vrot.lane.b32.xlu0 %v8287_v45, %s7967_s18  ;;  %589 = vrot.lane.b32.xlu1 %v8287_v45, %s7968_s19 }
 0x16d   :  { %v8317_v52 = vpop.permute.xlu0 %1563  ;;  %v8319_v53 = vpop.permute.xlu1 %682 }
 0x16f   :  { %1470 = vrot.lane.b32.xlu0 %v8287_v45, %s7969_s2  ;;  %694 = vrot.lane.b32.xlu1 %v8287_v45, %s7970_s20 }
 0x171   :  { %v8325_v54 = vpop.permute.xlu0 %1668  ;;  %v8327_v55 = vpop.permute.xlu1 %787 }
 0x172   :  { %10620 = vst [vmem:[#allocation19_spill] sm:$0xff] %v8325_v54  ;;  %10621 = vst [vmem:[#allocation20_spill] sm:$0xff] %v8327_v55 }
 0x173   :  { %1575 = vrot.lane.b32.xlu0 %v8287_v45, %s7971_s21  ;;  %799 = vrot.lane.b32.xlu1 %v8287_v45, %s7972_s22 }
 0x175   :  { %v8333_v56 = vpop.permute.xlu0 %1773  ;;  %v8335_v57 = vpop.permute.xlu1 %892 }
 0x176   :  { %10622 = vst [vmem:[#allocation21_spill] sm:$0xff] %v8333_v56  ;;  %10623 = vst [vmem:[#allocation22_spill] sm:$0xff] %v8335_v57 }
 0x177   :  { %1680 = vrot.lane.b32.xlu0 %v8287_v45, %s7973_s23  ;;  %904 = vrot.lane.b32.xlu1 %v8287_v45, %s7974_s24 }
 0x179   :  { %v8343_v59 = vpop.permute.xlu1 %1042  ;;  %v8345_v60 = vpop.permute.xlu0 %170 }
 0x17a   :  { %10625 = vst [vmem:[#allocation24_spill] sm:$0xff] %v8343_v59 }
 0x17b   :  { %1054 = vrot.lane.b32.xlu1 %v8347_v61, %s7974_s24  ;;  %186 = vrot.lane.b32.xlu0 %v8347_v61, %s7982_s1 }
 0x17d   :  { %v8353_v62 = vpop.permute.xlu1 %1147  ;;  %v8355_v63 = vpop.permute.xlu0 %383 }
 0x17f   :  { %1159 = vrot.lane.b32.xlu1 %v8347_v61, %s7976_s26  ;;  %290 = vrot.lane.b32.xlu0 %v8347_v61, %s7981_s4 }
 0x181   :  { %v8361_v0 = vpop.permute.xlu1 %1252  ;;  %v8363_v1 = vpop.permute.xlu0 %482 }
 0x182   :  { %10626 = vst [vmem:[#allocation25_spill] sm:$0xff] %v8361_v0 }
 0x183   :  { %1264 = vrot.lane.b32.xlu1 %v8347_v61, %s7978_s28  ;;  %389 = vrot.lane.b32.xlu0 %v8347_v61, %s7980_s30 }
 0x185   :  { %v8369_v2 = vpop.permute.xlu1 %1357  ;;  %v8371_v4 = vpop.permute.xlu0 %581 }
 0x187   :  { %1369 = vrot.lane.b32.xlu1 %v8347_v61, %s7965_s16  ;;  %593 = vrot.lane.b32.xlu0 %v8347_v61, %s7966_s17 }
 0x189   :  { %v8377_v5 = vpop.permute.xlu1 %1462  ;;  %v8379_v6 = vpop.permute.xlu0 %686 }
 0x18a   :  { %10627 = vst [vmem:[#allocation26_spill] sm:$0xff] %v8377_v5 }
 0x18b   :  { %1474 = vrot.lane.b32.xlu1 %v8347_v61, %s7967_s18  ;;  %698 = vrot.lane.b32.xlu0 %v8347_v61, %s7968_s19 }
 0x18d   :  { %v8385_v7 = vpop.permute.xlu1 %1567  ;;  %v8387_v8 = vpop.permute.xlu0 %791 }
 0x18e   :  { %10628 = vst [vmem:[#allocation27_spill] sm:$0xff] %v8385_v7  ;;  %10629 = vst [vmem:[#allocation28_spill] sm:$0xff] %v8387_v8  ;;  %v193_v7 = vsel %vm192_vm2, %v8083_v17, %v8345_v60 }
 0x18f   :  { %1579 = vrot.lane.b32.xlu1 %v8347_v61, %s7969_s2  ;;  %803 = vrot.lane.b32.xlu0 %v8347_v61, %s7970_s20 }
 0x191   :  { %v8397_v9 = vpop.permute.xlu1 %1672  ;;  %v8399_v10 = vpop.permute.xlu0 %896 }
 0x192   :  { %10630 = vst [vmem:[#allocation29_spill] sm:$0xff] %v8397_v9  ;;  %10631 = vst [vmem:[#allocation30_spill] sm:$0xff] %v8399_v10 }
 0x193   :  { %1684 = vrot.lane.b32.xlu1 %v8347_v61, %s7971_s21  ;;  %908 = vrot.lane.b32.xlu0 %v8347_v61, %s7972_s22 }
 0x195   :  { %v8407_v12 = vpop.permute.xlu1 %1777  ;;  %v8409_v13 = vpop.permute.xlu0 %172 }
 0x196   :  { %10633 = vst [vmem:[#allocation32_spill] sm:$0xff] %v8407_v12 }
 0x197   :  { %1056 = vrot.lane.b32.xlu0 %v8411_v14, %s7974_s24  ;;  %188 = vrot.lane.b32.xlu1 %v8411_v14, %s7982_s1 }
 0x199   :  { %v8417_v15 = vpop.permute.xlu1 %385  ;;  %v8419_v16 = vpop.permute.xlu0 %1044 }
 0x19a   :  { %10634 = vst [vmem:[#allocation33_spill] sm:$0xff] %v8419_v16 }
 0x19b   :  { %1161 = vrot.lane.b32.xlu0 %v8411_v14, %s7976_s26  ;;  %292 = vrot.lane.b32.xlu1 %v8411_v14, %s7981_s4 }
 0x19d   :  { %v8425_v3 = vpop.permute.xlu1 %484  ;;  %v8427_v20 = vpop.permute.xlu0 %1149 }
 0x19f   :  { %1266 = vrot.lane.b32.xlu0 %v8411_v14, %s7978_s28  ;;  %391 = vrot.lane.b32.xlu1 %v8411_v14, %s7980_s30 }
 0x1a1   :  { %v8433_v18 = vpop.permute.xlu1 %583  ;;  %v8435_v11 = vpop.permute.xlu0 %1254 }
 0x1a2   :  { %10635 = vst [vmem:[#allocation34_spill] sm:$0xff] %v8435_v11 }
 0x1a3   :  { %1371 = vrot.lane.b32.xlu0 %v8411_v14, %s7965_s16  ;;  %595 = vrot.lane.b32.xlu1 %v8411_v14, %s7966_s17 }
 0x1a5   :  { %v8441_v58 = vpop.permute.xlu1 %688  ;;  %v8443_v42 = vpop.permute.xlu0 %1359 }
 0x1a7   :  { %1476 = vrot.lane.b32.xlu0 %v8411_v14, %s7967_s18  ;;  %700 = vrot.lane.b32.xlu1 %v8411_v14, %s7968_s19 }
 0x1a9   :  { %v8449_v24 = vpop.permute.xlu1 %793  ;;  %v8451_v22 = vpop.permute.xlu0 %1464 }
 0x1aa   :  { %10636 = vst [vmem:[#allocation35_spill] sm:$0xff] %v8449_v24  ;;  %10637 = vst [vmem:[#allocation36_spill] sm:$0xff] %v8451_v22 }
 0x1ab   :  { %1581 = vrot.lane.b32.xlu0 %v8411_v14, %s7969_s2  ;;  %805 = vrot.lane.b32.xlu1 %v8411_v14, %s7970_s20 }
 0x1ad   :  { %v8457_v38 = vpop.permute.xlu1 %898  ;;  %v8459_v9 = vpop.permute.xlu0 %1569 }
 0x1ae   :  { %10638 = vst [vmem:[#allocation37_spill] sm:$0xff] %v8457_v38 }
 0x1af   :  { %1686 = vrot.lane.b32.xlu0 %v8411_v14, %s7971_s21  ;;  %910 = vrot.lane.b32.xlu1 %v8411_v14, %s7972_s22 }
 0x1b1   :  { %v8465_v54 = vpop.permute.xlu0 %1674  ;;  %v8467_v34 = vpop.permute.xlu1 %178 }
 0x1b2   :  { %10639 = vst [vmem:[#allocation38_spill] sm:$0xff] %v8465_v54 }
 0x1b3   :  { %1785 = vrot.lane.b32.xlu0 %v8287_v45, %s7975_s25  ;;  %1783 = vrot.lane.b32.xlu1 %v8215_v25, %s7975_s25 }
 0x1b5   :  { %v8473_v5 = vpop.permute.xlu0 %1779  ;;  %v8475_v50 = vpop.permute.xlu1 %1048 }
 0x1b6   :  { %10640 = vst [vmem:[#allocation39_spill] sm:$0xff] %v8473_v5  ;;  %10641 = vst [vmem:[#allocation40_spill] sm:$0xff] %v8475_v50 }
 0x1b7   :  { %1791 = vrot.lane.b32.xlu0 %v8411_v14, %s7973_s23  ;;  %1789 = vrot.lane.b32.xlu1 %v8347_v61, %s7973_s23 }
 0x1b9   :  { %v8481_v22 = vpop.permute.xlu0 %284  ;;  %v8483_v54 = vpop.permute.xlu1 %1153 }
 0x1bb   :  { %1912 = vrot.lane.b32.xlu0 %v8083_v17, %s7984_s5  ;;  %1914 = vrot.lane.b32.xlu1 %v8115_v19, %s7984_s5 }
 0x1bd   :  { %v8489_v30 = vpop.permute.xlu0 %488  ;;  %v8491_v0 = vpop.permute.xlu1 %1258 }
 0x1be   :  { %10642 = vst [vmem:[#allocation41_spill] sm:$0xff] %v8491_v0 }
 0x1bf   :  { %1918 = vrot.lane.b32.xlu0 %v8151_v21, %s7979_s29  ;;  %1920 = vrot.lane.b32.xlu1 %v8183_v23, %s7979_s29 }
 0x1c1   :  { %v8497_v46 = vpop.permute.xlu0 %587  ;;  %v8499_v11 = vpop.permute.xlu1 %1363 }
 0x1c3   :  { %1924 = vrot.lane.b32.xlu0 %v8215_v25, %s7977_s27  ;;  %1926 = vrot.lane.b32.xlu1 %v8287_v45, %s7977_s27 }
 0x1c5   :  { %v8505_v50 = vpop.permute.xlu0 %692  ;;  %v8507_v40 = vpop.permute.xlu1 %1468 }
 0x1c6   :  { %10643 = vst [vmem:[#allocation42_spill] sm:$0xff] %v8505_v50  ;;  %10644 = vst [vmem:[#allocation43_spill] sm:$0xff] %v8507_v40 }
 0x1c7   :  { %1930 = vrot.lane.b32.xlu0 %v8347_v61, %s7975_s25  ;;  %1932 = vrot.lane.b32.xlu1 %v8411_v14, %s7975_s25 }
 0x1c9   :  { %v8513_v0 = vpop.permute.xlu0 %797  ;;  %v8515_v12 = vpop.permute.xlu1 %1573 }
 0x1ca   :  { %10645 = vst [vmem:[#allocation44_spill] sm:$0xff] %v8513_v0  ;;  %10646 = vst [vmem:[#allocation45_spill] sm:$0xff] %v8515_v12 }
 0x1cb   :  { %2017 = vrot.lane.b32.xlu0 %v8083_v17, %s7985_s6  ;;  %2019 = vrot.lane.b32.xlu1 %v8115_v19, %s7985_s6 }
 0x1cd   :  { %v8521_v26 = vpop.permute.xlu0 %902  ;;  %v8523_v40 = vpop.permute.xlu1 %1678 }
 0x1ce   :  { %10647 = vst [vmem:[#allocation46_spill] sm:$0xff] %v8521_v26  ;;  %10648 = vst [vmem:[#allocation47_spill] sm:$0xff] %v8523_v40 }
 0x1cf   :  { %2023 = vrot.lane.b32.xlu0 %v8151_v21, %s7984_s5  ;;  %2025 = vrot.lane.b32.xlu1 %v8183_v23, %s7984_s5 }
 0x1d1   :  { %v8529_v59 = vpop.permute.xlu0 %1050  ;;  %v181_v41 = vpop.permute.xlu1 %180 }
 0x1d2   :  { %10649 = vst [vmem:[#allocation48_spill] sm:$0xff] %v8529_v59 }
 0x1d3   :  { %2029 = vrot.lane.b32.xlu0 %v8215_v25, %s7979_s29  ;;  %2031 = vrot.lane.b32.xlu1 %v8287_v45, %s7979_s29 }
 0x1d5   :  { %v8535_v16 = vpop.permute.xlu0 %1155  ;;  %v8537_v26 = vpop.permute.xlu1 %286 }
 0x1d7   :  { %2035 = vrot.lane.b32.xlu0 %v8347_v61, %s7977_s27  ;;  %2037 = vrot.lane.b32.xlu1 %v8411_v14, %s7977_s27 }
 0x1d9   :  { %v8543_v40 = vpop.permute.xlu0 %1260  ;;  %v8545_v59 = vpop.permute.xlu1 %490 }
 0x1da   :  { %10650 = vst [vmem:[#allocation49_spill] sm:$0xff] %v8543_v40 }
 0x1db   :  { %2122 = vrot.lane.b32.xlu0 %v8083_v17, %s7986_s7  ;;  %2124 = vrot.lane.b32.xlu1 %v8115_v19, %s7986_s7 }
 0x1dd   :  { %v8551_v56 = vpop.permute.xlu0 %1365  ;;  %v8553_v5 = vpop.permute.xlu1 %589 }
 0x1df   :  { %2128 = vrot.lane.b32.xlu0 %v8151_v21, %s7985_s6  ;;  %2130 = vrot.lane.b32.xlu1 %v8183_v23, %s7985_s6 }
 0x1e1   :  { %v8559_v40 = vpop.permute.xlu0 %1470  ;;  %v8561_v39 = vpop.permute.xlu1 %694 }
 0x1e2   :  { %10651 = vst [vmem:[#allocation50_spill] sm:$0xff] %v8559_v40 }
 0x1e3   :  { %2134 = vrot.lane.b32.xlu0 %v8215_v25, %s7984_s5  ;;  %2136 = vrot.lane.b32.xlu1 %v8287_v45, %s7984_s5 }
 0x1e5   :  { %v8567_v10 = vpop.permute.xlu0 %1575  ;;  %v8569_v57 = vpop.permute.xlu1 %799 }
 0x1e6   :  { %10652 = vst [vmem:[#allocation51_spill] sm:$0xff] %v8569_v57 }
 0x1e7   :  { %2140 = vrot.lane.b32.xlu0 %v8347_v61, %s7979_s29  ;;  %2142 = vrot.lane.b32.xlu1 %v8411_v14, %s7979_s29 }
 0x1e9   :  { %v8575_v38 = vpop.permute.xlu0 %1680  ;;  %v8577_v40 = vpop.permute.xlu1 %904 }
 0x1ea   :  { %10653 = vst [vmem:[#allocation52_spill] sm:$0xff] %v8575_v38  ;;  %10654 = vst [vmem:[#allocation53_spill] sm:$0xff] %v8577_v40 }
 0x1eb   :  { %2227 = vrot.lane.b32.xlu0 %v8083_v17, %s10595_s8  ;;  %2229 = vrot.lane.b32.xlu1 %v8115_v19, %s10595_s8 }
 0x1ed   :  { %v8583_v0 = vpop.permute.xlu1 %1054  ;;  %v187_v37 = vpop.permute.xlu0 %186 }
 0x1ee   :  { %10655 = vst [vmem:[#allocation54_spill] sm:$0xff] %v8583_v0 }
 0x1ef   :  { %2233 = vrot.lane.b32.xlu0 %v8151_v21, %s7986_s7  ;;  %2235 = vrot.lane.b32.xlu1 %v8183_v23, %s7986_s7 }
 0x1f1   :  { %v1160_v8 = vpop.permute.xlu1 %1159  ;;  %v8589_v38 = vpop.permute.xlu0 %290 }
 0x1f3   :  { %2239 = vrot.lane.b32.xlu0 %v8215_v25, %s7985_s6  ;;  %2241 = vrot.lane.b32.xlu1 %v8287_v45, %s7985_s6 }
 0x1f5   :  { %v8595_v40 = vpop.permute.xlu1 %1264  ;;  %v8597_v57 = vpop.permute.xlu0 %389 }
 0x1f6   :  { %10656 = vst [vmem:[#allocation55_spill] sm:$0xff] %v8595_v40 }
 0x1f7   :  { %2245 = vrot.lane.b32.xlu0 %v8347_v61, %s7984_s5  ;;  %2247 = vrot.lane.b32.xlu1 %v8411_v14, %s7984_s5 }
 0x1f9   :  { %v8603_v0 = vpop.permute.xlu1 %1369  ;;  %v8605_v55 = vpop.permute.xlu0 %593 }
 0x1fb   :  { %2332 = vrot.lane.b32.xlu0 %v8083_v17, %s7988_s9  ;;  %2334 = vrot.lane.b32.xlu1 %v8115_v19, %s7988_s9 }
 0x1fd   :  { %v8611_v40 = vpop.permute.xlu1 %1474  ;;  %v8613_v24 = vpop.permute.xlu0 %698 }
 0x1fe   :  { %10657 = vst [vmem:[#allocation56_spill] sm:$0xff] %v8611_v40  ;;  %10658 = vst [vmem:[#allocation57_spill] sm:$0xff] %v8613_v24 }
 0x1ff   :  { %2338 = vrot.lane.b32.xlu0 %v8151_v21, %s10595_s8  ;;  %2340 = vrot.lane.b32.xlu1 %v8183_v23, %s10595_s8 }
 0x201   :  { %v8619_v12 = vpop.permute.xlu1 %1579  ;;  %v8621_v50 = vpop.permute.xlu0 %803 }
 0x202   :  { %10659 = vst [vmem:[#allocation58_spill] sm:$0xff] %v8619_v12  ;;  %10660 = vst [vmem:[#allocation59_spill] sm:$0xff] %v8621_v50  ;;  %v194_v50 = vsel %vm192_vm2, %v8115_v19, %v8409_v13 }
 0x203   :  { %2344 = vrot.lane.b32.xlu0 %v8215_v25, %s7986_s7  ;;  %2346 = vrot.lane.b32.xlu1 %v8287_v45, %s7986_s7  ;;  %v197_v12 = vsel %vm195_vm3, %v194_v50, %v181_v41  ;;  %v1166_v41 = vsel %vm192_vm2, %v8283_v43, %v8427_v20  ;;  %v196_v50 = vsel %vm195_vm3, %v193_v7, %v8467_v34  ;;  %v201_v34 = vld [vmem:[%s10584_s0] sm:$0xf]  ;;  %v7165_v7 = vld [vmem:[%s10584_s0 + $0x4] sm:$0xf] }
 0x204   :  { %v1168_v60 = vsel %vm195_vm3, %v1166_v41, %v8535_v16  ;;  %v495_v16 = vsel %vm192_vm2, %v8303_v49, %v8425_v3  ;;  %v7167_v3 = vld [vmem:[%s10584_s0 + $0x8] sm:$0xf]  ;;  %v494_v49 = vsel %vm192_vm2, %v8235_v31, %v8363_v1 }
 0x205   :  { %v8627_v36 = vpop.permute.xlu1 %1684  ;;  %v8629_v40 = vpop.permute.xlu0 %908 }
 0x206   :  { %10661 = vst [vmem:[#allocation60_spill] sm:$0xff] %v8627_v36  ;;  %10662 = vst [vmem:[#allocation61_spill] sm:$0xff] %v8629_v40 }
 0x207   :  { %2350 = vrot.lane.b32.xlu0 %v8347_v61, %s7985_s6  ;;  %2352 = vrot.lane.b32.xlu1 %v8411_v14, %s7985_s6 }
 0x209   :  { %v8639_v24 = vpop.permute.xlu0 %1056  ;;  %v189_v36 = vpop.permute.xlu1 %188 }
 0x20a   :  { %10663 = vst [vmem:[#allocation62_spill] sm:$0xff] %v8639_v24  ;;  %v200_v40 = vsel %vm198_vm4, %v197_v12, %v189_v36  ;;  %v297_v36 = vsel %vm192_vm2, %v8285_v44, %v8183_v23  ;;  %v10664_v12 = vmov 0.0   ;;  %v199_v24 = vsel %vm198_vm4, %v196_v50, %v187_v37 }
 0x20b   :  { %2437 = vrot.lane.b32.xlu0 %v8083_v17, %s10601_s10  ;;  %2439 = vrot.lane.b32.xlu1 %v8115_v19, %s10601_s10  ;;  %v299_v20 = vsel %vm195_vm3, %v297_v36, %v8537_v26  ;;  %v496_v50 = vsel %vm195_vm3, %v494_v49, %v8489_v30  ;;  %v1375_v30 = vsel %vm192_vm2, %v8241_v32, %v8369_v2  ;;  %v7169_v32 = vld [vmem:[%s10584_s0 + $0xc] sm:$0xf] }
 0x20c   :  { %7484 = vmatpush3.msra.mxu1 %v200_v40  ;;  %v1165_v40 = vsel %vm192_vm2, %v8225_v28, %v8353_v62  ;;  %v296_v28 = vsel %vm192_vm2, %v8219_v27, %v8151_v21  ;;  %v1377_v36 = vsel %vm195_vm3, %v1375_v30, %v8499_v11  ;;  %v600_v11 = vsel %vm192_vm2, %v8311_v51, %v8433_v18 }
 0x20d   :  { %7485 = vmatprep.subr.mxu1 %v10664_v12  ;;  %v1162_v13 = vpop.permute.xlu0 %1161  ;;  %v293_v35 = vpop.permute.xlu1 %292  ;;  %v1167_v26 = vsel %vm195_vm3, %v1165_v40, %v8483_v54  ;;  %v298_v54 = vsel %vm195_vm3, %v296_v28, %v8481_v22  ;;  %v395_v22 = vsel %vm192_vm2, %v8227_v29, %v8355_v63  ;;  %v1376_v29 = vsel %vm192_vm2, %v8301_v48, %v8443_v42  ;;  %v10667_v28 = vld [vmem:[#allocation10_spill] sm:$0xff] }
 0x20e   :  { %v1170_v43 = vsel %vm198_vm4, %v1168_v60, %v1162_v13  ;;  %7486 = vmatpush3.msra.mxu1 %v199_v24  ;;  %v301_v44 = vsel %vm198_vm4, %v299_v20, %v293_v35  ;;  %v396_v24 = vsel %vm192_vm2, %v8295_v47, %v8417_v15  ;;  %v1169_v35 = vsel %vm198_vm4, %v1167_v26, %v1160_v8  ;;  %v10666_v26 = vld [vmem:[#allocation27_spill] sm:$0xff] }
 0x20f   :  { %7490 = vmatprep.subr.mxu1 %v10664_v12  ;;  %2443 = vrot.lane.b32.xlu0 %v8151_v21, %s7988_s9  ;;  %v300_v62 = vsel %vm198_vm4, %v298_v54, %v8589_v38  ;;  %v398_v27 = vsel %vm195_vm3, %v396_v24, %v8287_v45  ;;  %v497_v63 = vsel %vm195_vm3, %v495_v16, %v8545_v59  ;;  %v7181_v59 = vld [vmem:[%s10584_s0 + $0x24] sm:$0xf]  ;;  %v10673_v16 = vld [vmem:[#allocation20_spill] sm:$0xff] }
 0x210   :  { %7547 = vmatpush3.msra.mxu0 %v1170_v43  ;;  %2445 = vrot.lane.b32.xlu1 %v8183_v23, %s7988_s9  ;;  %v397_v41 = vsel %vm195_vm3, %v395_v22, %v8215_v25  ;;  %v1378_v42 = vsel %vm195_vm3, %v1376_v29, %v8551_v56  ;;  %v499_v1 = vsel %vm198_vm4, %v497_v63, %v8411_v14  ;;  %v10671_v22 = vld [vmem:[#allocation58_spill] sm:$0xff] }
 0x211   :  { %7488 = vmatmul.mubr.msk.f32.vlgmr.msra.gmra.mxu1 %vm202_vm5, %v201_v34  ;;  %7548 = vmatprep.subr.mxu0 %v10664_v12  ;;  %v8687_v37 = vpop.permute.xlu0 %1266  ;;  %v392_v47 = vpop.permute.xlu1 %391  ;;  %v399_v48 = vsel %vm198_vm4, %v397_v41, %v8597_v57  ;;  %v498_v60 = vsel %vm198_vm4, %v496_v50, %v8347_v61  ;;  %v1379_v13 = vsel %vm198_vm4, %v1377_v36, %v8603_v0  ;;  %v7175_v36 = vld [vmem:[%s10584_s0 + $0x18] sm:$0xf] }
 0x212   :  { %7491 = vmatpush3.msra.mxu1 %v301_v44  ;;  %7549 = vmatpush3.msra.mxu0 %v1169_v35  ;;  %v400_v8 = vsel %vm198_vm4, %v398_v27, %v392_v47  ;;  %v602_v0 = vsel %vm195_vm3, %v600_v11, %v8553_v5  ;;  %v599_v43 = vsel %vm192_vm2, %v8243_v33, %v8371_v4  ;;  %v10668_v47 = vld [vmem:[#allocation42_spill] sm:$0xff]  ;;  %v10670_v27 = vld [vmem:[#allocation57_spill] sm:$0xff] }
 0x213   :  { %7492 = vmatprep.subr.mxu1 %v10664_v12  ;;  %7494 = vmatprep.mubr.msk.f32.mxu1 %vm7983_vm1, %v10664_v12  ;;  %v601_v18 = vsel %vm195_vm3, %v599_v43, %v8497_v46  ;;  %v1586_v33 = vsel %vm192_vm2, %v8317_v52, %v8459_v9  ;;  %v7171_v46 = vld [vmem:[%s10584_s0 + $0x10] sm:$0xf]  ;;  %v705_v40 = vsel %vm192_vm2, %v8319_v53, %v8441_v58  ;;  %v7185_v52 = vld [vmem:[%s10584_s0 + $0x2c] sm:$0xf]  ;;  %v10665_v53 = vld [vmem:[#allocation9_spill] sm:$0xff] }
 0x214   :  { %7493 = vmatpush3.msra.mxu1 %v300_v62  ;;  %2449 = vrot.lane.b32.xlu0 %v8215_v25, %s10595_s8  ;;  %v603_v4 = vsel %vm198_vm4, %v601_v18, %v8605_v55  ;;  %v1588_v44 = vsel %vm195_vm3, %v1586_v33, %v8567_v10  ;;  %v707_v55 = vsel %vm195_vm3, %v705_v40, %v8561_v39  ;;  %v10681_v11 = vld [vmem:[#allocation53_spill] sm:$0xff]  ;;  %v10682_v43 = vld [vmem:[#allocation30_spill] sm:$0xff] }
 0x215   :  { %7497 = vmatprep.subr.mxu1 %v10664_v12  ;;  %2451 = vrot.lane.b32.xlu1 %v8287_v45, %s10595_s8  ;;  %v1372_v38 = vpop.permute.xlu0 %1371  ;;  %v596_v15 = vpop.permute.xlu1 %595  ;;  %v704_v58 = vsel %vm192_vm2, %v10665_v53, %v8379_v6  ;;  %v1585_v35 = vsel %vm192_vm2, %v10667_v28, %v10666_v26  ;;  %v10669_v6 = vld [vmem:[#allocation45_spill] sm:$0xff] }
 0x216   :  { %7495 = vmatmul.mubr.msk.f32.vlgmr.msra.gmra.mxu1 %vm202_vm5, %v7165_v7  ;;  %7560 = vmatprep.subr.mxu0 %v10664_v12  ;;  %v1380_v31 = vsel %vm198_vm4, %v1378_v42, %v1372_v38  ;;  %v604_v34 = vsel %vm198_vm4, %v602_v0, %v596_v15  ;;  %v706_v54 = vsel %vm195_vm3, %v704_v58, %v10668_v47  ;;  %v7173_v38 = vld [vmem:[%s10584_s0 + $0x14] sm:$0xf]  ;;  %v10672_v15 = vld [vmem:[#allocation35_spill] sm:$0xff]  ;;  %v10687_v53 = vld [vmem:[#allocation33_spill] sm:$0xff] }
 0x217   :  { %7498 = vmatpush3.msra.mxu1 %v400_v8  ;;  %7501 = vmatprep.mubr.msk.f32.mxu1 %vm7983_vm1, %v10664_v12  ;;  %v1587_v62 = vsel %vm195_vm3, %v1585_v35, %v10669_v6  ;;  %v708_v7 = vsel %vm198_vm4, %v706_v54, %v10670_v27  ;;  %v810_v29 = vsel %vm192_vm2, %v10673_v16, %v10672_v15  ;;  %v10675_v42 = vld [vmem:[#allocation28_spill] sm:$0xff]  ;;  %v10688_v58 = vld [vmem:[#allocation15_spill] sm:$0xff]  ;;  %v10689_v26 = vld [vmem:[#allocation61_spill] sm:$0xff] }
 0x218   :  { %7499 = vmatprep.subr.mxu1 %v10664_v12  ;;  %2455 = vrot.lane.b32.xlu0 %v8347_v61, %s7986_s7  ;;  %v1589_v8 = vsel %vm198_vm4, %v1587_v62, %v10671_v22  ;;  %v7189_v47 = vld [vmem:[%s10584_s0 + $0x34] sm:$0xf]  ;;  %v10692_v27 = vld [vmem:[#allocation6_spill] sm:$0xff] }
 0x219   :  { %7500 = vmatpush3.msra.mxu1 %v399_v48  ;;  %2457 = vrot.lane.b32.xlu1 %v8411_v14, %s7986_s7  ;;  %v8745_v56 = vpop.permute.xlu0 %1476  ;;  %v701_v57 = vpop.permute.xlu1 %700  ;;  %v10676_v48 = vld [vmem:[#allocation11_spill] sm:$0xff]  ;;  %v10690_v54 = vld [vmem:[#allocation48_spill] sm:$0xff]  ;;  %v10693_v22 = vld [vmem:[#allocation62_spill] sm:$0xff] }
 0x21a   :  { %7504 = vmatprep.subr.mxu1 %v10664_v12  ;;  %7502 = vmatmul.mubr.msk.f32.vlgmr.msra.gmra.mxu1 %vm202_vm5, %v7167_v3  ;;  %v709_v10 = vsel %vm198_vm4, %v707_v55, %v701_v57  ;;  %v10674_v3 = vld [vmem:[#allocation51_spill] sm:$0xff]  ;;  %v7177_v55 = vld [vmem:[%s10584_s0 + $0x1c] sm:$0xf]  ;;  %v10695_v15 = vld [vmem:[#allocation14_spill] sm:$0xff] }
 0x21b   :  { %7505 = vmatpush3.msra.mxu1 %v499_v1  ;;  %7551 = vmatmul.mubr.msk.f32.vlgmr.msra.gmra.mxu0 %vm202_vm5, %v7181_v59  ;;  %v812_v49 = vsel %vm195_vm3, %v810_v29, %v10674_v3  ;;  %v809_v59 = vsel %vm192_vm2, %v10676_v48, %v10675_v42  ;;  %v10678_v1 = vld [vmem:[#allocation59_spill] sm:$0xff]  ;;  %v10696_v29 = vld [vmem:[#allocation40_spill] sm:$0xff]  ;;  %v10697_v42 = vld [vmem:[#allocation54_spill] sm:$0xff] }
 0x21c   :  { %7561 = vmatpush3.msra.mxu0 %v1380_v31  ;;  %7506 = vmatprep.subr.mxu1 %v10664_v12  ;;  %v10677_v31 = vld [vmem:[#allocation44_spill] sm:$0xff] }
 0x21d   :  { %7562 = vmatprep.subr.mxu0 %v10664_v12  ;;  %7507 = vmatpush3.msra.mxu1 %v498_v60  ;;  %v1582_v2 = vpop.permute.xlu0 %1581  ;;  %v806_v20 = vpop.permute.xlu1 %805  ;;  %v811_v57 = vsel %vm195_vm3, %v809_v59, %v10677_v31  ;;  %v7179_v31 = vld [vmem:[%s10584_s0 + $0x20] sm:$0xf] }
 0x21e   :  { %7563 = vmatpush3.msra.mxu0 %v1379_v13  ;;  %7508 = vmatprep.mubr.msk.f32.mxu1 %vm7983_vm1, %v10664_v12  ;;  %v1590_v9 = vsel %vm198_vm4, %v1588_v44, %v1582_v2  ;;  %v814_v50 = vsel %vm198_vm4, %v812_v49, %v806_v20  ;;  %v813_v30 = vsel %vm198_vm4, %v811_v57, %v10678_v1  ;;  %v10680_v2 = vld [vmem:[#allocation22_spill] sm:$0xff]  ;;  %v10699_v1 = vld [vmem:[#allocation17_spill] sm:$0xff] }
 0x21f   :  { %7511 = vmatprep.subr.mxu1 %v10664_v12  ;;  %2542 = vrot.lane.b32.xlu0 %v8083_v17, %s10597_s11  ;;  %v10686_v44 = vld [vmem:[#allocation46_spill] sm:$0xff] }
 0x220   :  { %2544 = vrot.lane.b32.xlu1 %v8115_v19, %s10597_s11  ;;  %7509 = vmatmul.mubr.msk.f32.vlgmr.msra.gmra.mxu1 %vm202_vm5, %v7169_v32  ;;  %v10679_v32 = vld [vmem:[#allocation37_spill] sm:$0xff]  ;;  %v10698_v57 = vld [vmem:[#allocation34_spill] sm:$0xff] }
 0x221   :  { %7512 = vmatpush3.msra.mxu1 %v604_v34  ;;  %7515 = vmatprep.mubr.msk.f32.mxu1 %vm7983_vm1, %v10664_v12  ;;  %v8787_v51 = vpop.permute.xlu0 %1686  ;;  %v911_v5 = vpop.permute.xlu1 %910  ;;  %v915_v20 = vsel %vm192_vm2, %v10680_v2, %v10679_v32  ;;  %v10683_v34 = vld [vmem:[#allocation13_spill] sm:$0xff] }
 0x222   :  { %7513 = vmatprep.subr.mxu1 %v10664_v12  ;;  %7564 = vmatprep.mubr.msk.f32.mxu0 %vm7983_vm1, %v10664_v12  ;;  %v917_v0 = vsel %vm195_vm3, %v915_v20, %v10681_v11  ;;  %v914_v18 = vsel %vm192_vm2, %v10683_v34, %v10682_v43  ;;  %v10701_v2 = vld [vmem:[#allocation25_spill] sm:$0xff]  ;;  %v10702_v20 = vld [vmem:[#allocation7_spill] sm:$0xff] }
 0x223   :  { %7514 = vmatpush3.msra.mxu1 %v603_v4  ;;  %7574 = vmatprep.subr.mxu0 %v10664_v12  ;;  %v919_v33 = vsel %vm198_vm4, %v917_v0, %v911_v5  ;;  %v10684_v4 = vld [vmem:[#allocation39_spill] sm:$0xff]  ;;  %v1270_v11 = vsel %vm192_vm2, %v10702_v20, %v10701_v2  ;;  %v7193_v43 = vld [vmem:[%s10584_s0 + $0x3c] sm:$0xf] }
 0x224   :  { %7518 = vmatprep.subr.mxu1 %v10664_v12  ;;  %2548 = vrot.lane.b32.xlu0 %v8151_v21, %s10601_s10  ;;  %v10703_v34 = vld [vmem:[#allocation41_spill] sm:$0xff] }
 0x225   :  { %2550 = vrot.lane.b32.xlu1 %v8183_v23, %s10601_s10  ;;  %7516 = vmatmul.mubr.msk.f32.vlgmr.msra.gmra.mxu1 %vm202_vm5, %v7171_v46  ;;  %v1786_v24 = vpop.permute.xlu0 %1785  ;;  %v8822_v39 = vpop.permute.xlu1 %1783  ;;  %v10685_v46 = vld [vmem:[#allocation21_spill] sm:$0xff] }
 0x226   :  { %7519 = vmatpush3.msra.mxu1 %v709_v10  ;;  %7565 = vmatmul.mubr.msk.f32.vlgmr.msra.gmra.mxu0 %vm202_vm5, %v7185_v52  ;;  %v1796_v40 = vsel %vm192_vm2, %v10685_v46, %v10684_v4  ;;  %v916_v52 = vsel %vm195_vm3, %v914_v18, %v10686_v44  ;;  %v1061_v10 = vsel %vm192_vm2, %v10688_v58, %v10687_v53  ;;  %v10705_v46 = vld [vmem:[#allocation36_spill] sm:$0xff]  ;;  %v10707_v53 = vld [vmem:[#allocation50_spill] sm:$0xff] }
 0x227   :  { %7575 = vmatpush3.msra.mxu0 %v1590_v9  ;;  %7520 = vmatprep.subr.mxu1 %v10664_v12  ;;  %v918_v28 = vsel %vm198_vm4, %v916_v52, %v10689_v26  ;;  %v1798_v35 = vsel %vm195_vm3, %v1796_v40, %v1786_v24  ;;  %v1063_v6 = vsel %vm195_vm3, %v1061_v10, %v10690_v54  ;;  %v10691_v24 = vld [vmem:[#allocation24_spill] sm:$0xff]  ;;  %v10706_v40 = vld [vmem:[#allocation18_spill] sm:$0xff] }
 0x228   :  { %7576 = vmatprep.subr.mxu0 %v10664_v12  ;;  %7521 = vmatpush3.msra.mxu1 %v708_v7  ;;  %v1060_v7 = vsel %vm192_vm2, %v10692_v27, %v10691_v24  ;;  %v1272_v18 = vsel %vm195_vm3, %v1270_v11, %v10703_v34  ;;  %v1481_v44 = vsel %vm192_vm2, %v10706_v40, %v10705_v46  ;;  %v10708_v10 = vld [vmem:[#allocation26_spill] sm:$0xff]  ;;  %v10709_v26 = vld [vmem:[#allocation8_spill] sm:$0xff] }
 0x229   :  { %7577 = vmatpush3.msra.mxu0 %v1589_v8  ;;  %7522 = vmatprep.mubr.msk.f32.mxu1 %vm7983_vm1, %v10664_v12  ;;  %v1792_v63 = vpop.permute.xlu0 %1791  ;;  %v1790_v41 = vpop.permute.xlu1 %1789  ;;  %v1065_v8 = vsel %vm198_vm4, %v1063_v6, %v10693_v22  ;;  %v1483_v58 = vsel %vm195_vm3, %v1481_v44, %v10707_v53  ;;  %v10711_v6 = vld [vmem:[#allocation56_spill] sm:$0xff]  ;;  %v10713_v22 = vld [vmem:[#allocation19_spill] sm:$0xff] }
 0x22a   :  { %7525 = vmatprep.subr.mxu1 %v10664_v12  ;;  %2554 = vrot.lane.b32.xlu0 %v8215_v25, %s7988_s9  ;;  %v1800_v62 = vsel %vm198_vm4, %v1798_v35, %v1792_v63  ;;  %v1062_v63 = vsel %vm195_vm3, %v1060_v7, %v10696_v29  ;;  %v1485_v35 = vsel %vm198_vm4, %v1483_v58, %v8745_v56  ;;  %v7187_v56 = vld [vmem:[%s10584_s0 + $0x30] sm:$0xf]  ;;  %v10712_v7 = vld [vmem:[#allocation38_spill] sm:$0xff] }
 0x22b   :  { %2556 = vrot.lane.b32.xlu1 %v8287_v45, %s7988_s9  ;;  %7523 = vmatmul.mubr.msk.f32.vlgmr.msra.gmra.mxu1 %vm202_vm5, %v7173_v38  ;;  %v10694_v38 = vld [vmem:[#allocation32_spill] sm:$0xff]  ;;  %v1064_v48 = vsel %vm198_vm4, %v1062_v63, %v10697_v42 }
 0x22c   :  { %7526 = vmatpush3.msra.mxu1 %v814_v50  ;;  %7529 = vmatprep.mubr.msk.f32.mxu1 %vm7983_vm1, %v10664_v12  ;;  %v1795_v16 = vsel %vm192_vm2, %v10695_v15, %v10694_v38  ;;  %v10714_v38 = vld [vmem:[#allocation52_spill] sm:$0xff] }
 0x22d   :  { %7527 = vmatprep.subr.mxu1 %v10664_v12  ;;  %7578 = vmatprep.mubr.msk.f32.mxu0 %vm7983_vm1, %v10664_v12  ;;  %v8870_v60 = vpop.permute.xlu0 %1912  ;;  %v8872_v13 = vpop.permute.xlu1 %1914  ;;  %v1797_v59 = vsel %vm195_vm3, %v1795_v16, %v8822_v39  ;;  %v10700_v39 = vld [vmem:[#allocation49_spill] sm:$0xff]  ;;  %v10716_v29 = vld [vmem:[#allocation12_spill] sm:$0xff] }
 0x22e   :  { %7528 = vmatpush3.msra.mxu1 %v813_v30  ;;  %2560 = vrot.lane.b32.xlu0 %v8347_v61, %s10595_s8  ;;  %v1799_v50 = vsel %vm198_vm4, %v1797_v59, %v1790_v41  ;;  %v1271_v30 = vsel %vm192_vm2, %v10699_v1, %v10698_v57  ;;  %v10715_v16 = vld [vmem:[#allocation29_spill] sm:$0xff]  ;;  %v10717_v59 = vld [vmem:[#allocation47_spill] sm:$0xff]  ;;  %v10718_v57 = vld [vmem:[#allocation60_spill] sm:$0xff] }
 0x22f   :  { %7532 = vmatprep.subr.mxu1 %v10664_v12  ;;  %2562 = vrot.lane.b32.xlu1 %v8411_v14, %s10595_s8  ;;  %v1690_v63 = vsel %vm192_vm2, %v10716_v29, %v10715_v16  ;;  %s7992_s8 = smov 32   ;;  %v7201_v16 = vld [vmem:[%s10584_s0 + $0x4c] sm:$0xf] }
 0x230   :  { %7530 = vmatmul.mubr.msk.f32.vlgmr.msra.gmra.mxu1 %vm202_vm5, %v7175_v36  ;;  %7588 = vmatprep.subr.mxu0 %v10664_v12  ;;  %v1273_v36 = vsel %vm195_vm3, %v1271_v30, %v10700_v39 }
 0x231   :  { %7533 = vmatpush3.msra.mxu1 %v919_v33  ;;  %7536 = vmatprep.mubr.msk.f32.mxu1 %vm7983_vm1, %v10664_v12  ;;  %v8900_v5 = vpop.permute.xlu0 %1918  ;;  %v8902_v9 = vpop.permute.xlu1 %1920  ;;  %v1275_v0 = vsel %vm198_vm4, %v1273_v36, %v8687_v37  ;;  %v10704_v33 = vld [vmem:[#allocation55_spill] sm:$0xff] }
 0x232   :  { %7534 = vmatprep.subr.mxu1 %v10664_v12  ;;  %2647 = vrot.lane.b32.xlu0 %v8083_v17, %s10599_s14  ;;  %v1274_v4 = vsel %vm198_vm4, %v1272_v18, %v10704_v33  ;;  %v7183_v37 = vld [vmem:[%s10584_s0 + $0x28] sm:$0xf]  ;;  %v7197_v18 = vld [vmem:[%s10584_s0 + $0x44] sm:$0xf] }
 0x233   :  { %7535 = vmatpush3.msra.mxu1 %v918_v28  ;;  %2649 = vrot.lane.b32.xlu1 %v8115_v19, %s10599_s14  ;;  %v1480_v28 = vsel %vm192_vm2, %v10709_v26, %v10708_v10 }
 0x234   :  { %7539 = vmatprep.subr.mxu1 %v10664_v12  ;;  %7537 = vmatmul.mubr.msk.f32.vlgmr.msra.gmra.mxu1 %vm202_vm5, %v7177_v55 }
 0x235   :  { %7540 = vmatpush3.msra.mxu1 %v1065_v8  ;;  %7579 = vmatmul.mubr.msk.f32.vlgmr.msra.gmra.mxu0 %vm202_vm5, %v7189_v47  ;;  %v8934_v3 = vpop.permute.xlu0 %1924  ;;  %v8936_v49 = vpop.permute.xlu1 %1926  ;;  %v10710_v47 = vld [vmem:[#allocation43_spill] sm:$0xff]  ;;  %v1691_v8 = vsel %vm192_vm2, %v10713_v22, %v10712_v7 }
 0x236   :  { %7589 = vmatpush3.msra.mxu0 %v1800_v62  ;;  %7541 = vmatprep.subr.mxu1 %v10664_v12  ;;  %v1482_v54 = vsel %vm195_vm3, %v1480_v28, %v10710_v47  ;;  %v1693_v15 = vsel %vm195_vm3, %v1691_v8, %v10714_v38  ;;  %v7199_v28 = vld [vmem:[%s10584_s0 + $0x48] sm:$0xf] }
 0x237   :  { %7590 = vmatprep.subr.mxu0 %v10664_v12  ;;  %7542 = vmatpush3.msra.mxu1 %v1064_v48  ;;  %v1484_v62 = vsel %vm198_vm4, %v1482_v54, %v10711_v6  ;;  %v1695_v42 = vsel %vm198_vm4, %v1693_v15, %v8787_v51  ;;  %v1937_v48 = vsel %vm192_vm2, %v8872_v13, %v8902_v9  ;;  %v7191_v51 = vld [vmem:[%s10584_s0 + $0x38] sm:$0xf] }
 0x238   :  { %7591 = vmatpush3.msra.mxu0 %v1799_v50  ;;  %7543 = vmatprep.mubr.msk.f32.mxu1 %vm7983_vm1, %v10664_v12  ;;  %v1692_v50 = vsel %vm195_vm3, %v1690_v63, %v10717_v59 }
 0x239   :  { %7553 = vmatprep.subr.mxu1 %v10664_v12  ;;  %2653 = vrot.lane.b32.xlu0 %v8151_v21, %s10597_s11  ;;  %v8958_v41 = vpop.permute.xlu0 %1930  ;;  %v1933_v32 = vpop.permute.xlu1 %1932  ;;  %v1694_v1 = vsel %vm198_vm4, %v1692_v50, %v10718_v57 }
 0x23a   :  { %2655 = vrot.lane.b32.xlu1 %v8183_v23, %s10597_s11  ;;  %7544 = vmatmul.mubr.msk.f32.vlgmr.msra.gmra.mxu1 %vm202_vm5, %v7179_v31  ;;  %v1939_v31 = vsel %vm195_vm3, %v1937_v48, %v8936_v49  ;;  %v1936_v49 = vsel %vm192_vm2, %v8870_v60, %v8900_v5 }
 0x23b   :  { %7554 = vmatpush3.msra.mxu1 %v1275_v0  ;;  %7592 = vmatprep.mubr.msk.f32.mxu0 %vm7983_vm1, %v10664_v12  ;;  %v1941_v30 = vsel %vm198_vm4, %v1939_v31, %v1933_v32  ;;  %v1938_v36 = vsel %vm195_vm3, %v1936_v49, %v8934_v3  ;;  %v7195_v3 = vld [vmem:[%s10584_s0 + $0x40] sm:$0xf] }
 0x23c   :  { %7555 = vmatprep.subr.mxu1 %v10664_v12  ;;  %7557 = vmatprep.mubr.msk.f32.mxu1 %vm7983_vm1, %v10664_v12  ;;  %v1940_v60 = vsel %vm198_vm4, %v1938_v36, %v8958_v41  ;;  %v7203_v36 = vld [vmem:[%s10584_s0 + $0x50] sm:$0xf] }
 0x23d   :  { %7556 = vmatpush3.msra.mxu1 %v1274_v4  ;;  %7593 = vmatmul.mubr.msk.f32.vlgmr.msra.gmra.mxu0 %vm202_vm5, %v7193_v43  ;;  %v2018_v52 = vpop.permute.xlu0 %2017  ;;  %v2020_v55 = vpop.permute.xlu1 %2019 }
 0x23e   :  { %7567 = vmatprep.subr.mxu1 %v10664_v12  ;;  %2659 = vrot.lane.b32.xlu0 %v8215_v25, %s10601_s10 }
 0x23f   :  { %2661 = vrot.lane.b32.xlu1 %v8287_v45, %s10601_s10  ;;  %7558 = vmatmul.mubr.msk.f32.vlgmr.msra.gmra.mxu1 %vm202_vm5, %v7183_v37 }
 0x240   :  { %7568 = vmatpush3.msra.mxu1 %v1485_v35  ;;  %7571 = vmatprep.mubr.msk.f32.mxu1 %vm7983_vm1, %v10664_v12 }
 0x241   :  { %7569 = vmatprep.subr.mxu1 %v10664_v12  ;;  %v2024_v24 = vpop.permute.xlu0 %2023  ;;  %v2026_v27 = vpop.permute.xlu1 %2025  ;;  %7602 = vmatprep.subr.mxu0 %v10664_v12 }
 0x242   :  { %7570 = vmatpush3.msra.mxu1 %v1484_v62  ;;  %2665 = vrot.lane.b32.xlu0 %v8347_v61, %s7988_s9  ;;  %v2042_v39 = vsel %vm192_vm2, %v2020_v55, %v2026_v27  ;;  %v2041_v11 = vsel %vm192_vm2, %v2018_v52, %v2024_v24 }
 0x243   :  { %7581 = vmatprep.subr.mxu1 %v10664_v12  ;;  %2667 = vrot.lane.b32.xlu1 %v8411_v14, %s7988_s9 }
 0x244   :  { %7572 = vmatmul.mubr.msk.f32.vlgmr.msra.gmra.mxu1 %vm202_vm5, %v7187_v56  ;;  %7606 = vmatprep.mubr.msk.f32.mxu0 %vm7983_vm1, %v10664_v12 }
 0x245   :  { %7582 = vmatpush3.msra.mxu1 %v1695_v42  ;;  %7585 = vmatprep.mubr.msk.f32.mxu1 %vm7983_vm1, %v10664_v12  ;;  %v2030_v13 = vpop.permute.xlu0 %2029  ;;  %v2032_v9 = vpop.permute.xlu1 %2031 }
 0x246   :  { %7583 = vmatprep.subr.mxu1 %v10664_v12  ;;  %2790 = vrot.lane.b32.xlu0 %v8115_v19, %s7992_s8  ;;  %v2044_v32 = vsel %vm195_vm3, %v2042_v39, %v2032_v9  ;;  %v2043_v0 = vsel %vm195_vm3, %v2041_v11, %v2030_v13 }
 0x247   :  { %7584 = vmatpush3.msra.mxu1 %v1694_v1  ;;  %2788 = vrot.lane.b32.xlu1 %v8083_v17, %s7992_s8 }
 0x248   :  { %7595 = vmatprep.subr.mxu1 %v10664_v12  ;;  %7586 = vmatmul.mubr.msk.f32.vlgmr.msra.gmra.mxu1 %vm202_vm5, %v7191_v51 }
 0x249   :  { %7596 = vmatpush3.msra.mxu1 %v1941_v30  ;;  %v2036_v2 = vpop.permute.xlu0 %2035  ;;  %v2038_v20 = vpop.permute.xlu1 %2037  ;;  %7599 = vmatprep.mubr.msk.f32.mxu1 %vm7983_vm1, %v10664_v12 }
 0x24a   :  { %7597 = vmatprep.subr.mxu1 %v10664_v12  ;;  %2796 = vrot.lane.b32.xlu0 %v8183_v23, %s10599_s14  ;;  %v2046_v5 = vsel %vm198_vm4, %v2044_v32, %v2038_v20  ;;  %v2045_v41 = vsel %vm198_vm4, %v2043_v0, %v2036_v2 }
 0x24b   :  { %7598 = vmatpush3.msra.mxu1 %v1940_v60  ;;  %2794 = vrot.lane.b32.xlu1 %v8151_v21, %s10599_s14 }
 0x24c   :  { %7603 = vmatpush3.msra.mxu0 %v2046_v5  ;;  %7609 = vmatprep.subr.mxu1 %v10664_v12 }
 0x24d   :  { %7604 = vmatprep.subr.mxu0 %v10664_v12  ;;  %v2123_v43 = vpop.permute.xlu0 %2122  ;;  %v2125_v34 = vpop.permute.xlu1 %2124  ;;  %7600 = vmatmul.mubr.msk.f32.vlgmr.msra.gmra.mxu1 %vm202_vm5, %v7195_v3 }
 0x24e   :  { %2802 = vrot.lane.b32.xlu0 %v8287_v45, %s10597_s11  ;;  %7605 = vmatpush3.msra.mxu0 %v2045_v41 }
 0x24f   :  { %2800 = vrot.lane.b32.xlu1 %v8215_v25, %s10597_s11  ;;  %7616 = vmatprep.subr.mxu0 %v10664_v12 }
 0x250   :  { %7607 = vmatmul.mubr.msk.f32.vlgmr.msra.gmra.mxu0 %vm202_vm5, %v7197_v18  ;;  %7613 = vmatprep.mubr.msk.f32.mxu1 %vm7983_vm1, %v10664_v12 }
 0x251   :  { %v2129_v33 = vpop.permute.xlu0 %2128  ;;  %v2131_v4 = vpop.permute.xlu1 %2130  ;;  %7620 = vmatprep.mubr.msk.f32.mxu0 %vm7983_vm1, %v10664_v12 }
 0x252   :  { %2808 = vrot.lane.b32.xlu0 %v8411_v14, %s10601_s10  ;;  %v2147_v40 = vsel %vm192_vm2, %v2125_v34, %v2131_v4  ;;  %v2146_v53 = vsel %vm192_vm2, %v2123_v43, %v2129_v33  ;;  %v7205_v4 = vld [vmem:[%s10584_s0 + $0x54] sm:$0xf] }
 0x253   :  { %2806 = vrot.lane.b32.xlu1 %v8347_v61, %s10601_s10 }
 0x255   :  { %v2135_v37 = vpop.permute.xlu0 %2134  ;;  %v2137_v46 = vpop.permute.xlu1 %2136 }
 0x256   :  { %2895 = vrot.lane.b32.xlu0 %v8115_v19, %s7993_s13  ;;  %v2149_v44 = vsel %vm195_vm3, %v2147_v40, %v2137_v46  ;;  %v2148_v10 = vsel %vm195_vm3, %v2146_v53, %v2135_v37 }
 0x257   :  { %2893 = vrot.lane.b32.xlu1 %v8083_v17, %s7993_s13 }
 0x259   :  { %v2141_v52 = vpop.permute.xlu0 %2140  ;;  %v2143_v55 = vpop.permute.xlu1 %2142 }
 0x25a   :  { %2901 = vrot.lane.b32.xlu0 %v8183_v23, %s7992_s8  ;;  %v2151_v58 = vsel %vm198_vm4, %v2149_v44, %v2143_v55  ;;  %v2150_v26 = vsel %vm198_vm4, %v2148_v10, %v2141_v52 }
 0x25b   :  { %2899 = vrot.lane.b32.xlu1 %v8151_v21, %s7992_s8  ;;  %7610 = vmatpush3.msra.mxu1 %v2151_v58 }
 0x25c   :  { %7611 = vmatprep.subr.mxu1 %v10664_v12 }
 0x25d   :  { %v2228_v35 = vpop.permute.xlu0 %2227  ;;  %v2230_v47 = vpop.permute.xlu1 %2229  ;;  %7612 = vmatpush3.msra.mxu1 %v2150_v26 }
 0x25e   :  { %2907 = vrot.lane.b32.xlu0 %v8287_v45, %s10599_s14  ;;  %7623 = vmatprep.subr.mxu1 %v10664_v12 }
 0x25f   :  { %2905 = vrot.lane.b32.xlu1 %v8215_v25, %s10599_s14  ;;  %7614 = vmatmul.mubr.msk.f32.vlgmr.msra.gmra.mxu1 %vm202_vm5, %v7199_v28 }
 0x260   :  { %7627 = vmatprep.mubr.msk.f32.mxu1 %vm7983_vm1, %v10664_v12 }
 0x261   :  { %v2234_v54 = vpop.permute.xlu0 %2233  ;;  %v2236_v6 = vpop.permute.xlu1 %2235 }
 0x262   :  { %2913 = vrot.lane.b32.xlu0 %v8411_v14, %s10597_s11  ;;  %v2252_v24 = vsel %vm192_vm2, %v2230_v47, %v2236_v6  ;;  %v2251_v8 = vsel %vm192_vm2, %v2228_v35, %v2234_v54 }
 0x263   :  { %2911 = vrot.lane.b32.xlu1 %v8347_v61, %s10597_s11  ;;  %s7995_s11 = smov 20  }
 0x265   :  { %v2240_v62 = vpop.permute.xlu0 %2239  ;;  %v2242_v56 = vpop.permute.xlu1 %2241 }
 0x266   :  { %3000 = vrot.lane.b32.xlu0 %v8115_v19, %s7994_s15  ;;  %v2254_v27 = vsel %vm195_vm3, %v2252_v24, %v2242_v56  ;;  %v2253_v15 = vsel %vm195_vm3, %v2251_v8, %v2240_v62  ;;  %v7207_v62 = vld [vmem:[%s10584_s0 + $0x58] sm:$0xf] }
 0x267   :  { %2998 = vrot.lane.b32.xlu1 %v8083_v17, %s7994_s15 }
 0x269   :  { %v2246_v7 = vpop.permute.xlu0 %2245  ;;  %v2248_v22 = vpop.permute.xlu1 %2247 }
 0x26a   :  { %3006 = vrot.lane.b32.xlu0 %v8183_v23, %s7993_s13  ;;  %v2256_v38 = vsel %vm198_vm4, %v2254_v27, %v2248_v22  ;;  %v2255_v29 = vsel %vm198_vm4, %v2253_v15, %v2246_v7 }
 0x26b   :  { %3004 = vrot.lane.b32.xlu1 %v8151_v21, %s7993_s13  ;;  %7617 = vmatpush3.msra.mxu0 %v2256_v38 }
 0x26c   :  { %7618 = vmatprep.subr.mxu0 %v10664_v12 }
 0x26d   :  { %v2333_v63 = vpop.permute.xlu0 %2332  ;;  %v2335_v42 = vpop.permute.xlu1 %2334  ;;  %7619 = vmatpush3.msra.mxu0 %v2255_v29 }
 0x26e   :  { %3012 = vrot.lane.b32.xlu0 %v8287_v45, %s7992_s8  ;;  %7621 = vmatmul.mubr.msk.f32.vlgmr.msra.gmra.mxu0 %vm202_vm5, %v7201_v16 }
 0x26f   :  { %3010 = vrot.lane.b32.xlu1 %v8215_v25, %s7992_s8  ;;  %7630 = vmatprep.subr.mxu0 %v10664_v12 }
 0x270   :  { %7634 = vmatprep.mubr.msk.f32.mxu0 %vm7983_vm1, %v10664_v12 }
 0x271   :  { %v2339_v48 = vpop.permute.xlu0 %2338  ;;  %v2341_v59 = vpop.permute.xlu1 %2340 }
 0x272   :  { %3018 = vrot.lane.b32.xlu0 %v8411_v14, %s10599_s14  ;;  %v2357_v51 = vsel %vm192_vm2, %v2335_v42, %v2341_v59  ;;  %v2356_v1 = vsel %vm192_vm2, %v2333_v63, %v2339_v48  ;;  %v7209_v59 = vld [vmem:[%s10584_s0 + $0x5c] sm:$0xf] }
 0x273   :  { %3016 = vrot.lane.b32.xlu1 %v8347_v61, %s10599_s14  ;;  %s7996_s14 = smov 16  }
 0x275   :  { %v2345_v50 = vpop.permute.xlu0 %2344  ;;  %v2347_v31 = vpop.permute.xlu1 %2346 }
 0x276   :  { %3105 = vrot.lane.b32.xlu0 %v8115_v19, %s7995_s11  ;;  %v2359_v13 = vsel %vm195_vm3, %v2357_v51, %v2347_v31  ;;  %v2358_v49 = vsel %vm195_vm3, %v2356_v1, %v2345_v50 }
 0x277   :  { %3103 = vrot.lane.b32.xlu1 %v8083_v17, %s7995_s11 }
 0x279   :  { %v2351_v9 = vpop.permute.xlu0 %2350  ;;  %v2353_v57 = vpop.permute.xlu1 %2352 }
 0x27a   :  { %3111 = vrot.lane.b32.xlu0 %v8183_v23, %s7994_s15  ;;  %v2361_v30 = vsel %vm198_vm4, %v2359_v13, %v2353_v57  ;;  %v2360_v39 = vsel %vm198_vm4, %v2358_v49, %v2351_v9  ;;  %v10719_v49 = vld [vmem:[#allocation4_spill] sm:$0xff] }
 0x27b   :  { %3109 = vrot.lane.b32.xlu1 %v8151_v21, %s7994_s15  ;;  %7624 = vmatpush3.msra.mxu1 %v2361_v30 }
 0x27c   :  { %7625 = vmatprep.subr.mxu1 %v10664_v12 }
 0x27d   :  { %v2438_v32 = vpop.permute.xlu0 %2437  ;;  %v2440_v2 = vpop.permute.xlu1 %2439  ;;  %7626 = vmatpush3.msra.mxu1 %v2360_v39  ;;  %v10720_v39 = vld [vmem:[#allocation5_spill] sm:$0xff] }
 0x27e   :  { %3117 = vrot.lane.b32.xlu0 %v8287_v45, %s7993_s13  ;;  %7637 = vmatprep.subr.mxu1 %v10664_v12 }
 0x27f   :  { %3115 = vrot.lane.b32.xlu1 %v8215_v25, %s7993_s13  ;;  %7628 = vmatmul.mubr.msk.f32.vlgmr.msra.gmra.mxu1 %vm202_vm5, %v7203_v36 }
 0x280   :  { %7641 = vmatprep.mubr.msk.f32.mxu1 %vm7983_vm1, %v10664_v12 }
 0x281   :  { %v2444_v20 = vpop.permute.xlu0 %2443 }
 0x282   :  { %3123 = vrot.lane.b32.xlu0 %v8411_v14, %s7992_s8  ;;  %v2446_v60 = vpop.permute.xlu1 %2445  ;;  %v2461_v34 = vsel %vm192_vm2, %v2438_v32, %v2444_v20  ;;  %v10722_v20 = vld [vmem:[#allocation23_spill] sm:$0xff] }
 0x283   :  { %3121 = vrot.lane.b32.xlu1 %v8347_v61, %s7992_s8  ;;  %v2462_v11 = vsel %vm192_vm2, %v2440_v2, %v2446_v60  ;;  %v10721_v2 = vld [vmem:[#allocation16_spill] sm:$0xff] }
 0x286   :  { %3210 = vrot.lane.b32.xlu0 %v8115_v19, %s7996_s14  ;;  %v2450_v5 = vpop.permute.xlu0 %2449 }
 0x287   :  { %3208 = vrot.lane.b32.xlu1 %v8083_v17, %s7996_s14  ;;  %v2452_v3 = vpop.permute.xlu1 %2451  ;;  %v2463_v33 = vsel %vm195_vm3, %v2461_v34, %v2450_v5  ;;  %v10724_v34 = vld [vmem:[#allocation2_spill] sm:$0xff] }
 0x288   :  { %v2464_v0 = vsel %vm195_vm3, %v2462_v11, %v2452_v3  ;;  %v9312_v3 = vpop.f32.mrf.mxu0  ;;  %v10723_v11 = vld [vmem:[#allocation31_spill] sm:$0xff] }
 0x28a   :  { %3216 = vrot.lane.b32.xlu0 %v8183_v23, %s7995_s11  ;;  %v2456_v41 = vpop.permute.xlu0 %2455 }
 0x28b   :  { %3214 = vrot.lane.b32.xlu1 %v8151_v21, %s7995_s11  ;;  %v2458_v43 = vpop.permute.xlu1 %2457  ;;  %v2465_v37 = vsel %vm198_vm4, %v2463_v33, %v2456_v41  ;;  %v10725_v33 = vld [vmem:[#allocation3_spill] sm:$0xff] }
 0x28c   :  { %v2466_v18 = vsel %vm198_vm4, %v2464_v0, %v2458_v43 }
 0x28d   :  { %7631 = vmatpush3.msra.mxu0 %v2466_v18 }
 0x28e   :  { %3222 = vrot.lane.b32.xlu0 %v8287_v45, %s7994_s15  ;;  %7632 = vmatprep.subr.mxu0 %v10664_v12 }
 0x28f   :  { %3220 = vrot.lane.b32.xlu1 %v8215_v25, %s7994_s15  ;;  %7633 = vmatpush3.msra.mxu0 %v2465_v37 }
 0x290   :  { %7635 = vmatmul.mubr.msk.f32.vlgmr.msra.gmra.mxu0 %vm202_vm5, %v7205_v4  ;;  %7644 = vmatprep.subr.mxu0 %v10664_v12 }
 0x291   :  { %v2543_v46 = vpop.permute.xlu0 %2542  ;;  %7648 = vmatprep.mubr.msk.f32.mxu0 %vm7983_vm1, %v10664_v12 }
 0x292   :  { %3228 = vrot.lane.b32.xlu0 %v8411_v14, %s7993_s13  ;;  %v2545_v40 = vpop.permute.xlu1 %2544 }
 0x293   :  { %3226 = vrot.lane.b32.xlu1 %v8347_v61, %s7993_s13 }
 0x296   :  { %3315 = vrot.lane.b32.xlu0 %v8115_v19, %s7982_s1  ;;  %v2549_v44 = vpop.permute.xlu0 %2548 }
 0x297   :  { %3313 = vrot.lane.b32.xlu1 %v8083_v17, %s7982_s1  ;;  %v2551_v52 = vpop.permute.xlu1 %2550  ;;  %v2566_v35 = vsel %vm192_vm2, %v2543_v46, %v2549_v44 }
 0x298   :  { %v2567_v58 = vsel %vm192_vm2, %v2545_v40, %v2551_v52 }
 0x29a   :  { %3321 = vrot.lane.b32.xlu0 %v8183_v23, %s7996_s14 }
 0x29b   :  { %3319 = vrot.lane.b32.xlu1 %v8151_v21, %s7996_s14 }
 0x29c   :  { %v2555_v55 = vpop.permute.xlu0 %2554 }
 0x29d   :  { %v2557_v53 = vpop.permute.xlu1 %2556  ;;  %v2568_v54 = vsel %vm195_vm3, %v2566_v35, %v2555_v55 }
 0x29e   :  { %3327 = vrot.lane.b32.xlu0 %v8287_v45, %s7995_s11  ;;  %v2569_v26 = vsel %vm195_vm3, %v2567_v58, %v2557_v53  ;;  %v7213_v53 = vld [vmem:[%s10584_s0 + $0x64] sm:$0xf] }
 0x29f   :  { %3325 = vrot.lane.b32.xlu1 %v8215_v25, %s7995_s11 }
 0x2a0   :  { %v2561_v10 = vpop.permute.xlu0 %2560 }
 0x2a1   :  { %v2563_v28 = vpop.permute.xlu1 %2562  ;;  %v2570_v6 = vsel %vm198_vm4, %v2568_v54, %v2561_v10 }
 0x2a2   :  { %3333 = vrot.lane.b32.xlu0 %v8411_v14, %s7994_s15  ;;  %v2571_v47 = vsel %vm198_vm4, %v2569_v26, %v2563_v28 }
 0x2a3   :  { %3331 = vrot.lane.b32.xlu1 %v8347_v61, %s7994_s15  ;;  %7638 = vmatpush3.msra.mxu1 %v2571_v47 }
 0x2a4   :  { %7639 = vmatprep.subr.mxu1 %v10664_v12  ;;  %v2648_v56 = vpop.permute.xlu0 %2647 }
 0x2a5   :  { %7640 = vmatpush3.msra.mxu1 %v2570_v6  ;;  %v2650_v24 = vpop.permute.xlu1 %2649 }
 0x2a6   :  { %3420 = vrot.lane.b32.xlu0 %v8115_v19, %s7981_s4  ;;  %7651 = vmatprep.subr.mxu1 %v10664_v12 }
 0x2a7   :  { %3418 = vrot.lane.b32.xlu1 %v8083_v17, %s7981_s4  ;;  %7642 = vmatmul.mubr.msk.f32.vlgmr.msra.gmra.mxu1 %vm202_vm5, %v7207_v62 }
 0x2a8   :  { %7655 = vmatprep.mubr.msk.f32.mxu1 %vm7983_vm1, %v10664_v12 }
 0x2aa   :  { %3426 = vrot.lane.b32.xlu0 %v8183_v23, %s7982_s1 }
 0x2ab   :  { %3424 = vrot.lane.b32.xlu1 %v8151_v21, %s7982_s1  ;;  %v2654_v27 = vpop.permute.xlu0 %2653 }
 0x2ac   :  { %v2656_v7 = vpop.permute.xlu1 %2655  ;;  %v2671_v63 = vsel %vm192_vm2, %v2648_v56, %v2654_v27 }
 0x2ad   :  { %v2672_v38 = vsel %vm192_vm2, %v2650_v24, %v2656_v7 }
 0x2ae   :  { %3432 = vrot.lane.b32.xlu0 %v8287_v45, %s7996_s14 }
 0x2af   :  { %3430 = vrot.lane.b32.xlu1 %v8215_v25, %s7996_s14 }
 0x2b0   :  { %v2660_v22 = vpop.permute.xlu0 %2659 }
 0x2b1   :  { %v2662_v8 = vpop.permute.xlu1 %2661  ;;  %v2673_v48 = vsel %vm195_vm3, %v2671_v63, %v2660_v22 }
 0x2b2   :  { %3438 = vrot.lane.b32.xlu0 %v8411_v14, %s7995_s11  ;;  %v2674_v16 = vsel %vm195_vm3, %v2672_v38, %v2662_v8 }
 0x2b3   :  { %3436 = vrot.lane.b32.xlu1 %v8347_v61, %s7995_s11 }
 0x2b4   :  { %v2666_v15 = vpop.permute.xlu0 %2665 }
 0x2b5   :  { %v2668_v29 = vpop.permute.xlu1 %2667  ;;  %v2675_v50 = vsel %vm198_vm4, %v2673_v48, %v2666_v15 }
 0x2b6   :  { %v2676_v42 = vsel %vm198_vm4, %v2674_v16, %v2668_v29  ;;  %3525 = vrot.lane.b32.xlu0 %v8115_v19, %s7980_s30 }
 0x2b7   :  { %3523 = vrot.lane.b32.xlu1 %v8083_v17, %s7980_s30  ;;  %7645 = vmatpush3.msra.mxu0 %v2676_v42 }
 0x2b8   :  { %7646 = vmatprep.subr.mxu0 %v10664_v12  ;;  %v2791_v31 = vpop.permute.xlu0 %2790 }
 0x2b9   :  { %v2789_v51 = vpop.permute.xlu1 %2788  ;;  %7647 = vmatpush3.msra.mxu0 %v2675_v50  ;;  %v7215_v50 = vld [vmem:[%s10584_s0 + $0x68] sm:$0xf] }
 0x2ba   :  { %7649 = vmatmul.mubr.msk.f32.vlgmr.msra.gmra.mxu0 %vm202_vm5, %v7209_v59  ;;  %3531 = vrot.lane.b32.xlu0 %v8183_v23, %s7981_s4 }
 0x2bb   :  { %3529 = vrot.lane.b32.xlu1 %v8151_v21, %s7981_s4  ;;  %7658 = vmatprep.subr.mxu0 %v10664_v12 }
 0x2bc   :  { %v2797_v17 = vpop.permute.xlu0 %2796  ;;  %7662 = vmatprep.mubr.msk.f32.mxu0 %vm7983_vm1, %v10664_v12 }
 0x2bd   :  { %v2795_v19 = vpop.permute.xlu1 %2794  ;;  %v2813_v21 = vsel %vm192_vm2, %v2791_v31, %v2797_v17 }
 0x2be   :  { %3537 = vrot.lane.b32.xlu0 %v8287_v45, %s7982_s1  ;;  %v2812_v1 = vsel %vm192_vm2, %v2789_v51, %v2795_v19 }
 0x2bf   :  { %3535 = vrot.lane.b32.xlu1 %v8215_v25, %s7982_s1 }
 0x2c0   :  { %v2803_v13 = vpop.permute.xlu0 %2802 }
 0x2c1   :  { %v2801_v9 = vpop.permute.xlu1 %2800  ;;  %v2815_v23 = vsel %vm195_vm3, %v2813_v21, %v2803_v13 }
 0x2c2   :  { %3543 = vrot.lane.b32.xlu0 %v8411_v14, %s7996_s14  ;;  %v2814_v25 = vsel %vm195_vm3, %v2812_v1, %v2801_v9  ;;  %v7211_v14 = vld [vmem:[%s10584_s0 + $0x60] sm:$0xf] }
 0x2c3   :  { %3541 = vrot.lane.b32.xlu1 %v8347_v61, %s7996_s14 }
 0x2c4   :  { %v2809_v57 = vpop.permute.xlu0 %2808 }
 0x2c5   :  { %v2817_v45 = vsel %vm198_vm4, %v2815_v23, %v2809_v57  ;;  %v2807_v30 = vpop.permute.xlu1 %2806 }
 0x2c6   :  { %3666 = vrot.lane.b32.xlu0 %v10719_v49, %s7980_s30  ;;  %7652 = vmatpush3.msra.mxu1 %v2817_v45  ;;  %v2816_v61 = vsel %vm198_vm4, %v2814_v25, %v2807_v30 }
 0x2c7   :  { %3668 = vrot.lane.b32.xlu1 %v10720_v39, %s7980_s30  ;;  %7653 = vmatprep.subr.mxu1 %v10664_v12 }
 0x2c8   :  { %v2896_v36 = vpop.permute.xlu0 %2895  ;;  %7654 = vmatpush3.msra.mxu1 %v2816_v61 }
 0x2c9   :  { %v2894_v32 = vpop.permute.xlu1 %2893  ;;  %7656 = vmatmul.mubr.msk.f32.vlgmr.msra.gmra.mxu1 %vm202_vm5, %v7211_v14  ;;  %7665 = vmatprep.subr.mxu1 %v10664_v12 }
 0x2ca   :  { %3674 = vrot.lane.b32.xlu0 %v10721_v2, %s7981_s4  ;;  %7669 = vmatprep.mubr.msk.f32.mxu1 %vm7983_vm1, %v10664_v12 }
 0x2cb   :  { %3676 = vrot.lane.b32.xlu1 %v10722_v20, %s7981_s4 }
 0x2cc   :  { %v2902_v60 = vpop.permute.xlu0 %2901 }
 0x2cd   :  { %v2900_v5 = vpop.permute.xlu1 %2899  ;;  %v2918_v18 = vsel %vm192_vm2, %v2896_v36, %v2902_v60 }
 0x2ce   :  { %3682 = vrot.lane.b32.xlu0 %v10723_v11, %s7982_s1  ;;  %v2917_v40 = vsel %vm192_vm2, %v2894_v32, %v2900_v5 }
 0x2cf   :  { %3684 = vrot.lane.b32.xlu1 %v9312_v3, %s7982_s1 }
 0x2d0   :  { %v2908_v0 = vpop.permute.xlu0 %2907 }
 0x2d1   :  { %v2906_v41 = vpop.permute.xlu1 %2905  ;;  %v9318_v43 = vpop.f32.mrf.mxu1  ;;  %v2920_v37 = vsel %vm195_vm3, %v2918_v18, %v2908_v0 }
 0x2d2   :  { %3771 = vrot.lane.b32.xlu0 %v10724_v34, %s7966_s17  ;;  %v2919_v55 = vsel %vm195_vm3, %v2917_v40, %v2906_v41 }
 0x2d3   :  { %3773 = vrot.lane.b32.xlu1 %v10725_v33, %s7966_s17  ;;  %v7489_v4 = vpop.f32.mrf.mxu1 }
 0x2d4   :  { %v2914_v46 = vpop.permute.xlu0 %2913 }
 0x2d5   :  { %v2922_v44 = vsel %vm198_vm4, %v2920_v37, %v2914_v46  ;;  %v2912_v52 = vpop.permute.xlu1 %2911  ;;  %v7217_v37 = vld [vmem:[%s10584_s0 + $0x6c] sm:$0xf] }
 0x2d6   :  { %3777 = vrot.lane.b32.xlu0 %v10721_v2, %s7980_s30  ;;  %7659 = vmatpush3.msra.mxu0 %v2922_v44  ;;  %v373_v58 = vpop.f32.mrf.mxu1  ;;  %v2921_v10 = vsel %vm198_vm4, %v2919_v55, %v2912_v52 }
 0x2d7   :  { %3779 = vrot.lane.b32.xlu1 %v10722_v20, %s7980_s30  ;;  %7660 = vmatprep.subr.mxu0 %v10664_v12 }
 0x2d8   :  { %v3001_v26 = vpop.permute.xlu0 %3000  ;;  %7661 = vmatpush3.msra.mxu0 %v2921_v10  ;;  %v7496_v28 = vpop.f32.mrf.mxu1 }
 0x2d9   :  { %v2999_v35 = vpop.permute.xlu1 %2998  ;;  %7663 = vmatmul.mubr.msk.f32.vlgmr.msra.gmra.mxu0 %vm202_vm5, %v7213_v53  ;;  %7672 = vmatprep.subr.mxu0 %v10664_v12 }
 0x2da   :  { %3783 = vrot.lane.b32.xlu0 %v10723_v11, %s7981_s4  ;;  %v9342_v47 = vpop.f32.mrf.mxu1  ;;  %7676 = vmatprep.mubr.msk.f32.mxu0 %vm7983_vm1, %v10664_v12 }
 0x2db   :  { %3785 = vrot.lane.b32.xlu1 %v9312_v3, %s7981_s4  ;;  %v1242_v54 = vpop.f32.mrf.mxu0 }
 0x2dc   :  { %v3007_v6 = vpop.permute.xlu0 %3006  ;;  %v7503_v62 = vpop.f32.mrf.mxu1 }
 0x2dd   :  { %v3005_v56 = vpop.permute.xlu1 %3004  ;;  %v7552_v24 = vpop.f32.mrf.mxu0  ;;  %v3023_v38 = vsel %vm192_vm2, %v3001_v26, %v3007_v6 }
 0x2de   :  { %3870 = vrot.lane.b32.xlu0 %v10724_v34, %s7968_s19  ;;  %v3022_v29 = vsel %vm192_vm2, %v2999_v35, %v3005_v56 }
 0x2df   :  { %3872 = vrot.lane.b32.xlu1 %v10725_v33, %s7968_s19 }
 0x2e0   :  { %v3013_v27 = vpop.permute.xlu0 %3012  ;;  %v571_v7 = vpop.f32.mrf.mxu1 }
 0x2e1   :  { %v3011_v22 = vpop.permute.xlu1 %3010  ;;  %v3025_v15 = vsel %vm195_vm3, %v3023_v38, %v3013_v27 }
 0x2e2   :  { %3876 = vrot.lane.b32.xlu0 %v10719_v49, %s7966_s17  ;;  %v7510_v8 = vpop.f32.mrf.mxu1  ;;  %v3024_v59 = vsel %vm195_vm3, %v3022_v29, %v3011_v22 }
 0x2e3   :  { %3878 = vrot.lane.b32.xlu1 %v10720_v39, %s7966_s17 }
 0x2e4   :  { %v3019_v16 = vpop.permute.xlu0 %3018 }
 0x2e5   :  { %v3027_v63 = vsel %vm198_vm4, %v3025_v15, %v3019_v16  ;;  %v3017_v42 = vpop.permute.xlu1 %3016  ;;  %v9360_v48 = vpop.f32.mrf.mxu1  ;;  %v7219_v15 = vld [vmem:[%s10584_s0 + $0x70] sm:$0xf] }
 0x2e6   :  { %3882 = vrot.lane.b32.xlu0 %v10723_v11, %s7980_s30  ;;  %7666 = vmatpush3.msra.mxu1 %v3027_v63  ;;  %v1452_v31 = vpop.f32.mrf.mxu0  ;;  %v3026_v51 = vsel %vm198_vm4, %v3024_v59, %v3017_v42 }
 0x2e7   :  { %3884 = vrot.lane.b32.xlu1 %v9312_v3, %s7980_s30  ;;  %7667 = vmatprep.subr.mxu1 %v10664_v12  ;;  %v7517_v17 = vpop.f32.mrf.mxu1 }
 0x2e8   :  { %v3106_v19 = vpop.permute.xlu0 %3105  ;;  %7668 = vmatpush3.msra.mxu1 %v3026_v51  ;;  %v7566_v13 = vpop.f32.mrf.mxu0 }
 0x2e9   :  { %v3104_v9 = vpop.permute.xlu1 %3103  ;;  %7670 = vmatmul.mubr.msk.f32.vlgmr.msra.gmra.mxu1 %vm202_vm5, %v7215_v50  ;;  %7679 = vmatprep.subr.mxu1 %v10664_v12 }
 0x2ea   :  { %3969 = vrot.lane.b32.xlu0 %v10724_v34, %s7970_s20  ;;  %7683 = vmatprep.mubr.msk.f32.mxu1 %vm7983_vm1, %v10664_v12 }
 0x2eb   :  { %3971 = vrot.lane.b32.xlu1 %v10725_v33, %s7970_s20  ;;  %v9380_v21 = vpop.f32.mrf.mxu1 }
 0x2ec   :  { %v3112_v23 = vpop.permute.xlu0 %3111 }
 0x2ed   :  { %v3110_v57 = vpop.permute.xlu1 %3109  ;;  %v7524_v1 = vpop.f32.mrf.mxu1  ;;  %v3128_v61 = vsel %vm192_vm2, %v3106_v19, %v3112_v23 }
 0x2ee   :  { %3975 = vrot.lane.b32.xlu0 %v10719_v49, %s7968_s19  ;;  %v3127_v5 = vsel %vm192_vm2, %v3104_v9, %v3110_v57 }
 0x2ef   :  { %1877 = vrot.lane.b32.xlu1 %v1242_v54, %s7996_s14 }
 0x2f0   :  { %v3118_v45 = vpop.permute.xlu0 %3117  ;;  %v886_v30 = vpop.f32.mrf.mxu1 }
 0x2f1   :  { %v3116_v25 = vpop.permute.xlu1 %3115  ;;  %v3130_v36 = vsel %vm195_vm3, %v3128_v61, %v3118_v45 }
 0x2f2   :  { %996 = vrot.lane.b32.xlu0 %v373_v58, %s7996_s14  ;;  %v7531_v14 = vpop.f32.mrf.mxu1  ;;  %v3129_v4 = vsel %vm195_vm3, %v3127_v5, %v3116_v25 }
 0x2f3   :  { %1885 = vrot.lane.b32.xlu1 %v1452_v31, %s7988_s9 }
 0x2f4   :  { %v3124_v32 = vpop.permute.xlu0 %3123  ;;  %v9389_v60 = vpop.f32.mrf.mxu1 }
 0x2f5   :  { %v3132_v0 = vsel %vm198_vm4, %v3130_v36, %v3124_v32  ;;  %v3122_v41 = vpop.permute.xlu1 %3121  ;;  %v1662_v18 = vpop.f32.mrf.mxu0  ;;  %v7221_v32 = vld [vmem:[%s10584_s0 + $0x74] sm:$0xf] }
 0x2f6   :  { %7673 = vmatpush3.msra.mxu0 %v3132_v0  ;;  %1004 = vrot.lane.b32.xlu0 %v571_v7, %s7988_s9  ;;  %v7538_v46 = vpop.f32.mrf.mxu1  ;;  %v3131_v40 = vsel %vm198_vm4, %v3129_v4, %v3122_v41 }
 0x2f7   :  { %1000 = vrot.lane.b32.xlu1 %v9342_v47, %s7992_s8  ;;  %7674 = vmatprep.subr.mxu0 %v10664_v12  ;;  %v7580_v44 = vpop.f32.mrf.mxu0 }
 0x2f8   :  { %v3211_v52 = vpop.permute.xlu0 %3210  ;;  %7675 = vmatpush3.msra.mxu0 %v3131_v40 }
 0x2f9   :  { %v3209_v55 = vpop.permute.xlu1 %3208  ;;  %7677 = vmatmul.mubr.msk.f32.vlgmr.msra.gmra.mxu0 %vm202_vm5, %v7217_v37  ;;  %7686 = vmatprep.subr.mxu0 %v10664_v12 }
 0x2fa   :  { %7690 = vmatprep.mubr.msk.f32.mxu0 %vm7983_vm1, %v10664_v12  ;;  %v9407_v26 = vpop.f32.mrf.mxu1 }
 0x2fb   :  { %1893 = vrot.lane.b32.xlu1 %v1662_v18, %s7973_s23 }
 0x2fc   :  { %v3217_v53 = vpop.permute.xlu0 %3216  ;;  %v7545_v47 = vpop.f32.mrf.mxu1 }
 0x2fd   :  { %v3215_v58 = vpop.permute.xlu1 %3214  ;;  %v1872_v10 = vpop.f32.mrf.mxu0  ;;  %v3233_v62 = vsel %vm192_vm2, %v3211_v52, %v3217_v53 }
 0x2fe   :  { %v3232_v7 = vsel %vm192_vm2, %v3209_v55, %v3215_v58 }
 0x2ff   :  { %1901 = vrot.lane.b32.xlu1 %v1872_v10, %s7972_s22  ;;  %v7594_v28 = vpop.f32.mrf.mxu0  ;;  %v9410_v6 = vpop.f32.mrf.mxu1 }
 0x300   :  { %v3223_v35 = vpop.permute.xlu0 %3222 }
 0x301   :  { %v3221_v54 = vpop.permute.xlu1 %3220  ;;  %v3235_v56 = vsel %vm195_vm3, %v3233_v62, %v3223_v35  ;;  %v7559_v27 = vpop.f32.mrf.mxu1  ;;  %v7223_v35 = vld [vmem:[%s10584_s0 + $0x78] sm:$0xf] }
 0x302   :  { %v3234_v38 = vsel %vm195_vm3, %v3232_v7, %v3221_v54 }
 0x303   :  { %1008 = vrot.lane.b32.xlu1 %v9360_v48, %s7984_s5 }
 0x304   :  { %v3229_v24 = vpop.permute.xlu0 %3228  ;;  %v9422_v16 = vpop.f32.mrf.mxu1 }
 0x305   :  { %v3237_v22 = vsel %vm198_vm4, %v3235_v56, %v3229_v24  ;;  %v3227_v8 = vpop.permute.xlu1 %3226 }
 0x306   :  { %7680 = vmatpush3.msra.mxu1 %v3237_v22  ;;  %v3236_v29 = vsel %vm198_vm4, %v3234_v38, %v3227_v8  ;;  %v7573_v42 = vpop.f32.mrf.mxu1 }
 0x307   :  { %3977 = vrot.lane.b32.xlu1 %v10720_v39, %s7968_s19  ;;  %7681 = vmatprep.subr.mxu1 %v10664_v12 }
 0x308   :  { %v3316_v63 = vpop.permute.xlu0 %3315  ;;  %7682 = vmatpush3.msra.mxu1 %v3236_v29  ;;  %v9432_v59 = vpop.f32.mrf.mxu1 }
 0x309   :  { %v3314_v48 = vpop.permute.xlu1 %3313  ;;  %7684 = vmatmul.mubr.msk.f32.vlgmr.msra.gmra.mxu1 %vm202_vm5, %v7219_v15  ;;  %7693 = vmatprep.subr.mxu1 %v10664_v12 }
 0x30a   :  { %7697 = vmatprep.mubr.msk.f32.mxu1 %vm7983_vm1, %v10664_v12  ;;  %v7587_v31 = vpop.f32.mrf.mxu1 }
 0x30b   :  { %1016 = vrot.lane.b32.xlu1 %v886_v30, %s7965_s16  ;;  %v7225_v31 = vld [vmem:[%s10584_s0 + $0x7c] sm:$0xf] }
 0x30c   :  { %v3322_v50 = vpop.permute.xlu0 %3321 }
 0x30d   :  { %v3320_v51 = vpop.permute.xlu1 %3319  ;;  %v3338_v23 = vsel %vm192_vm2, %v3316_v63, %v3322_v50  ;;  %v9439_v57 = vpop.f32.mrf.mxu1 }
 0x30e   :  { %v3337_v30 = vsel %vm192_vm2, %v3314_v48, %v3320_v51 }
 0x30f   :  { %3983 = vrot.lane.b32.xlu1 %v10722_v20, %s7966_s17  ;;  %v7601_v61 = vpop.f32.mrf.mxu1 }
 0x310   :  { %v3328_v17 = vpop.permute.xlu0 %3327  ;;  %v2118_v19 = vpop.f32.mrf.mxu0 }
 0x311   :  { %v3326_v13 = vpop.permute.xlu1 %3325  ;;  %2753 = vrot.lane.b32.xlu0 %v2118_v19, %s7996_s14  ;;  %v3340_v1 = vsel %vm195_vm3, %v3338_v23, %v3328_v17 }
 0x312   :  { %v7608_v9 = vpop.f32.mrf.mxu0  ;;  %v3339_v36 = vsel %vm195_vm3, %v3337_v30, %v3326_v13 }
 0x314   :  { %v3334_v45 = vpop.permute.xlu0 %3333 }
 0x315   :  { %v3342_v25 = vsel %vm198_vm4, %v3340_v1, %v3334_v45  ;;  %v3332_v14 = vpop.permute.xlu1 %3331  ;;  %1012 = vrot.lane.b32.xlu0 %v9380_v21, %s7973_s23 }
 0x316   :  { %7687 = vmatpush3.msra.mxu0 %v3342_v25  ;;  %v3341_v5 = vsel %vm198_vm4, %v3339_v36, %v3332_v14 }
 0x317   :  { %7688 = vmatprep.subr.mxu0 %v10664_v12 }
 0x318   :  { %v3421_v0 = vpop.permute.xlu0 %3420  ;;  %7689 = vmatpush3.msra.mxu0 %v3341_v5  ;;  %v7227_v5 = vld [vmem:[%s10584_s0 + $0x80] sm:$0xf] }
 0x319   :  { %v3419_v41 = vpop.permute.xlu1 %3418  ;;  %7691 = vmatmul.mubr.msk.f32.vlgmr.msra.gmra.mxu0 %vm202_vm5, %v7221_v32  ;;  %7700 = vmatprep.subr.mxu0 %v10664_v12 }
 0x31a   :  { %7704 = vmatprep.mubr.msk.f32.mxu0 %vm7983_vm1, %v10664_v12 }
 0x31c   :  { %v3427_v21 = vpop.permute.xlu0 %3426 }
 0x31d   :  { %v3425_v18 = vpop.permute.xlu1 %3424  ;;  %v3443_v44 = vsel %vm192_vm2, %v3421_v0, %v3427_v21 }
 0x31e   :  { %v3442_v53 = vsel %vm192_vm2, %v3419_v41, %v3425_v18 }
 0x31f   :  { %v9456_v4 = vpop.f32.mrf.mxu1 }
 0x320   :  { %v3433_v37 = vpop.permute.xlu0 %3432 }
 0x321   :  { %v3431_v46 = vpop.permute.xlu1 %3430  ;;  %v7615_v40 = vpop.f32.mrf.mxu1  ;;  %v3445_v52 = vsel %vm195_vm3, %v3443_v44, %v3433_v37 }
 0x322   :  { %v3444_v28 = vsel %vm195_vm3, %v3442_v53, %v3431_v46 }
 0x324   :  { %v3439_v55 = vpop.permute.xlu0 %3438 }
 0x325   :  { %v3447_v58 = vsel %vm198_vm4, %v3445_v52, %v3439_v55  ;;  %v3437_v10 = vpop.permute.xlu1 %3436 }
 0x326   :  { %7694 = vmatpush3.msra.mxu1 %v3447_v58  ;;  %v3446_v47 = vsel %vm198_vm4, %v3444_v28, %v3437_v10  ;;  %v7229_v10 = vld [vmem:[%s10584_s0 + $0x84] sm:$0xf] }
 0x327   :  { %7695 = vmatprep.subr.mxu1 %v10664_v12 }
 0x328   :  { %v3526_v54 = vpop.permute.xlu0 %3525  ;;  %7696 = vmatpush3.msra.mxu1 %v3446_v47 }
 0x329   :  { %v3524_v62 = vpop.permute.xlu1 %3523  ;;  %7698 = vmatmul.mubr.msk.f32.vlgmr.msra.gmra.mxu1 %vm202_vm5, %v7223_v35  ;;  %7707 = vmatprep.subr.mxu1 %v10664_v12 }
 0x32a   :  { %7711 = vmatprep.mubr.msk.f32.mxu1 %vm7983_vm1, %v10664_v12 }
 0x32c   :  { %v3532_v56 = vpop.permute.xlu0 %3531 }
 0x32d   :  { %v3530_v24 = vpop.permute.xlu1 %3529  ;;  %v3548_v38 = vsel %vm192_vm2, %v3526_v54, %v3532_v56 }
 0x32e   :  { %v2328_v27 = vpop.f32.mrf.mxu0  ;;  %v3547_v63 = vsel %vm192_vm2, %v3524_v62, %v3530_v24 }
 0x32f   :  { %2761 = vrot.lane.b32.xlu0 %v2328_v27, %s7988_s9 }
 0x330   :  { %v3538_v7 = vpop.permute.xlu0 %3537  ;;  %v7622_v22 = vpop.f32.mrf.mxu0 }
 0x331   :  { %v3536_v8 = vpop.permute.xlu1 %3535  ;;  %v3550_v15 = vsel %vm195_vm3, %v3548_v38, %v3538_v7 }
 0x332   :  { %v3549_v50 = vsel %vm195_vm3, %v3547_v63, %v3536_v8 }
 0x334   :  { %v3544_v29 = vpop.permute.xlu0 %3543 }
 0x335   :  { %v3552_v42 = vsel %vm198_vm4, %v3550_v15, %v3544_v29  ;;  %v3542_v48 = vpop.permute.xlu1 %3541 }
 0x336   :  { %7701 = vmatpush3.msra.mxu0 %v3552_v42  ;;  %v3551_v51 = vsel %vm198_vm4, %v3549_v50, %v3542_v48 }
 0x337   :  { %7702 = vmatprep.subr.mxu0 %v10664_v12 }
 0x338   :  { %v3667_v17 = vpop.permute.xlu0 %3666  ;;  %7703 = vmatpush3.msra.mxu0 %v3551_v51 }
 0x339   :  { %v3669_v19 = vpop.permute.xlu1 %3668  ;;  %7705 = vmatmul.mubr.msk.f32.vlgmr.msra.gmra.mxu0 %vm202_vm5, %v7225_v31  ;;  %7714 = vmatprep.subr.mxu0 %v10664_v12  ;;  %v3688_v61 = vsel %vm192_vm2, %v10724_v34, %v3667_v17 }
 0x33a   :  { %7718 = vmatprep.mubr.msk.f32.mxu0 %vm7983_vm1, %v10664_v12  ;;  %v3689_v1 = vsel %vm192_vm2, %v10725_v33, %v3669_v19 }
 0x33c   :  { %v3675_v13 = vpop.permute.xlu0 %3674 }
 0x33d   :  { %v3677_v9 = vpop.permute.xlu1 %3676  ;;  %v3690_v32 = vsel %vm195_vm3, %v3688_v61, %v3675_v13 }
 0x33e   :  { %v3691_v30 = vsel %vm195_vm3, %v3689_v1, %v3677_v9 }
 0x33f   :  { %v9487_v23 = vpop.f32.mrf.mxu1 }
 0x340   :  { %v3683_v45 = vpop.permute.xlu0 %3682 }
 0x341   :  { %v3685_v25 = vpop.permute.xlu1 %3684  ;;  %v7629_v14 = vpop.f32.mrf.mxu1  ;;  %v3692_v0 = vsel %vm198_vm4, %v3690_v32, %v3683_v45 }
 0x342   :  { %v3693_v36 = vsel %vm198_vm4, %v3691_v30, %v3685_v25 }
 0x343   :  { %7708 = vmatpush3.msra.mxu1 %v3693_v36 }
 0x344   :  { %7709 = vmatprep.subr.mxu1 %v10664_v12  ;;  %v3772_v41 = vpop.permute.xlu0 %3771 }
 0x345   :  { %v3774_v21 = vpop.permute.xlu1 %3773  ;;  %7710 = vmatpush3.msra.mxu1 %v3692_v0  ;;  %v3789_v55 = vsel %vm192_vm2, %v3772_v41, %v10719_v49 }
 0x346   :  { %7721 = vmatprep.subr.mxu1 %v10664_v12  ;;  %7712 = vmatmul.mubr.msk.f32.vlgmr.msra.gmra.mxu1 %vm202_vm5, %v7227_v5  ;;  %v3790_v46 = vsel %vm192_vm2, %v3774_v21, %v10720_v39 }
 0x347   :  { %7725 = vmatprep.mubr.msk.f32.mxu1 %vm7983_vm1, %v10664_v12 }
 0x348   :  { %v3778_v18 = vpop.permute.xlu0 %3777 }
 0x349   :  { %v3780_v37 = vpop.permute.xlu1 %3779  ;;  %v3791_v58 = vsel %vm195_vm3, %v3789_v55, %v3778_v18 }
 0x34a   :  { %v3792_v44 = vsel %vm195_vm3, %v3790_v46, %v3780_v37 }
 0x34c   :  { %v3784_v40 = vpop.permute.xlu0 %3783 }
 0x34d   :  { %v3786_v52 = vpop.permute.xlu1 %3785  ;;  %v3793_v28 = vsel %vm198_vm4, %v3791_v58, %v3784_v40 }
 0x34e   :  { %v3794_v53 = vsel %vm198_vm4, %v3792_v44, %v3786_v52 }
 0x34f   :  { %7715 = vmatpush3.msra.mxu0 %v3794_v53 }
 0x350   :  { %7716 = vmatprep.subr.mxu0 %v10664_v12  ;;  %v3871_v35 = vpop.permute.xlu0 %3870  ;;  %v2538_v47 = vpop.f32.mrf.mxu0 }
 0x351   :  { %v3873_v54 = vpop.permute.xlu1 %3872  ;;  %7717 = vmatpush3.msra.mxu0 %v3793_v28  ;;  %2769 = vrot.lane.b32.xlu0 %v2538_v47, %s7973_s23 }
 0x352   :  { %v7636_v62 = vpop.f32.mrf.mxu0  ;;  %7728 = vmatprep.subr.mxu0 %v10664_v12  ;;  %7719 = vmatmul.mubr.msk.f32.vlgmr.msra.gmra.mxu0 %vm202_vm5, %v7229_v10  ;;  %v7231_v10 = vld [vmem:[%s10584_s0 + $0x88] sm:$0xf] }
 0x353   :  { %7732 = vmatprep.mubr.msk.f32.mxu0 %vm7983_vm1, %v10664_v12 }
 0x354   :  { %v3877_v56 = vpop.permute.xlu0 %3876 }
 0x355   :  { %v3879_v24 = vpop.permute.xlu1 %3878  ;;  %1020 = vrot.lane.b32.xlu0 %v9389_v60, %s7972_s22  ;;  %v3888_v7 = vsel %vm192_vm2, %v3871_v35, %v3877_v56 }
 0x356   :  { %v3889_v27 = vsel %vm192_vm2, %v3873_v54, %v3879_v24  ;;  %v3890_v29 = vsel %vm195_vm3, %v3888_v7, %v10721_v2 }
 0x357   :  { %v3891_v8 = vsel %vm195_vm3, %v3889_v27, %v10722_v20 }
 0x358   :  { %v3883_v22 = vpop.permute.xlu0 %3882 }
 0x359   :  { %v3885_v38 = vpop.permute.xlu1 %3884  ;;  %v3892_v63 = vsel %vm198_vm4, %v3890_v29, %v3883_v22 }
 0x35a   :  { %v3893_v15 = vsel %vm198_vm4, %v3891_v8, %v3885_v38 }
 0x35b   :  { %7722 = vmatpush3.msra.mxu1 %v3893_v15 }
 0x35c   :  { %7723 = vmatprep.subr.mxu1 %v10664_v12  ;;  %v3970_v0 = vpop.permute.xlu0 %3969 }
 0x35d   :  { %v3972_v60 = vpop.permute.xlu1 %3971  ;;  %7724 = vmatpush3.msra.mxu1 %v3892_v63 }
 0x35e   :  { %7735 = vmatprep.subr.mxu1 %v10664_v12  ;;  %7726 = vmatmul.mubr.msk.f32.vlgmr.msra.gmra.mxu1 %vm202_vm5, %v7231_v10 }
 0x35f   :  { %7739 = vmatprep.mubr.msk.f32.mxu1 %vm7983_vm1, %v10664_v12 }
 0x361   :  { %v9534_v42 = vpop.permute.xlu1 %1877 }
 0x365   :  { %v9536_v48 = vpop.permute.xlu1 %1885 }
 0x367   :  { %v9538_v50 = vpop.f32.mrf.mxu1 }
 0x369   :  { %v1001_v31 = vpop.permute.xlu1 %1000  ;;  %v7643_v51 = vpop.f32.mrf.mxu1 }
 0x36d   :  { %v9540_v17 = vpop.permute.xlu1 %1893 }
 0x371   :  { %v9542_v19 = vpop.permute.xlu1 %1901 }
 0x375   :  { %v1009_v13 = vpop.permute.xlu1 %1008 }
 0x379   :  { %v3978_v9 = vpop.permute.xlu1 %3977 }
 0x37a   :  { %v2748_v1 = vpop.f32.mrf.mxu0  ;;  %v3988_v25 = vsel %vm192_vm2, %v3972_v60, %v3978_v9 }
 0x37b   :  { %2777 = vrot.lane.b32.xlu0 %v2748_v1, %s7972_s22 }
 0x37c   :  { %v7650_v45 = vpop.f32.mrf.mxu0 }
 0x37d   :  { %v1017_v30 = vpop.permute.xlu1 %1016 }
 0x37f   :  { %3981 = vrot.lane.b32.xlu0 %v10721_v2, %s7966_s17 }
 0x381   :  { %v3984_v14 = vpop.permute.xlu1 %3983 }
 0x382   :  { %v3990_v61 = vsel %vm195_vm3, %v3988_v25, %v3984_v14 }
 0x383   :  { %1881 = vrot.lane.b32.xlu0 %v9410_v6, %s7992_s8  ;;  %v3992_v36 = vsel %vm198_vm4, %v3990_v61, %v9312_v3 }
 0x384   :  { %7729 = vmatpush3.msra.mxu0 %v3992_v36 }
 0x385   :  { %7730 = vmatprep.subr.mxu0 %v10664_v12 }
 0x387   :  { %1889 = vrot.lane.b32.xlu0 %v9422_v16, %s7984_s5 }
 0x389   :  { %v9556_v32 = vpop.f32.mrf.mxu1 }
 0x38b   :  { %1897 = vrot.lane.b32.xlu0 %v9432_v59, %s7965_s16  ;;  %v7657_v5 = vpop.f32.mrf.mxu1  ;;  %v3976_v59 = vpop.permute.xlu0 %3975 }
 0x38c   :  { %v3987_v29 = vsel %vm192_vm2, %v3970_v0, %v3976_v59 }
 0x38f   :  { %4068 = vrot.lane.b32.xlu0 %v10724_v34, %s7972_s22  ;;  %v997_v41 = vpop.permute.xlu0 %996 }
 0x390   :  { %v1023_v44 = vsel %vm202_vm5, %v9318_v43, %v997_v41 }
 0x391   :  { %v1024_v55 = vsel %vm30_vm0, %v1023_v44, %v1001_v31  ;;  %v7233_v31 = vld [vmem:[%s10584_s0 + $0x8c] sm:$0xf] }
 0x393   :  { %4074 = vrot.lane.b32.xlu0 %v10719_v49, %s7970_s20  ;;  %v1005_v18 = vpop.permute.xlu0 %1004 }
 0x394   :  { %v1026_v28 = vsel %vm1025_vm6, %v1024_v55, %v1005_v18 }
 0x395   :  { %v1028_v43 = vsel %vm1027_vm7, %v1026_v28, %v1009_v13  ;;  %v1904_v13 = vsel %vm202_vm5, %v9407_v26, %v9534_v42 }
 0x397   :  { %4080 = vrot.lane.b32.xlu0 %v10721_v2, %s7968_s19  ;;  %v9572_v46 = vpop.permute.xlu0 %2753 }
 0x399   :  { %v2994_v6 = vpop.f32.mrf.mxu0 }
 0x39a   :  { %3629 = vrot.lane.b32.xlu1 %v2994_v6, %s7996_s14 }
 0x39b   :  { %4086 = vrot.lane.b32.xlu0 %v10723_v11, %s7966_s17  ;;  %v7664_v16 = vpop.f32.mrf.mxu0  ;;  %v1013_v40 = vpop.permute.xlu0 %1012 }
 0x39c   :  { %v1030_v47 = vsel %vm1029_vm8, %v1028_v43, %v1013_v40 }
 0x39d   :  { %v1032_v54 = vsel %vm1031_vm9, %v1030_v47, %v1017_v30 }
 0x39f   :  { %4173 = vrot.lane.b32.xlu0 %v10724_v34, %s7974_s24 }
 0x3a1   :  { %v9578_v58 = vpop.permute.xlu0 %2761 }
 0x3a9   :  { %v3099_v21 = vpop.f32.mrf.mxu1 }
 0x3aa   :  { %3633 = vrot.lane.b32.xlu0 %v3099_v21, %s7992_s8 }
 0x3ab   :  { %v7671_v37 = vpop.f32.mrf.mxu1 }
 0x3b9   :  { %v3204_v52 = vpop.f32.mrf.mxu0 }
 0x3ba   :  { %3637 = vrot.lane.b32.xlu1 %v3204_v52, %s7988_s9 }
 0x3bb   :  { %v7678_v53 = vpop.f32.mrf.mxu0 }
 0x3c3   :  { %v9588_v35 = vpop.permute.xlu0 %2769 }
 0x3c7   :  { %v1021_v62 = vpop.permute.xlu0 %1020 }
 0x3c8   :  { %v1034_v56 = vsel %vm1033_vm10, %v1032_v54, %v1021_v62  ;;  %v2780_v54 = vsel %vm202_vm5, %v9439_v57, %v9572_v46 }
 0x3c9   :  { %v3309_v24 = vpop.f32.mrf.mxu1  ;;  %1035 = vst [vmem:[%s10585_s3] sm:$0xf] %v1034_v56 }
 0x3ca   :  { %3641 = vrot.lane.b32.xlu0 %v3309_v24, %s7984_s5 }
 0x3cb   :  { %v7685_v27 = vpop.f32.mrf.mxu1 }
 0x3d9   :  { %v3414_v7 = vpop.f32.mrf.mxu0 }
 0x3da   :  { %3645 = vrot.lane.b32.xlu1 %v3414_v7, %s7973_s23 }
 0x3db   :  { %v7692_v22 = vpop.f32.mrf.mxu0 }
 0x3e9   :  { %v3519_v8 = vpop.f32.mrf.mxu1 }
 0x3ea   :  { %3649 = vrot.lane.b32.xlu0 %v3519_v8, %s7965_s16 }
 0x3eb   :  { %v7699_v38 = vpop.f32.mrf.mxu1 }
 0x3ed   :  { %v9599_v15 = vpop.permute.xlu0 %2777 }
 0x3ee   :  { %4179 = vrot.lane.b32.xlu0 %v10719_v49, %s7972_s22 }
 0x3f1   :  { %v3982_v63 = vpop.permute.xlu0 %3981 }
 0x3f2   :  { %v3989_v60 = vsel %vm195_vm3, %v3987_v29, %v3982_v63  ;;  %4185 = vrot.lane.b32.xlu0 %v10721_v2, %s7970_s20 }
 0x3f3   :  { %v3991_v51 = vsel %vm198_vm4, %v3989_v60, %v10723_v11 }
 0x3f4   :  { %7731 = vmatpush3.msra.mxu0 %v3991_v51 }
 0x3f5   :  { %v1882_v9 = vpop.permute.xlu0 %1881  ;;  %7733 = vmatmul.mubr.msk.f32.vlgmr.msra.gmra.mxu0 %vm202_vm5, %v7233_v31  ;;  %7742 = vmatprep.subr.mxu0 %v10664_v12 }
 0x3f6   :  { %v1905_v1 = vsel %vm30_vm0, %v1904_v13, %v1882_v9  ;;  %4191 = vrot.lane.b32.xlu0 %v10723_v11, %s7968_s19  ;;  %7746 = vmatprep.mubr.msk.f32.mxu0 %vm7983_vm1, %v10664_v12 }
 0x3f7   :  { %v1906_v45 = vsel %vm1025_vm6, %v1905_v1, %v9536_v48 }
 0x3f9   :  { %v1890_v30 = vpop.permute.xlu0 %1889  ;;  %v3624_v25 = vpop.f32.mrf.mxu0 }
 0x3fa   :  { %v1907_v26 = vsel %vm1027_vm7, %v1906_v45, %v1890_v30  ;;  %3653 = vrot.lane.b32.xlu1 %v3624_v25, %s7972_s22  ;;  %4278 = vrot.lane.b32.xlu0 %v10724_v34, %s7976_s26  ;;  %v7235_v30 = vld [vmem:[%s10584_s0 + $0x90] sm:$0xf] }
 0x3fb   :  { %v7706_v42 = vpop.f32.mrf.mxu0  ;;  %v1908_v14 = vsel %vm1029_vm8, %v1907_v26, %v9540_v17 }
 0x3fd   :  { %v1898_v61 = vpop.permute.xlu0 %1897 }
 0x3fe   :  { %v1909_v36 = vsel %vm1031_vm9, %v1908_v14, %v1898_v61  ;;  %4070 = vrot.lane.b32.xlu1 %v10725_v33, %s7972_s22  ;;  %4284 = vrot.lane.b32.xlu0 %v10719_v49, %s7974_s24 }
 0x3ff   :  { %v1910_v48 = vsel %vm1033_vm10, %v1909_v36, %v9542_v19 }
 0x400   :  { %1911 = vst [vmem:[%s10585_s3 + $0x4] sm:$0xf] %v1910_v48 }
 0x401   :  { %v4069_v19 = vpop.permute.xlu0 %4068 }
 0x402   :  { %2757 = vrot.lane.b32.xlu1 %v9456_v4, %s7992_s8  ;;  %4290 = vrot.lane.b32.xlu0 %v10721_v2, %s7972_s22 }
 0x405   :  { %v4075_v5 = vpop.permute.xlu0 %4074 }
 0x406   :  { %2765 = vrot.lane.b32.xlu1 %v9487_v23, %s7984_s5  ;;  %4296 = vrot.lane.b32.xlu0 %v10723_v11, %s7970_s20  ;;  %v9682_v4 = vpop.f32.mrf.mxu1  ;;  %v4092_v1 = vsel %vm192_vm2, %v4069_v19, %v4075_v5 }
 0x409   :  { %v4081_v6 = vpop.permute.xlu0 %4080 }
 0x40a   :  { %2773 = vrot.lane.b32.xlu1 %v9538_v50, %s7965_s16  ;;  %4383 = vrot.lane.b32.xlu0 %v10724_v34, %s7978_s28  ;;  %v7713_v50 = vpop.f32.mrf.mxu1  ;;  %v4094_v45 = vsel %vm195_vm3, %v4092_v1, %v4081_v6 }
 0x40c   :  { %v3630_v59 = vpop.permute.xlu1 %3629 }
 0x40d   :  { %v4087_v0 = vpop.permute.xlu0 %4086  ;;  %v3656_v37 = vsel %vm202_vm5, %v9556_v32, %v3630_v59 }
 0x40e   :  { %4076 = vrot.lane.b32.xlu1 %v10720_v39, %s7970_s20  ;;  %4389 = vrot.lane.b32.xlu0 %v10719_v49, %s7976_s26  ;;  %v4096_v25 = vsel %vm198_vm4, %v4094_v45, %v4087_v0  ;;  %v7237_v0 = vld [vmem:[%s10584_s0 + $0x94] sm:$0xf] }
 0x411   :  { %v4174_v16 = vpop.permute.xlu0 %4173 }
 0x412   :  { %4082 = vrot.lane.b32.xlu1 %v10722_v20, %s7968_s19  ;;  %4395 = vrot.lane.b32.xlu0 %v10721_v2, %s7974_s24  ;;  %v3866_v23 = vpop.f32.mrf.mxu0 }
 0x414   :  { %v7720_v17 = vpop.f32.mrf.mxu0 }
 0x416   :  { %4088 = vrot.lane.b32.xlu1 %v9312_v3, %s7966_s17  ;;  %4401 = vrot.lane.b32.xlu0 %v10723_v11, %s7972_s22 }
 0x41a   :  { %4175 = vrot.lane.b32.xlu1 %v10725_v33, %s7974_s24  ;;  %4489 = vrot.lane.b32.xlu0 %v3866_v23, %s7996_s14 }
 0x41c   :  { %v3634_v41 = vpop.permute.xlu0 %3633 }
 0x41d   :  { %v3657_v40 = vsel %vm30_vm0, %v3656_v37, %v3634_v41 }
 0x41e   :  { %4181 = vrot.lane.b32.xlu1 %v10720_v39, %s7972_s22  ;;  %v3965_v57 = vpop.f32.mrf.mxu1 }
 0x422   :  { %4187 = vrot.lane.b32.xlu1 %v10722_v20, %s7970_s20 }
 0x426   :  { %4193 = vrot.lane.b32.xlu1 %v9312_v3, %s7968_s19 }
 0x42a   :  { %4280 = vrot.lane.b32.xlu1 %v10725_v33, %s7976_s26 }
 0x42c   :  { %v3638_v21 = vpop.permute.xlu1 %3637 }
 0x42d   :  { %v3658_v52 = vsel %vm1025_vm6, %v3657_v40, %v3638_v21 }
 0x42e   :  { %4286 = vrot.lane.b32.xlu1 %v10720_v39, %s7974_s24 }
 0x432   :  { %4292 = vrot.lane.b32.xlu1 %v10722_v20, %s7972_s22 }
 0x436   :  { %4298 = vrot.lane.b32.xlu1 %v9312_v3, %s7970_s20 }
 0x43a   :  { %4385 = vrot.lane.b32.xlu1 %v10725_v33, %s7978_s28 }
 0x43c   :  { %v3642_v18 = vpop.permute.xlu0 %3641 }
 0x43d   :  { %v3659_v53 = vsel %vm1027_vm7, %v3658_v52, %v3642_v18 }
 0x43e   :  { %4391 = vrot.lane.b32.xlu1 %v10720_v39, %s7976_s26 }
 0x442   :  { %4397 = vrot.lane.b32.xlu1 %v10722_v20, %s7974_s24 }
 0x446   :  { %4403 = vrot.lane.b32.xlu1 %v9312_v3, %s7972_s22 }
 0x44a   :  { %4493 = vrot.lane.b32.xlu1 %v3965_v57, %s7992_s8 }
 0x44c   :  { %v3646_v44 = vpop.permute.xlu1 %3645 }
 0x44d   :  { %v3660_v10 = vsel %vm1029_vm8, %v3659_v53, %v3646_v44 }
 0x45c   :  { %v3650_v55 = vpop.permute.xlu0 %3649 }
 0x45d   :  { %v3661_v28 = vsel %vm1031_vm9, %v3660_v10, %v3650_v55 }
 0x460   :  { %v4180_v22 = vpop.permute.xlu0 %4179 }
 0x461   :  { %v4197_v17 = vsel %vm192_vm2, %v4174_v16, %v4180_v22 }
 0x464   :  { %v4186_v60 = vpop.permute.xlu0 %4185 }
 0x465   :  { %v4199_v5 = vsel %vm195_vm3, %v4197_v17, %v4186_v60 }
 0x46c   :  { %v3654_v43 = vpop.permute.xlu1 %3653 }
 0x46d   :  { %v3662_v47 = vsel %vm1033_vm10, %v3661_v28, %v3654_v43  ;;  %v7239_v28 = vld [vmem:[%s10584_s0 + $0x98] sm:$0xf] }
 0x46e   :  { %3663 = vst [vmem:[%s10585_s3 + $0xc] sm:$0xf] %v3662_v47 }
 0x470   :  { %v4071_v32 = vpop.permute.xlu1 %4070 }
 0x474   :  { %v2758_v62 = vpop.permute.xlu1 %2757 }
 0x475   :  { %v2781_v56 = vsel %vm30_vm0, %v2780_v54, %v2758_v62 }
 0x476   :  { %v2782_v24 = vsel %vm1025_vm6, %v2781_v56, %v9578_v58  ;;  %v7727_v58 = vpop.f32.mrf.mxu1 }
 0x478   :  { %v2766_v27 = vpop.permute.xlu1 %2765 }
 0x479   :  { %v2783_v7 = vsel %vm1027_vm7, %v2782_v24, %v2766_v27 }
 0x47a   :  { %v2784_v8 = vsel %vm1029_vm8, %v2783_v7, %v9588_v35  ;;  %v4192_v35 = vpop.permute.xlu0 %4191 }
 0x47b   :  { %v4201_v59 = vsel %vm198_vm4, %v4199_v5, %v4192_v35 }
 0x47c   :  { %v2774_v38 = vpop.permute.xlu1 %2773 }
 0x47d   :  { %v2785_v29 = vsel %vm1031_vm9, %v2784_v8, %v2774_v38 }
 0x47e   :  { %v2786_v63 = vsel %vm1033_vm10, %v2785_v29, %v9599_v15  ;;  %v4279_v42 = vpop.permute.xlu0 %4278 }
 0x47f   :  { %2787 = vst [vmem:[%s10585_s3 + $0x8] sm:$0xf] %v2786_v63 }
 0x480   :  { %v4077_v46 = vpop.permute.xlu1 %4076 }
 0x481   :  { %v4093_v51 = vsel %vm192_vm2, %v4071_v32, %v4077_v46  ;;  %v7241_v46 = vld [vmem:[%s10584_s0 + $0x9c] sm:$0xf] }
 0x482   :  { %v4285_v61 = vpop.permute.xlu0 %4284 }
 0x483   :  { %v4302_v55 = vsel %vm192_vm2, %v4279_v42, %v4285_v61 }
 0x484   :  { %v4083_v31 = vpop.permute.xlu1 %4082 }
 0x485   :  { %v4095_v13 = vsel %vm195_vm3, %v4093_v51, %v4083_v31 }
 0x486   :  { %v4291_v6 = vpop.permute.xlu0 %4290 }
 0x487   :  { %v4304_v10 = vsel %vm195_vm3, %v4302_v55, %v4291_v6 }
 0x488   :  { %v4089_v9 = vpop.permute.xlu1 %4088 }
 0x489   :  { %v4097_v15 = vsel %vm198_vm4, %v4095_v13, %v4089_v9 }
 0x48a   :  { %7736 = vmatpush3.msra.mxu1 %v4097_v15  ;;  %v4297_v16 = vpop.permute.xlu0 %4296 }
 0x48b   :  { %7737 = vmatprep.subr.mxu1 %v10664_v12  ;;  %v4306_v43 = vsel %vm198_vm4, %v4304_v10, %v4297_v16 }
 0x48c   :  { %7738 = vmatpush3.msra.mxu1 %v4096_v25  ;;  %v4176_v26 = vpop.permute.xlu1 %4175 }
 0x48d   :  { %7740 = vmatmul.mubr.msk.f32.vlgmr.msra.gmra.mxu1 %vm202_vm5, %v7235_v30  ;;  %7749 = vmatprep.subr.mxu1 %v10664_v12 }
 0x48e   :  { %7753 = vmatprep.mubr.msk.f32.mxu1 %vm7983_vm1, %v10664_v12  ;;  %v4384_v37 = vpop.permute.xlu0 %4383 }
 0x490   :  { %v4182_v14 = vpop.permute.xlu1 %4181 }
 0x491   :  { %v4198_v48 = vsel %vm192_vm2, %v4176_v26, %v4182_v14 }
 0x492   :  { %v4390_v47 = vpop.permute.xlu0 %4389 }
 0x493   :  { %v4407_v29 = vsel %vm192_vm2, %v4384_v37, %v4390_v47  ;;  %v7243_v47 = vld [vmem:[%s10584_s0 + $0xa0] sm:$0xf] }
 0x494   :  { %v4188_v36 = vpop.permute.xlu1 %4187 }
 0x495   :  { %v4200_v23 = vsel %vm195_vm3, %v4198_v48, %v4188_v36 }
 0x496   :  { %v4396_v62 = vpop.permute.xlu0 %4395 }
 0x497   :  { %v4409_v57 = vsel %vm195_vm3, %v4407_v29, %v4396_v62 }
 0x498   :  { %v4194_v50 = vpop.permute.xlu1 %4193 }
 0x499   :  { %v4202_v19 = vsel %vm198_vm4, %v4200_v23, %v4194_v50 }
 0x49a   :  { %7743 = vmatpush3.msra.mxu0 %v4202_v19  ;;  %v4402_v22 = vpop.permute.xlu0 %4401 }
 0x49b   :  { %7744 = vmatprep.subr.mxu0 %v10664_v12  ;;  %v4411_v58 = vsel %vm198_vm4, %v4409_v57, %v4402_v22 }
 0x49c   :  { %v4281_v41 = vpop.permute.xlu1 %4280  ;;  %7745 = vmatpush3.msra.mxu0 %v4201_v59 }
 0x49d   :  { %7747 = vmatmul.mubr.msk.f32.vlgmr.msra.gmra.mxu0 %vm202_vm5, %v7237_v0  ;;  %7756 = vmatprep.subr.mxu0 %v10664_v12 }
 0x49e   :  { %7760 = vmatprep.mubr.msk.f32.mxu0 %vm7983_vm1, %v10664_v12  ;;  %v4490_v26 = vpop.permute.xlu0 %4489 }
 0x49f   :  { %v4516_v14 = vsel %vm202_vm5, %v9682_v4, %v4490_v26 }
 0x4a0   :  { %v4287_v21 = vpop.permute.xlu1 %4286 }
 0x4a1   :  { %v4303_v40 = vsel %vm192_vm2, %v4281_v41, %v4287_v21 }
 0x4a4   :  { %v4293_v18 = vpop.permute.xlu1 %4292 }
 0x4a5   :  { %v4305_v44 = vsel %vm195_vm3, %v4303_v40, %v4293_v18 }
 0x4a8   :  { %v4299_v52 = vpop.permute.xlu1 %4298 }
 0x4a9   :  { %v4307_v53 = vsel %vm198_vm4, %v4305_v44, %v4299_v52 }
 0x4aa   :  { %7750 = vmatpush3.msra.mxu1 %v4307_v53 }
 0x4ab   :  { %7751 = vmatprep.subr.mxu1 %v10664_v12 }
 0x4ac   :  { %v4386_v32 = vpop.permute.xlu1 %4385  ;;  %7752 = vmatpush3.msra.mxu1 %v4306_v43 }
 0x4ad   :  { %7754 = vmatmul.mubr.msk.f32.vlgmr.msra.gmra.mxu1 %vm202_vm5, %v7239_v28  ;;  %7763 = vmatprep.subr.mxu1 %v10664_v12 }
 0x4ae   :  { %7767 = vmatprep.mubr.msk.f32.mxu1 %vm7983_vm1, %v10664_v12 }
 0x4b0   :  { %v4392_v54 = vpop.permute.xlu1 %4391 }
 0x4b1   :  { %v4408_v27 = vsel %vm192_vm2, %v4386_v32, %v4392_v54 }
 0x4b4   :  { %v4398_v56 = vpop.permute.xlu1 %4397 }
 0x4b5   :  { %v4064_v24 = vpop.f32.mrf.mxu0  ;;  %v4410_v8 = vsel %vm195_vm3, %v4408_v27, %v4398_v56 }
 0x4b6   :  { %4497 = vrot.lane.b32.xlu0 %v4064_v24, %s7988_s9 }
 0x4b7   :  { %v7734_v7 = vpop.f32.mrf.mxu0 }
 0x4b8   :  { %v4404_v38 = vpop.permute.xlu1 %4403 }
 0x4b9   :  { %v4412_v63 = vsel %vm198_vm4, %v4410_v8, %v4404_v38 }
 0x4ba   :  { %7757 = vmatpush3.msra.mxu0 %v4412_v63 }
 0x4bb   :  { %7758 = vmatprep.subr.mxu0 %v10664_v12 }
 0x4bc   :  { %7759 = vmatpush3.msra.mxu0 %v4411_v58  ;;  %v4494_v45 = vpop.permute.xlu1 %4493  ;;  %v7245_v58 = vld [vmem:[%s10584_s0 + $0xa4] sm:$0xf] }
 0x4bd   :  { %7761 = vmatmul.mubr.msk.f32.vlgmr.msra.gmra.mxu0 %vm202_vm5, %v7241_v46  ;;  %7770 = vmatprep.subr.mxu0 %v10664_v12  ;;  %v4517_v48 = vsel %vm30_vm0, %v4516_v14, %v4494_v45 }
 0x4be   :  { %7774 = vmatprep.mubr.msk.f32.mxu0 %vm7983_vm1, %v10664_v12 }
 0x528   :  { %v4498_v61 = vpop.permute.xlu0 %4497 }
 0x529   :  { %v4518_v17 = vsel %vm1025_vm6, %v4517_v48, %v4498_v61  ;;  %v7247_v61 = vld [vmem:[%s10584_s0 + $0xa8] sm:$0xf] }
 0x54d   :  { %v4169_v60 = vpop.f32.mrf.mxu1 }
 0x54e   :  { %4501 = vrot.lane.b32.xlu1 %v4169_v60, %s7984_s5 }
 0x54f   :  { %v7741_v31 = vpop.f32.mrf.mxu1 }
 0x55d   :  { %v4274_v51 = vpop.f32.mrf.mxu0 }
 0x55e   :  { %4505 = vrot.lane.b32.xlu0 %v4274_v51, %s7973_s23 }
 0x55f   :  { %v7748_v35 = vpop.f32.mrf.mxu0 }
 0x56d   :  { %v4379_v13 = vpop.f32.mrf.mxu1 }
 0x56e   :  { %4509 = vrot.lane.b32.xlu1 %v4379_v13, %s7965_s16 }
 0x56f   :  { %v7755_v9 = vpop.f32.mrf.mxu1 }
 0x572   :  { %4524 = vrot.lane.b32.xlu1 %v10724_v34, %s7965_s16 }
 0x576   :  { %4530 = vrot.lane.b32.xlu1 %v10719_v49, %s7978_s28 }
 0x57a   :  { %4536 = vrot.lane.b32.xlu1 %v10721_v2, %s7976_s26 }
 0x57d   :  { %v4484_v1 = vpop.f32.mrf.mxu0 }
 0x57e   :  { %4513 = vrot.lane.b32.xlu0 %v4484_v1, %s7972_s22  ;;  %4542 = vrot.lane.b32.xlu1 %v10723_v11, %s7974_s24 }
 0x57f   :  { %v7762_v15 = vpop.f32.mrf.mxu0 }
 0x582   :  { %4526 = vrot.lane.b32.xlu0 %v10725_v33, %s7965_s16  ;;  %4629 = vrot.lane.b32.xlu1 %v10724_v34, %s7967_s18 }
 0x586   :  { %4532 = vrot.lane.b32.xlu0 %v10720_v39, %s7978_s28  ;;  %4635 = vrot.lane.b32.xlu1 %v10719_v49, %s7965_s16 }
 0x58a   :  { %4538 = vrot.lane.b32.xlu0 %v10722_v20, %s7976_s26  ;;  %4641 = vrot.lane.b32.xlu1 %v10721_v2, %s7978_s28 }
 0x58e   :  { %4544 = vrot.lane.b32.xlu0 %v9312_v3, %s7974_s24  ;;  %4647 = vrot.lane.b32.xlu1 %v10723_v11, %s7976_s26 }
 0x592   :  { %4631 = vrot.lane.b32.xlu0 %v10725_v33, %s7967_s18  ;;  %4734 = vrot.lane.b32.xlu1 %v10724_v34, %s7969_s2 }
 0x596   :  { %4637 = vrot.lane.b32.xlu0 %v10720_v39, %s7965_s16  ;;  %4740 = vrot.lane.b32.xlu1 %v10719_v49, %s7967_s18 }
 0x59a   :  { %4643 = vrot.lane.b32.xlu0 %v10722_v20, %s7978_s28  ;;  %4746 = vrot.lane.b32.xlu1 %v10721_v2, %s7965_s16 }
 0x59e   :  { %4649 = vrot.lane.b32.xlu0 %v9312_v3, %s7976_s26  ;;  %4752 = vrot.lane.b32.xlu1 %v10723_v11, %s7978_s28 }
 0x5a2   :  { %4736 = vrot.lane.b32.xlu0 %v10725_v33, %s7969_s2  ;;  %4839 = vrot.lane.b32.xlu1 %v10724_v34, %s7971_s21 }
 0x5a6   :  { %4742 = vrot.lane.b32.xlu0 %v10720_v39, %s7967_s18  ;;  %4845 = vrot.lane.b32.xlu1 %v10719_v49, %s7969_s2 }
 0x5aa   :  { %4748 = vrot.lane.b32.xlu0 %v10722_v20, %s7965_s16  ;;  %4851 = vrot.lane.b32.xlu1 %v10721_v2, %s7967_s18 }
 0x5ae   :  { %4754 = vrot.lane.b32.xlu0 %v9312_v3, %s7978_s28  ;;  %4857 = vrot.lane.b32.xlu1 %v10723_v11, %s7965_s16 }
 0x5b2   :  { %4841 = vrot.lane.b32.xlu0 %v10725_v33, %s7971_s21  ;;  %4944 = vrot.lane.b32.xlu1 %v10724_v34, %s7973_s23 }
 0x5b6   :  { %4847 = vrot.lane.b32.xlu0 %v10720_v39, %s7969_s2  ;;  %4950 = vrot.lane.b32.xlu1 %v10719_v49, %s7971_s21 }
 0x5ba   :  { %4853 = vrot.lane.b32.xlu0 %v10722_v20, %s7967_s18  ;;  %4956 = vrot.lane.b32.xlu1 %v10721_v2, %s7969_s2 }
 0x5be   :  { %4859 = vrot.lane.b32.xlu0 %v9312_v3, %s7965_s16  ;;  %5051 = vrot.lane.b32.xlu1 %v10725_v33, %s7975_s25 }
 0x5c0   :  { %v4502_v30 = vpop.permute.xlu1 %4501 }
 0x5c1   :  { %v4519_v19 = vsel %vm1027_vm7, %v4518_v17, %v4502_v30 }
 0x5c2   :  { %4946 = vrot.lane.b32.xlu0 %v10725_v33, %s7973_s23  ;;  %4964 = vrot.lane.b32.xlu1 %v9312_v3, %s7967_s18 }
 0x5c6   :  { %4952 = vrot.lane.b32.xlu0 %v10720_v39, %s7971_s21  ;;  %5049 = vrot.lane.b32.xlu1 %v10724_v34, %s7975_s25 }
 0x5ca   :  { %4958 = vrot.lane.b32.xlu0 %v10722_v20, %s7969_s2  ;;  %5069 = vrot.lane.b32.xlu1 %v9312_v3, %s7969_s2 }
 0x5ce   :  { %5057 = vrot.lane.b32.xlu0 %v10720_v39, %s7973_s23  ;;  %5061 = vrot.lane.b32.xlu1 %v10721_v2, %s7971_s21 }
 0x5d0   :  { %v4506_v23 = vpop.permute.xlu0 %4505 }
 0x5d1   :  { %v4520_v4 = vsel %vm1029_vm8, %v4519_v19, %v4506_v23 }
 0x5d2   :  { %5063 = vrot.lane.b32.xlu0 %v10722_v20, %s7971_s21  ;;  %5162 = vrot.lane.b32.xlu1 %v10720_v39, %s7975_s25 }
 0x5d6   :  { %5055 = vrot.lane.b32.xlu0 %v10719_v49, %s7973_s23  ;;  %5168 = vrot.lane.b32.xlu1 %v10722_v20, %s7973_s23 }
 0x5da   :  { %4962 = vrot.lane.b32.xlu0 %v10723_v11, %s7967_s18  ;;  %5267 = vrot.lane.b32.xlu1 %v10720_v39, %s7977_s27 }
 0x5de   :  { %5156 = vrot.lane.b32.xlu0 %v10725_v33, %s7977_s27  ;;  %5160 = vrot.lane.b32.xlu1 %v10719_v49, %s7975_s25 }
 0x5e0   :  { %v4510_v25 = vpop.permute.xlu1 %4509 }
 0x5e1   :  { %v4521_v5 = vsel %vm1031_vm9, %v4520_v4, %v4510_v25 }
 0x5e2   :  { %5067 = vrot.lane.b32.xlu0 %v10723_v11, %s7969_s2  ;;  %5273 = vrot.lane.b32.xlu1 %v10722_v20, %s7975_s25 }
 0x5e4   :  { %v4525_v42 = vpop.permute.xlu1 %4524 }
 0x5e6   :  { %5261 = vrot.lane.b32.xlu0 %v10725_v33, %s7979_s29  ;;  %5259 = vrot.lane.b32.xlu1 %v10724_v34, %s7979_s29 }
 0x5e8   :  { %v4531_v36 = vpop.permute.xlu1 %4530 }
 0x5e9   :  { %v4548_v10 = vsel %vm192_vm2, %v4525_v42, %v4531_v36 }
 0x5ea   :  { %5154 = vrot.lane.b32.xlu0 %v10724_v34, %s7977_s27  ;;  %5279 = vrot.lane.b32.xlu1 %v9312_v3, %s7973_s23 }
 0x5ec   :  { %v4537_v50 = vpop.permute.xlu1 %4536 }
 0x5ed   :  { %v4550_v43 = vsel %vm195_vm3, %v4548_v10, %v4537_v50 }
 0x5ee   :  { %5174 = vrot.lane.b32.xlu0 %v9312_v3, %s7971_s21  ;;  %5271 = vrot.lane.b32.xlu1 %v10721_v2, %s7975_s25 }
 0x5f0   :  { %v4514_v6 = vpop.permute.xlu0 %4513  ;;  %v4543_v0 = vpop.permute.xlu1 %4542 }
 0x5f1   :  { %v4522_v59 = vsel %vm1033_vm10, %v4521_v5, %v4514_v6  ;;  %v4552_v32 = vsel %vm198_vm4, %v4550_v43, %v4543_v0 }
 0x5f2   :  { %4523 = vst [vmem:[%s10585_s3 + $0x10] sm:$0xf] %v4522_v59  ;;  %5166 = vrot.lane.b32.xlu0 %v10721_v2, %s7973_s23  ;;  %5408 = vrot.lane.b32.xlu1 %v10720_v39, %s7979_s29 }
 0x5f4   :  { %v4527_v41 = vpop.permute.xlu0 %4526  ;;  %v4630_v16 = vpop.permute.xlu1 %4629 }
 0x5f6   :  { %5265 = vrot.lane.b32.xlu0 %v10719_v49, %s7977_s27  ;;  %5414 = vrot.lane.b32.xlu1 %v10722_v20, %s7977_s27 }
 0x5f8   :  { %v4533_v21 = vpop.permute.xlu0 %4532  ;;  %v4636_v18 = vpop.permute.xlu1 %4635 }
 0x5f9   :  { %v4549_v44 = vsel %vm192_vm2, %v4527_v41, %v4533_v21  ;;  %v4653_v63 = vsel %vm192_vm2, %v4630_v16, %v4636_v18  ;;  %v7249_v18 = vld [vmem:[%s10584_s0 + $0xac] sm:$0xf] }
 0x5fa   :  { %5172 = vrot.lane.b32.xlu0 %v10723_v11, %s7971_s21  ;;  %5513 = vrot.lane.b32.xlu1 %v10720_v39, %s7984_s5  ;;  %s10728_s21 = smov 40  }
 0x5fc   :  { %v4539_v37 = vpop.permute.xlu0 %4538  ;;  %v4642_v40 = vpop.permute.xlu1 %4641 }
 0x5fd   :  { %v4551_v52 = vsel %vm195_vm3, %v4549_v44, %v4539_v37  ;;  %v4655_v46 = vsel %vm195_vm3, %v4653_v63, %v4642_v40 }
 0x5fe   :  { %5402 = vrot.lane.b32.xlu0 %v10725_v33, %s7984_s5  ;;  %5406 = vrot.lane.b32.xlu1 %v10719_v49, %s7979_s29 }
 0x600   :  { %v4545_v55 = vpop.permute.xlu0 %4544  ;;  %v4648_v53 = vpop.permute.xlu1 %4647 }
 0x601   :  { %v4553_v28 = vsel %vm198_vm4, %v4551_v52, %v4545_v55  ;;  %v4657_v60 = vsel %vm198_vm4, %v4655_v46, %v4648_v53 }
 0x602   :  { %5277 = vrot.lane.b32.xlu0 %v10723_v11, %s7973_s23  ;;  %7764 = vmatpush3.msra.mxu1 %v4553_v28 }
 0x603   :  { %5519 = vrot.lane.b32.xlu1 %v10722_v20, %s7979_s29  ;;  %7765 = vmatprep.subr.mxu1 %v10664_v12 }
 0x604   :  { %v4632_v54 = vpop.permute.xlu0 %4631  ;;  %7766 = vmatpush3.msra.mxu1 %v4552_v32  ;;  %v4735_v62 = vpop.permute.xlu1 %4734 }
 0x605   :  { %7777 = vmatprep.subr.mxu1 %v10664_v12  ;;  %7768 = vmatmul.mubr.msk.f32.vlgmr.msra.gmra.mxu1 %vm202_vm5, %v7243_v47 }
 0x606   :  { %5507 = vrot.lane.b32.xlu0 %v10725_v33, %s7985_s6  ;;  %7781 = vmatprep.mubr.msk.f32.mxu1 %vm7983_vm1, %v10664_v12 }
 0x607   :  { %5505 = vrot.lane.b32.xlu1 %v10724_v34, %s7985_s6 }
 0x608   :  { %v4638_v56 = vpop.permute.xlu0 %4637  ;;  %v4741_v24 = vpop.permute.xlu1 %4740 }
 0x609   :  { %v4654_v22 = vsel %vm192_vm2, %v4632_v54, %v4638_v56  ;;  %v4758_v26 = vsel %vm192_vm2, %v4735_v62, %v4741_v24 }
 0x60a   :  { %5400 = vrot.lane.b32.xlu0 %v10724_v34, %s7984_s5 }
 0x60b   :  { %5525 = vrot.lane.b32.xlu1 %v9312_v3, %s7977_s27 }
 0x60c   :  { %v4644_v27 = vpop.permute.xlu0 %4643  ;;  %v4747_v7 = vpop.permute.xlu1 %4746 }
 0x60d   :  { %v4656_v8 = vsel %vm195_vm3, %v4654_v22, %v4644_v27  ;;  %v4760_v14 = vsel %vm195_vm3, %v4758_v26, %v4747_v7 }
 0x60e   :  { %5420 = vrot.lane.b32.xlu0 %v9312_v3, %s7975_s25 }
 0x60f   :  { %5517 = vrot.lane.b32.xlu1 %v10721_v2, %s7979_s29 }
 0x610   :  { %v4650_v38 = vpop.permute.xlu0 %4649  ;;  %v4753_v29 = vpop.permute.xlu1 %4752 }
 0x611   :  { %v4658_v57 = vsel %vm198_vm4, %v4656_v8, %v4650_v38  ;;  %v4762_v36 = vsel %vm198_vm4, %v4760_v14, %v4753_v29 }
 0x612   :  { %5412 = vrot.lane.b32.xlu0 %v10721_v2, %s7977_s27  ;;  %7771 = vmatpush3.msra.mxu0 %v4658_v57 }
 0x613   :  { %5618 = vrot.lane.b32.xlu1 %v10720_v39, %s7985_s6  ;;  %7772 = vmatprep.subr.mxu0 %v10664_v12 }
 0x614   :  { %v4737_v31 = vpop.permute.xlu0 %4736  ;;  %7773 = vmatpush3.msra.mxu0 %v4657_v60  ;;  %v4840_v51 = vpop.permute.xlu1 %4839 }
 0x615   :  { %7784 = vmatprep.subr.mxu0 %v10664_v12  ;;  %7775 = vmatmul.mubr.msk.f32.vlgmr.msra.gmra.mxu0 %vm202_vm5, %v7245_v58  ;;  %v7251_v58 = vld [vmem:[%s10584_s0 + $0xb0] sm:$0xf] }
 0x616   :  { %5511 = vrot.lane.b32.xlu0 %v10719_v49, %s7984_s5  ;;  %7788 = vmatprep.mubr.msk.f32.mxu0 %vm7983_vm1, %v10664_v12 }
 0x617   :  { %5624 = vrot.lane.b32.xlu1 %v10722_v20, %s7984_s5 }
 0x618   :  { %v4743_v35 = vpop.permute.xlu0 %4742  ;;  %v4846_v13 = vpop.permute.xlu1 %4845 }
 0x619   :  { %v4759_v15 = vsel %vm192_vm2, %v4737_v31, %v4743_v35  ;;  %v4863_v41 = vsel %vm192_vm2, %v4840_v51, %v4846_v13 }
 0x61a   :  { %5418 = vrot.lane.b32.xlu0 %v10723_v11, %s7975_s25 }
 0x61b   :  { %5723 = vrot.lane.b32.xlu1 %v10720_v39, %s7986_s7 }
 0x61c   :  { %v4749_v9 = vpop.permute.xlu0 %4748  ;;  %v4852_v1 = vpop.permute.xlu1 %4851 }
 0x61d   :  { %v4761_v45 = vsel %vm195_vm3, %v4759_v15, %v4749_v9  ;;  %v4865_v21 = vsel %vm195_vm3, %v4863_v41, %v4852_v1  ;;  %v7253_v15 = vld [vmem:[%s10584_s0 + $0xb4] sm:$0xf] }
 0x61e   :  { %5612 = vrot.lane.b32.xlu0 %v10725_v33, %s7986_s7 }
 0x61f   :  { %5616 = vrot.lane.b32.xlu1 %v10719_v49, %s7985_s6 }
 0x620   :  { %v4755_v30 = vpop.permute.xlu0 %4754  ;;  %v4858_v25 = vpop.permute.xlu1 %4857 }
 0x621   :  { %v4763_v42 = vsel %vm198_vm4, %v4761_v45, %v4755_v30  ;;  %v4867_v37 = vsel %vm198_vm4, %v4865_v21, %v4858_v25 }
 0x622   :  { %5523 = vrot.lane.b32.xlu0 %v10723_v11, %s7977_s27  ;;  %7778 = vmatpush3.msra.mxu1 %v4763_v42  ;;  %s10726_s27 = smov 52  }
 0x623   :  { %5729 = vrot.lane.b32.xlu1 %v10722_v20, %s7985_s6  ;;  %7779 = vmatprep.subr.mxu1 %v10664_v12 }
 0x624   :  { %v4842_v48 = vpop.permute.xlu0 %4841  ;;  %7780 = vmatpush3.msra.mxu1 %v4762_v36  ;;  %v10000_v23 = vpop.permute.xlu1 %4944 }
 0x625   :  { %7791 = vmatprep.subr.mxu1 %v10664_v12  ;;  %7782 = vmatmul.mubr.msk.f32.vlgmr.msra.gmra.mxu1 %vm202_vm5, %v7247_v61 }
 0x626   :  { %5717 = vrot.lane.b32.xlu0 %v10725_v33, %s10726_s27  ;;  %7795 = vmatprep.mubr.msk.f32.mxu1 %vm7983_vm1, %v10664_v12 }
 0x627   :  { %5715 = vrot.lane.b32.xlu1 %v10724_v34, %s10726_s27 }
 0x628   :  { %v4848_v50 = vpop.permute.xlu0 %4847  ;;  %v4951_v17 = vpop.permute.xlu1 %4950 }
 0x629   :  { %v4864_v5 = vsel %vm192_vm2, %v4842_v48, %v4848_v50  ;;  %v4968_v38 = vsel %vm192_vm2, %v10000_v23, %v4951_v17 }
 0x62a   :  { %5610 = vrot.lane.b32.xlu0 %v10724_v34, %s7986_s7 }
 0x62b   :  { %5735 = vrot.lane.b32.xlu1 %v9312_v3, %s7984_s5 }
 0x62c   :  { %v4854_v19 = vpop.permute.xlu0 %4853  ;;  %v4957_v4 = vpop.permute.xlu1 %4956 }
 0x62d   :  { %v4866_v6 = vsel %vm195_vm3, %v4864_v5, %v4854_v19  ;;  %v4970_v29 = vsel %vm195_vm3, %v4968_v38, %v4957_v4 }
 0x62e   :  { %5630 = vrot.lane.b32.xlu0 %v9312_v3, %s7979_s29 }
 0x62f   :  { %5727 = vrot.lane.b32.xlu1 %v10721_v2, %s7985_s6 }
 0x630   :  { %v4860_v0 = vpop.permute.xlu0 %4859  ;;  %v5052_v59 = vpop.permute.xlu1 %5051 }
 0x631   :  { %v4868_v16 = vsel %vm198_vm4, %v4866_v6, %v4860_v0 }
 0x632   :  { %5622 = vrot.lane.b32.xlu0 %v10721_v2, %s7984_s5  ;;  %7785 = vmatpush3.msra.mxu0 %v4868_v16 }
 0x633   :  { %5828 = vrot.lane.b32.xlu1 %v10720_v39, %s10726_s27  ;;  %7786 = vmatprep.subr.mxu0 %v10664_v12 }
 0x634   :  { %v4947_v40 = vpop.permute.xlu0 %4946  ;;  %7787 = vmatpush3.msra.mxu0 %v4867_v37  ;;  %v4965_v44 = vpop.permute.xlu1 %4964 }
 0x635   :  { %7798 = vmatprep.subr.mxu0 %v10664_v12  ;;  %7789 = vmatmul.mubr.msk.f32.vlgmr.msra.gmra.mxu0 %vm202_vm5, %v7249_v18  ;;  %v7255_v18 = vld [vmem:[%s10584_s0 + $0xb8] sm:$0xf] }
 0x636   :  { %5721 = vrot.lane.b32.xlu0 %v10719_v49, %s7986_s7  ;;  %7802 = vmatprep.mubr.msk.f32.mxu0 %vm7983_vm1, %v10664_v12 }
 0x637   :  { %5834 = vrot.lane.b32.xlu1 %v10722_v20, %s7986_s7 }
 0x638   :  { %v4953_v52 = vpop.permute.xlu0 %4952  ;;  %v5050_v55 = vpop.permute.xlu1 %5049 }
 0x639   :  { %v4969_v53 = vsel %vm192_vm2, %v4947_v40, %v4953_v52 }
 0x63a   :  { %5628 = vrot.lane.b32.xlu0 %v10723_v11, %s7979_s29  ;;  %s10727_s29 = smov 44  }
 0x63b   :  { %5933 = vrot.lane.b32.xlu1 %v10720_v39, %s7988_s9 }
 0x63c   :  { %v4959_v10 = vpop.permute.xlu0 %4958  ;;  %v5070_v28 = vpop.permute.xlu1 %5069 }
 0x63d   :  { %v4971_v43 = vsel %vm195_vm3, %v4969_v53, %v4959_v10 }
 0x63e   :  { %5822 = vrot.lane.b32.xlu0 %v10725_v33, %s7988_s9  ;;  %v4973_v47 = vsel %vm198_vm4, %v4971_v43, %v4965_v44 }
 0x63f   :  { %5826 = vrot.lane.b32.xlu1 %v10719_v49, %s10726_s27  ;;  %7792 = vmatpush3.msra.mxu1 %v4973_v47 }
 0x640   :  { %v5058_v32 = vpop.permute.xlu0 %5057  ;;  %v5062_v54 = vpop.permute.xlu1 %5061  ;;  %7793 = vmatprep.subr.mxu1 %v10664_v12 }
 0x641   :  { %v5074_v62 = vsel %vm192_vm2, %v5052_v59, %v5058_v32 }
 0x642   :  { %5733 = vrot.lane.b32.xlu0 %v10723_v11, %s7984_s5 }
 0x643   :  { %5939 = vrot.lane.b32.xlu1 %v10722_v20, %s10726_s27 }
 0x644   :  { %v5064_v56 = vpop.permute.xlu0 %5063  ;;  %v5163_v24 = vpop.permute.xlu1 %5162 }
 0x645   :  { %v5076_v27 = vsel %vm195_vm3, %v5074_v62, %v5064_v56 }
 0x646   :  { %5927 = vrot.lane.b32.xlu0 %v10725_v33, %s10727_s29  ;;  %v5078_v7 = vsel %vm198_vm4, %v5076_v27, %v5070_v28  ;;  %v7257_v28 = vld [vmem:[%s10584_s0 + $0xbc] sm:$0xf] }
 0x647   :  { %5925 = vrot.lane.b32.xlu1 %v10724_v34, %s10727_s29  ;;  %7799 = vmatpush3.msra.mxu0 %v5078_v7 }
 0x648   :  { %v5056_v22 = vpop.permute.xlu0 %5055  ;;  %v5169_v8 = vpop.permute.xlu1 %5168  ;;  %7800 = vmatprep.subr.mxu0 %v10664_v12 }
 0x649   :  { %v5073_v51 = vsel %vm192_vm2, %v5050_v55, %v5056_v22 }
 0x64a   :  { %5820 = vrot.lane.b32.xlu0 %v10724_v34, %s7988_s9  ;;  %v5075_v13 = vsel %vm195_vm3, %v5073_v51, %v5062_v54 }
 0x64b   :  { %5945 = vrot.lane.b32.xlu1 %v9312_v3, %s7986_s7 }
 0x64c   :  { %v4963_v63 = vpop.permute.xlu0 %4962  ;;  %v5268_v57 = vpop.permute.xlu1 %5267 }
 0x64d   :  { %v4972_v46 = vsel %vm198_vm4, %v4970_v29, %v4963_v63 }
 0x64e   :  { %5840 = vrot.lane.b32.xlu0 %v9312_v3, %s7985_s6  ;;  %7794 = vmatpush3.msra.mxu1 %v4972_v46 }
 0x64f   :  { %5937 = vrot.lane.b32.xlu1 %v10721_v2, %s10726_s27  ;;  %7805 = vmatprep.subr.mxu1 %v10664_v12 }
 0x650   :  { %v5157_v60 = vpop.permute.xlu0 %5156  ;;  %v5161_v31 = vpop.permute.xlu1 %5160  ;;  %7796 = vmatmul.mubr.msk.f32.vlgmr.msra.gmra.mxu1 %vm202_vm5, %v7251_v58 }
 0x651   :  { %7809 = vmatprep.mubr.msk.f32.mxu1 %vm7983_vm1, %v10664_v12  ;;  %v5179_v61 = vsel %vm192_vm2, %v5157_v60, %v5163_v24 }
 0x652   :  { %5832 = vrot.lane.b32.xlu0 %v10721_v2, %s7986_s7  ;;  %v5181_v23 = vsel %vm195_vm3, %v5179_v61, %v5169_v8 }
 0x653   :  { %6038 = vrot.lane.b32.xlu1 %v10720_v39, %s10727_s29 }
 0x654   :  { %v5068_v35 = vpop.permute.xlu0 %5067  ;;  %v5274_v9 = vpop.permute.xlu1 %5273 }
 0x655   :  { %v5077_v1 = vsel %vm198_vm4, %v5075_v13, %v5068_v35  ;;  %v7259_v13 = vld [vmem:[%s10584_s0 + $0xc0] sm:$0xf] }
 0x656   :  { %5931 = vrot.lane.b32.xlu0 %v10719_v49, %s7988_s9  ;;  %7801 = vmatpush3.msra.mxu0 %v5077_v1 }
 0x657   :  { %6044 = vrot.lane.b32.xlu1 %v10722_v20, %s7988_s9  ;;  %7812 = vmatprep.subr.mxu0 %v10664_v12 }
 0x658   :  { %v5262_v45 = vpop.permute.xlu0 %5261  ;;  %v5260_v30 = vpop.permute.xlu1 %5259  ;;  %7803 = vmatmul.mubr.msk.f32.vlgmr.msra.gmra.mxu0 %vm202_vm5, %v7253_v15 }
 0x659   :  { %v5284_v25 = vsel %vm192_vm2, %v5262_v45, %v5268_v57  ;;  %7816 = vmatprep.mubr.msk.f32.mxu0 %vm7983_vm1, %v10664_v12 }
 0x65a   :  { %5838 = vrot.lane.b32.xlu0 %v10723_v11, %s7985_s6  ;;  %v5286_v42 = vsel %vm195_vm3, %v5284_v25, %v5274_v9  ;;  %s10729_s6 = smov 36  }
 0x65b   :  { %6143 = vrot.lane.b32.xlu1 %v10720_v39, %s10728_s21 }
 0x65c   :  { %v5155_v26 = vpop.permute.xlu0 %5154  ;;  %v5280_v14 = vpop.permute.xlu1 %5279 }
 0x65d   :  { %v5288_v36 = vsel %vm198_vm4, %v5286_v42, %v5280_v14  ;;  %v5178_v0 = vsel %vm192_vm2, %v5155_v26, %v5161_v31  ;;  %v7261_v42 = vld [vmem:[%s10584_s0 + $0xc4] sm:$0xf] }
 0x65e   :  { %6032 = vrot.lane.b32.xlu0 %v10725_v33, %s10728_s21  ;;  %7813 = vmatpush3.msra.mxu0 %v5288_v36 }
 0x65f   :  { %6036 = vrot.lane.b32.xlu1 %v10719_v49, %s10727_s29  ;;  %7814 = vmatprep.subr.mxu0 %v10664_v12 }
 0x660   :  { %v5175_v48 = vpop.permute.xlu0 %5174  ;;  %v5272_v50 = vpop.permute.xlu1 %5271 }
 0x661   :  { %v5183_v17 = vsel %vm198_vm4, %v5181_v23, %v5175_v48 }
 0x662   :  { %5943 = vrot.lane.b32.xlu0 %v10723_v11, %s7986_s7  ;;  %7806 = vmatpush3.msra.mxu1 %v5183_v17 }
 0x663   :  { %6149 = vrot.lane.b32.xlu1 %v10722_v20, %s10727_s29  ;;  %7807 = vmatprep.subr.mxu1 %v10664_v12 }
 0x664   :  { %v5167_v19 = vpop.permute.xlu0 %5166  ;;  %v5409_v4 = vpop.permute.xlu1 %5408 }
 0x665   :  { %v5180_v59 = vsel %vm195_vm3, %v5178_v0, %v5167_v19 }
 0x666   :  { %6137 = vrot.lane.b32.xlu0 %v10725_v33, %s10729_s6 }
 0x667   :  { %6135 = vrot.lane.b32.xlu1 %v10724_v34, %s10729_s6 }
 0x668   :  { %v5266_v5 = vpop.permute.xlu0 %5265  ;;  %v5415_v6 = vpop.permute.xlu1 %5414 }
 0x669   :  { %v5283_v44 = vsel %vm192_vm2, %v5260_v30, %v5266_v5 }
 0x66a   :  { %6030 = vrot.lane.b32.xlu0 %v10724_v34, %s10728_s21  ;;  %v5285_v55 = vsel %vm195_vm3, %v5283_v44, %v5272_v50 }
 0x66b   :  { %6155 = vrot.lane.b32.xlu1 %v9312_v3, %s7988_s9 }
 0x66c   :  { %v5173_v41 = vpop.permute.xlu0 %5172  ;;  %v5514_v16 = vpop.permute.xlu1 %5513 }
 0x66d   :  { %v5182_v21 = vsel %vm198_vm4, %v5180_v59, %v5173_v41 }
 0x66e   :  { %6050 = vrot.lane.b32.xlu0 %v9312_v3, %s10726_s27  ;;  %7808 = vmatpush3.msra.mxu1 %v5182_v21 }
 0x66f   :  { %6147 = vrot.lane.b32.xlu1 %v10721_v2, %s10727_s29  ;;  %7819 = vmatprep.subr.mxu1 %v10664_v12 }
 0x670   :  { %v5403_v37 = vpop.permute.xlu0 %5402  ;;  %v5407_v40 = vpop.permute.xlu1 %5406  ;;  %7810 = vmatmul.mubr.msk.f32.vlgmr.msra.gmra.mxu1 %vm202_vm5, %v7255_v18 }
 0x671   :  { %7823 = vmatprep.mubr.msk.f32.mxu1 %vm7983_vm1, %v10664_v12  ;;  %v5425_v62 = vsel %vm192_vm2, %v5403_v37, %v5409_v4 }
 0x672   :  { %6042 = vrot.lane.b32.xlu0 %v10721_v2, %s7988_s9  ;;  %v5427_v22 = vsel %vm195_vm3, %v5425_v62, %v5415_v6  ;;  %v7265_v62 = vld [vmem:[%s10584_s0 + $0xcc] sm:$0xf] }
 0x673   :  { %6284 = vrot.lane.b32.xlu1 %v10720_v39, %s10729_s6 }
 0x674   :  { %v5278_v52 = vpop.permute.xlu0 %5277 }
 0x675   :  { %v5287_v53 = vsel %vm198_vm4, %v5285_v55, %v5278_v52  ;;  %v5520_v10 = vpop.permute.xlu1 %5519  ;;  %v7263_v55 = vld [vmem:[%s10584_s0 + $0xc8] sm:$0xf] }
 0x676   :  { %6141 = vrot.lane.b32.xlu0 %v10719_v49, %s10728_s21  ;;  %7815 = vmatpush3.msra.mxu0 %v5287_v53 }
 0x677   :  { %6290 = vrot.lane.b32.xlu1 %v10722_v20, %s10728_s21  ;;  %7826 = vmatprep.subr.mxu0 %v10664_v12 }
 0x678   :  { %v5508_v43 = vpop.permute.xlu0 %5507  ;;  %7817 = vmatmul.mubr.msk.f32.vlgmr.msra.gmra.mxu0 %vm202_vm5, %v7257_v28 }
 0x679   :  { %v5506_v47 = vpop.permute.xlu1 %5505  ;;  %7830 = vmatprep.mubr.msk.f32.mxu0 %vm7983_vm1, %v10664_v12  ;;  %v5530_v32 = vsel %vm192_vm2, %v5508_v43, %v5514_v16 }
 0x67a   :  { %6048 = vrot.lane.b32.xlu0 %v10723_v11, %s10726_s27  ;;  %v5532_v56 = vsel %vm195_vm3, %v5530_v32, %v5520_v10 }
 0x67b   :  { %6389 = vrot.lane.b32.xlu1 %v10720_v39, %s7992_s8 }
 0x67c   :  { %v5401_v54 = vpop.permute.xlu0 %5400 }
 0x67d   :  { %v5526_v24 = vpop.permute.xlu1 %5525  ;;  %v5424_v58 = vsel %vm192_vm2, %v5401_v54, %v5407_v40 }
 0x67e   :  { %v5534_v27 = vsel %vm198_vm4, %v5532_v56, %v5526_v24  ;;  %6278 = vrot.lane.b32.xlu0 %v10725_v33, %s7992_s8 }
 0x67f   :  { %6282 = vrot.lane.b32.xlu1 %v10719_v49, %s10729_s6  ;;  %7827 = vmatpush3.msra.mxu0 %v5534_v27 }
 0x680   :  { %v5421_v7 = vpop.permute.xlu0 %5420  ;;  %7828 = vmatprep.subr.mxu0 %v10664_v12 }
 0x681   :  { %v5429_v8 = vsel %vm198_vm4, %v5427_v22, %v5421_v7  ;;  %v5518_v38 = vpop.permute.xlu1 %5517 }
 0x682   :  { %6153 = vrot.lane.b32.xlu0 %v10723_v11, %s7988_s9  ;;  %7820 = vmatpush3.msra.mxu1 %v5429_v8 }
 0x683   :  { %6395 = vrot.lane.b32.xlu1 %v10722_v20, %s10729_s6  ;;  %7821 = vmatprep.subr.mxu1 %v10664_v12 }
 0x684   :  { %v5413_v29 = vpop.permute.xlu0 %5412 }
 0x685   :  { %v5619_v63 = vpop.permute.xlu1 %5618  ;;  %v5426_v60 = vsel %vm195_vm3, %v5424_v58, %v5413_v29 }
 0x686   :  { %6383 = vrot.lane.b32.xlu0 %v10725_v33, %s7993_s13 }
 0x687   :  { %6381 = vrot.lane.b32.xlu1 %v10724_v34, %s7993_s13 }
 0x688   :  { %v5512_v57 = vpop.permute.xlu0 %5511 }
 0x689   :  { %v5625_v46 = vpop.permute.xlu1 %5624  ;;  %v5529_v1 = vsel %vm192_vm2, %v5506_v47, %v5512_v57 }
 0x68a   :  { %6276 = vrot.lane.b32.xlu0 %v10724_v34, %s7992_s8  ;;  %v5531_v30 = vsel %vm195_vm3, %v5529_v1, %v5518_v38 }
 0x68b   :  { %6401 = vrot.lane.b32.xlu1 %v9312_v3, %s10728_s21 }
 0x68c   :  { %v5419_v31 = vpop.permute.xlu0 %5418 }
 0x68d   :  { %v5428_v51 = vsel %vm198_vm4, %v5426_v60, %v5419_v31  ;;  %v5724_v35 = vpop.permute.xlu1 %5723 }
 0x68e   :  { %6296 = vrot.lane.b32.xlu0 %v9312_v3, %s10727_s29  ;;  %7822 = vmatpush3.msra.mxu1 %v5428_v51 }
 0x68f   :  { %6393 = vrot.lane.b32.xlu1 %v10721_v2, %s10729_s6  ;;  %7833 = vmatprep.subr.mxu1 %v10664_v12 }
 0x690   :  { %v5613_v9 = vpop.permute.xlu0 %5612  ;;  %7824 = vmatmul.mubr.msk.f32.vlgmr.msra.gmra.mxu1 %vm202_vm5, %v7259_v13 }
 0x691   :  { %v5617_v15 = vpop.permute.xlu1 %5616  ;;  %7837 = vmatprep.mubr.msk.f32.mxu1 %vm7983_vm1, %v10664_v12  ;;  %v5635_v23 = vsel %vm192_vm2, %v5613_v9, %v5619_v63 }
 0x692   :  { %6288 = vrot.lane.b32.xlu0 %v10721_v2, %s10728_s21  ;;  %v5637_v5 = vsel %vm195_vm3, %v5635_v23, %v5625_v46  ;;  %v7269_v23 = vld [vmem:[%s10584_s0 + $0xd4] sm:$0xf] }
 0x693   :  { %6494 = vrot.lane.b32.xlu1 %v10720_v39, %s7993_s13 }
 0x694   :  { %v5524_v45 = vpop.permute.xlu0 %5523 }
 0x695   :  { %v5533_v25 = vsel %vm198_vm4, %v5531_v30, %v5524_v45  ;;  %v5730_v26 = vpop.permute.xlu1 %5729  ;;  %v7267_v30 = vld [vmem:[%s10584_s0 + $0xd0] sm:$0xf] }
 0x696   :  { %6387 = vrot.lane.b32.xlu0 %v10719_v49, %s7992_s8  ;;  %7829 = vmatpush3.msra.mxu0 %v5533_v25 }
 0x697   :  { %6500 = vrot.lane.b32.xlu1 %v10722_v20, %s7992_s8  ;;  %7840 = vmatprep.subr.mxu0 %v10664_v12 }
 0x698   :  { %v5718_v14 = vpop.permute.xlu0 %5717  ;;  %7831 = vmatmul.mubr.msk.f32.vlgmr.msra.gmra.mxu0 %vm202_vm5, %v7261_v42 }
 0x699   :  { %v5716_v61 = vpop.permute.xlu1 %5715  ;;  %7844 = vmatprep.mubr.msk.f32.mxu0 %vm7983_vm1, %v10664_v12  ;;  %v5740_v36 = vsel %vm192_vm2, %v5718_v14, %v5724_v35 }
 0x69a   :  { %6294 = vrot.lane.b32.xlu0 %v10723_v11, %s10727_s29  ;;  %v5742_v50 = vsel %vm195_vm3, %v5740_v36, %v5730_v26 }
 0x69b   :  { %6599 = vrot.lane.b32.xlu1 %v10720_v39, %s7994_s15 }
 0x69c   :  { %v5611_v48 = vpop.permute.xlu0 %5610 }
 0x69d   :  { %v5736_v17 = vpop.permute.xlu1 %5735  ;;  %v5634_v18 = vsel %vm192_vm2, %v5611_v48, %v5617_v15 }
 0x69e   :  { %v5744_v19 = vsel %vm198_vm4, %v5742_v50, %v5736_v17  ;;  %6488 = vrot.lane.b32.xlu0 %v10725_v33, %s7994_s15 }
 0x69f   :  { %6492 = vrot.lane.b32.xlu1 %v10719_v49, %s7993_s13  ;;  %7841 = vmatpush3.msra.mxu0 %v5744_v19 }
 0x6a0   :  { %v5631_v4 = vpop.permute.xlu0 %5630  ;;  %7842 = vmatprep.subr.mxu0 %v10664_v12 }
 0x6a1   :  { %v5639_v6 = vsel %vm198_vm4, %v5637_v5, %v5631_v4  ;;  %v5728_v0 = vpop.permute.xlu1 %5727 }
 0x6a2   :  { %6399 = vrot.lane.b32.xlu0 %v10723_v11, %s10728_s21  ;;  %7834 = vmatpush3.msra.mxu1 %v5639_v6 }
 0x6a3   :  { %6605 = vrot.lane.b32.xlu1 %v10722_v20, %s7993_s13  ;;  %7835 = vmatprep.subr.mxu1 %v10664_v12 }
 0x6a4   :  { %v5623_v59 = vpop.permute.xlu0 %5622 }
 0x6a5   :  { %v5829_v41 = vpop.permute.xlu1 %5828  ;;  %v5636_v37 = vsel %vm195_vm3, %v5634_v18, %v5623_v59 }
 0x6a6   :  { %6593 = vrot.lane.b32.xlu0 %v10725_v33, %s7995_s11 }
 0x6a7   :  { %6591 = vrot.lane.b32.xlu1 %v10724_v34, %s7995_s11 }
 0x6a8   :  { %v5722_v16 = vpop.permute.xlu0 %5721 }
 0x6a9   :  { %v5835_v21 = vpop.permute.xlu1 %5834  ;;  %v5739_v10 = vsel %vm192_vm2, %v5716_v61, %v5722_v16 }
 0x6aa   :  { %6486 = vrot.lane.b32.xlu0 %v10724_v34, %s7994_s15  ;;  %v5741_v47 = vsel %vm195_vm3, %v5739_v10, %v5728_v0 }
 0x6ab   :  { %6611 = vrot.lane.b32.xlu1 %v9312_v3, %s7992_s8 }
 0x6ac   :  { %v5629_v40 = vpop.permute.xlu0 %5628 }
 0x6ad   :  { %v5638_v44 = vsel %vm198_vm4, %v5636_v37, %v5629_v40  ;;  %v5934_v52 = vpop.permute.xlu1 %5933 }
 0x6ae   :  { %6506 = vrot.lane.b32.xlu0 %v9312_v3, %s10729_s6  ;;  %7836 = vmatpush3.msra.mxu1 %v5638_v44 }
 0x6af   :  { %6603 = vrot.lane.b32.xlu1 %v10721_v2, %s7993_s13  ;;  %7847 = vmatprep.subr.mxu1 %v10664_v12 }
 0x6b0   :  { %v5823_v53 = vpop.permute.xlu0 %5822  ;;  %7838 = vmatmul.mubr.msk.f32.vlgmr.msra.gmra.mxu1 %vm202_vm5, %v7263_v55 }
 0x6b1   :  { %v5827_v28 = vpop.permute.xlu1 %5826  ;;  %7851 = vmatprep.mubr.msk.f32.mxu1 %vm7983_vm1, %v10664_v12  ;;  %v5845_v22 = vsel %vm192_vm2, %v5823_v53, %v5829_v41 }
 0x6b2   :  { %6498 = vrot.lane.b32.xlu0 %v10721_v2, %s7992_s8  ;;  %v5847_v57 = vsel %vm195_vm3, %v5845_v22, %v5835_v21 }
 0x6b3   :  { %6704 = vrot.lane.b32.xlu1 %v10720_v39, %s7995_s11 }
 0x6b4   :  { %v5734_v43 = vpop.permute.xlu0 %5733 }
 0x6b5   :  { %v5743_v32 = vsel %vm198_vm4, %v5741_v47, %v5734_v43  ;;  %v5940_v54 = vpop.permute.xlu1 %5939 }
 0x6b6   :  { %6597 = vrot.lane.b32.xlu0 %v10719_v49, %s7994_s15  ;;  %7843 = vmatpush3.msra.mxu0 %v5743_v32 }
 0x6b7   :  { %6710 = vrot.lane.b32.xlu1 %v10722_v20, %s7994_s15  ;;  %7854 = vmatprep.subr.mxu0 %v10664_v12 }
 0x6b8   :  { %v5928_v56 = vpop.permute.xlu0 %5927  ;;  %7845 = vmatmul.mubr.msk.f32.vlgmr.msra.gmra.mxu0 %vm202_vm5, %v7265_v62 }
 0x6b9   :  { %v5926_v24 = vpop.permute.xlu1 %5925  ;;  %7858 = vmatprep.mubr.msk.f32.mxu0 %vm7983_vm1, %v10664_v12  ;;  %v5950_v27 = vsel %vm192_vm2, %v5928_v56, %v5934_v52  ;;  %v7273_v56 = vld [vmem:[%s10584_s0 + $0xdc] sm:$0xf] }
 0x6ba   :  { %6504 = vrot.lane.b32.xlu0 %v10723_v11, %s10729_s6  ;;  %v5952_v8 = vsel %vm195_vm3, %v5950_v27, %v5940_v54 }
 0x6bb   :  { %6809 = vrot.lane.b32.xlu1 %v10720_v39, %s7996_s14 }
 0x6bc   :  { %v5821_v7 = vpop.permute.xlu0 %5820 }
 0x6bd   :  { %v5946_v38 = vpop.permute.xlu1 %5945  ;;  %v5844_v13 = vsel %vm192_vm2, %v5821_v7, %v5827_v28 }
 0x6be   :  { %v5954_v29 = vsel %vm198_vm4, %v5952_v8, %v5946_v38  ;;  %6698 = vrot.lane.b32.xlu0 %v10725_v33, %s7996_s14 }
 0x6bf   :  { %6702 = vrot.lane.b32.xlu1 %v10719_v49, %s7995_s11  ;;  %7855 = vmatpush3.msra.mxu0 %v5954_v29 }
 0x6c0   :  { %v5841_v63 = vpop.permute.xlu0 %5840  ;;  %7856 = vmatprep.subr.mxu0 %v10664_v12 }
 0x6c1   :  { %v5849_v46 = vsel %vm198_vm4, %v5847_v57, %v5841_v63  ;;  %v5938_v58 = vpop.permute.xlu1 %5937 }
 0x6c2   :  { %6609 = vrot.lane.b32.xlu0 %v10723_v11, %s7992_s8  ;;  %7848 = vmatpush3.msra.mxu1 %v5849_v46 }
 0x6c3   :  { %6815 = vrot.lane.b32.xlu1 %v10722_v20, %s7995_s11  ;;  %7849 = vmatprep.subr.mxu1 %v10664_v12 }
 0x6c4   :  { %v5833_v60 = vpop.permute.xlu0 %5832 }
 0x6c5   :  { %v6039_v31 = vpop.permute.xlu1 %6038  ;;  %v5846_v9 = vsel %vm195_vm3, %v5844_v13, %v5833_v60 }
 0x6c6   :  { %6803 = vrot.lane.b32.xlu0 %v10725_v33, %s7982_s1 }
 0x6c7   :  { %6801 = vrot.lane.b32.xlu1 %v10724_v34, %s7982_s1 }
 0x6c8   :  { %v5932_v51 = vpop.permute.xlu0 %5931 }
 0x6c9   :  { %v6045_v35 = vpop.permute.xlu1 %6044  ;;  %v5949_v26 = vsel %vm192_vm2, %v5926_v24, %v5932_v51 }
 0x6ca   :  { %6696 = vrot.lane.b32.xlu0 %v10724_v34, %s7996_s14  ;;  %v5951_v61 = vsel %vm195_vm3, %v5949_v26, %v5938_v58 }
 0x6cb   :  { %6821 = vrot.lane.b32.xlu1 %v9312_v3, %s7994_s15 }
 0x6cc   :  { %v5839_v1 = vpop.permute.xlu0 %5838 }
 0x6cd   :  { %v5848_v15 = vsel %vm198_vm4, %v5846_v9, %v5839_v1  ;;  %v6144_v45 = vpop.permute.xlu1 %6143 }
 0x6ce   :  { %6716 = vrot.lane.b32.xlu0 %v9312_v3, %s7993_s13  ;;  %7850 = vmatpush3.msra.mxu1 %v5848_v15 }
 0x6cf   :  { %6813 = vrot.lane.b32.xlu1 %v10721_v2, %s7995_s11  ;;  %7861 = vmatprep.subr.mxu1 %v10664_v12 }
 0x6d0   :  { %v6033_v25 = vpop.permute.xlu0 %6032  ;;  %7852 = vmatmul.mubr.msk.f32.vlgmr.msra.gmra.mxu1 %vm202_vm5, %v7267_v30 }
 0x6d1   :  { %v6037_v42 = vpop.permute.xlu1 %6036  ;;  %7865 = vmatprep.mubr.msk.f32.mxu1 %vm7983_vm1, %v10664_v12  ;;  %v6055_v5 = vsel %vm192_vm2, %v6033_v25, %v6039_v31 }
 0x6d2   :  { %6708 = vrot.lane.b32.xlu0 %v10721_v2, %s7994_s15  ;;  %v6057_v16 = vsel %vm195_vm3, %v6055_v5, %v6045_v35  ;;  %v7277_v5 = vld [vmem:[%s10584_s0 + $0xe4] sm:$0xf] }
 0x6d3   :  { %6914 = vrot.lane.b32.xlu1 %v10720_v39, %s7982_s1 }
 0x6d4   :  { %v5944_v14 = vpop.permute.xlu0 %5943 }
 0x6d5   :  { %v5953_v36 = vsel %vm198_vm4, %v5951_v61, %v5944_v14  ;;  %v6150_v48 = vpop.permute.xlu1 %6149  ;;  %v4730_v28 = vpop.f32.mrf.mxu0 }
 0x6d6   :  { %6807 = vrot.lane.b32.xlu0 %v10719_v49, %s7996_s14  ;;  %7857 = vmatpush3.msra.mxu0 %v5953_v36 }
 0x6d7   :  { %6920 = vrot.lane.b32.xlu1 %v10722_v20, %s7996_s14  ;;  %7868 = vmatprep.subr.mxu0 %v10664_v12 }
 0x6d8   :  { %v6138_v50 = vpop.permute.xlu0 %6137  ;;  %7859 = vmatmul.mubr.msk.f32.vlgmr.msra.gmra.mxu0 %vm202_vm5, %v7269_v23 }
 0x6d9   :  { %v6136_v17 = vpop.permute.xlu1 %6135  ;;  %7872 = vmatprep.mubr.msk.f32.mxu0 %vm7983_vm1, %v10664_v12  ;;  %v6160_v19 = vsel %vm192_vm2, %v6138_v50, %v6144_v45 }
 0x6da   :  { %6714 = vrot.lane.b32.xlu0 %v10723_v11, %s7993_s13  ;;  %v6162_v6 = vsel %vm195_vm3, %v6160_v19, %v6150_v48 }
 0x6db   :  { %7019 = vrot.lane.b32.xlu1 %v10720_v39, %s7981_s4 }
 0x6dc   :  { %v6031_v4 = vpop.permute.xlu0 %6030 }
 0x6dd   :  { %v6156_v0 = vpop.permute.xlu1 %6155  ;;  %v6054_v52 = vsel %vm192_vm2, %v6031_v4, %v6037_v42  ;;  %v7275_v42 = vld [vmem:[%s10584_s0 + $0xe0] sm:$0xf] }
 0x6de   :  { %v6164_v59 = vsel %vm198_vm4, %v6162_v6, %v6156_v0  ;;  %6908 = vrot.lane.b32.xlu0 %v10725_v33, %s7981_s4 }
 0x6df   :  { %6912 = vrot.lane.b32.xlu1 %v10719_v49, %s7982_s1  ;;  %7869 = vmatpush3.msra.mxu0 %v6164_v59 }
 0x6e0   :  { %v6051_v41 = vpop.permute.xlu0 %6050  ;;  %7870 = vmatprep.subr.mxu0 %v10664_v12 }
 0x6e1   :  { %v6059_v39 = vsel %vm198_vm4, %v6057_v16, %v6051_v41  ;;  %v6148_v21 = vpop.permute.xlu1 %6147 }
 0x6e2   :  { %6819 = vrot.lane.b32.xlu0 %v10723_v11, %s7994_s15  ;;  %7862 = vmatpush3.msra.mxu1 %v6059_v39 }
 0x6e3   :  { %7025 = vrot.lane.b32.xlu1 %v10722_v20, %s7982_s1  ;;  %7863 = vmatprep.subr.mxu1 %v10664_v12 }
 0x6e4   :  { %v6043_v18 = vpop.permute.xlu0 %6042 }
 0x6e5   :  { %v6285_v37 = vpop.permute.xlu1 %6284  ;;  %v6056_v20 = vsel %vm195_vm3, %v6054_v52, %v6043_v18 }
 0x6e6   :  { %7013 = vrot.lane.b32.xlu0 %v10725_v33, %s7980_s30  ;;  %v7271_v33 = vld [vmem:[%s10584_s0 + $0xd8] sm:$0xf] }
 0x6e7   :  { %7011 = vrot.lane.b32.xlu1 %v10724_v34, %s7980_s30 }
 0x6e8   :  { %v6142_v40 = vpop.permute.xlu0 %6141 }
 0x6e9   :  { %v6291_v44 = vpop.permute.xlu1 %6290  ;;  %v6159_v47 = vsel %vm192_vm2, %v6136_v17, %v6142_v40 }
 0x6ea   :  { %6906 = vrot.lane.b32.xlu0 %v10724_v34, %s7981_s4  ;;  %v7776_v34 = vpop.f32.mrf.mxu0  ;;  %v6161_v62 = vsel %vm195_vm3, %v6159_v47, %v6148_v21 }
 0x6eb   :  { %7031 = vrot.lane.b32.xlu1 %v9312_v3, %s7996_s14 }
 0x6ec   :  { %v6049_v55 = vpop.permute.xlu0 %6048 }
 0x6ed   :  { %v6058_v53 = vsel %vm198_vm4, %v6056_v20, %v6049_v55  ;;  %v6390_v10 = vpop.permute.xlu1 %6389 }
 0x6ee   :  { %6926 = vrot.lane.b32.xlu0 %v9312_v3, %s7995_s11  ;;  %7864 = vmatpush3.msra.mxu1 %v6058_v53  ;;  %v10386_v3 = vpop.f32.mrf.mxu1 }
 0x6ef   :  { %7023 = vrot.lane.b32.xlu1 %v10721_v2, %s7982_s1  ;;  %7875 = vmatprep.subr.mxu1 %v10664_v12 }
 0x6f0   :  { %v6279_v43 = vpop.permute.xlu0 %6278  ;;  %7866 = vmatmul.mubr.msk.f32.vlgmr.msra.gmra.mxu1 %vm202_vm5, %v7271_v33 }
 0x6f1   :  { %v6283_v32 = vpop.permute.xlu1 %6282  ;;  %7879 = vmatprep.mubr.msk.f32.mxu1 %vm7983_vm1, %v10664_v12  ;;  %v6301_v46 = vsel %vm192_vm2, %v6279_v43, %v6285_v37 }
 0x6f2   :  { %6918 = vrot.lane.b32.xlu0 %v10721_v2, %s7996_s14  ;;  %v7769_v2 = vpop.f32.mrf.mxu1  ;;  %v6303_v35 = vsel %vm195_vm3, %v6301_v46, %v6291_v44 }
 0x6f3   :  { %5365 = vrot.lane.b32.xlu1 %v4730_v28, %s7996_s14 }
 0x6f4   :  { %v6154_v54 = vpop.permute.xlu0 %6153  ;;  %v10402_v38 = vpop.f32.mrf.mxu1 }
 0x6f5   :  { %v6163_v24 = vsel %vm198_vm4, %v6161_v62, %v6154_v54  ;;  %v6396_v27 = vpop.permute.xlu1 %6395  ;;  %v10394_v7 = vpop.f32.mrf.mxu0  ;;  %v7279_v62 = vld [vmem:[%s10584_s0 + $0xe8] sm:$0xf] }
 0x6f6   :  { %7017 = vrot.lane.b32.xlu0 %v10719_v49, %s7981_s4  ;;  %7871 = vmatpush3.msra.mxu0 %v6163_v24  ;;  %v7783_v49 = vpop.f32.mrf.mxu1 }
 0x6f7   :  { %7882 = vmatprep.subr.mxu0 %v10664_v12  ;;  %7873 = vmatmul.mubr.msk.f32.vlgmr.msra.gmra.mxu0 %vm202_vm5, %v7273_v56  ;;  %v7790_v22 = vpop.f32.mrf.mxu0 }
 0x6f8   :  { %v6384_v8 = vpop.permute.xlu0 %6383  ;;  %7886 = vmatprep.mubr.msk.f32.mxu0 %vm7983_vm1, %v10664_v12 }
 0x6f9   :  { %v6382_v29 = vpop.permute.xlu1 %6381  ;;  %v6406_v63 = vsel %vm192_vm2, %v6384_v8, %v6390_v10 }
 0x6fa   :  { %6924 = vrot.lane.b32.xlu0 %v10723_v11, %s7995_s11  ;;  %v6408_v58 = vsel %vm195_vm3, %v6406_v63, %v6396_v27 }
 0x6fc   :  { %v6277_v57 = vpop.permute.xlu0 %6276 }
 0x6fd   :  { %v6402_v60 = vpop.permute.xlu1 %6401  ;;  %v6300_v25 = vsel %vm192_vm2, %v6277_v57, %v6283_v32  ;;  %v7281_v57 = vld [vmem:[%s10584_s0 + $0xec] sm:$0xf] }
 0x6fe   :  { %v6410_v31 = vsel %vm198_vm4, %v6408_v58, %v6402_v60  ;;  %7029 = vrot.lane.b32.xlu0 %v10723_v11, %s7996_s14 }
 0x6ff   :  { %7883 = vmatpush3.msra.mxu0 %v6410_v31 }
 0x700   :  { %v6297_v51 = vpop.permute.xlu0 %6296  ;;  %7884 = vmatprep.subr.mxu0 %v10664_v12 }
 0x701   :  { %v6305_v13 = vsel %vm198_vm4, %v6303_v35, %v6297_v51  ;;  %v6394_v9 = vpop.permute.xlu1 %6393 }
 0x702   :  { %7876 = vmatpush3.msra.mxu1 %v6305_v13 }
 0x703   :  { %7877 = vmatprep.subr.mxu1 %v10664_v12 }
 0x704   :  { %v6289_v1 = vpop.permute.xlu0 %6288 }
 0x705   :  { %v6495_v15 = vpop.permute.xlu1 %6494  ;;  %v6302_v11 = vsel %vm195_vm3, %v6300_v25, %v6289_v1 }
 0x708   :  { %v6388_v45 = vpop.permute.xlu0 %6387 }
 0x709   :  { %v6501_v30 = vpop.permute.xlu1 %6500  ;;  %v6405_v23 = vsel %vm192_vm2, %v6382_v29, %v6388_v45 }
 0x70a   :  { %v6407_v4 = vsel %vm195_vm3, %v6405_v23, %v6394_v9 }
 0x70c   :  { %v6295_v26 = vpop.permute.xlu0 %6294 }
 0x70d   :  { %v6304_v14 = vsel %vm198_vm4, %v6302_v11, %v6295_v26  ;;  %v6600_v61 = vpop.permute.xlu1 %6599 }
 0x70e   :  { %7878 = vmatpush3.msra.mxu1 %v6304_v14 }
 0x70f   :  { %7889 = vmatprep.subr.mxu1 %v10664_v12  ;;  %7880 = vmatmul.mubr.msk.f32.vlgmr.msra.gmra.mxu1 %vm202_vm5, %v7275_v42 }
 0x710   :  { %v6489_v36 = vpop.permute.xlu0 %6488  ;;  %7893 = vmatprep.mubr.msk.f32.mxu1 %vm7983_vm1, %v10664_v12  ;;  %v10426_v48 = vpop.f32.mrf.mxu1 }
 0x711   :  { %v6493_v50 = vpop.permute.xlu1 %6492  ;;  %v6511_v37 = vsel %vm192_vm2, %v6489_v36, %v6495_v15 }
 0x712   :  { %v7797_v17 = vpop.f32.mrf.mxu1  ;;  %v6513_v55 = vsel %vm195_vm3, %v6511_v37, %v6501_v30 }
 0x714   :  { %v6400_v19 = vpop.permute.xlu0 %6399 }
 0x715   :  { %v6409_v6 = vsel %vm198_vm4, %v6407_v4, %v6400_v19  ;;  %v6606_v0 = vpop.permute.xlu1 %6605  ;;  %v7283_v4 = vld [vmem:[%s10584_s0 + $0xf0] sm:$0xf] }
 0x716   :  { %7885 = vmatpush3.msra.mxu0 %v6409_v6 }
 0x717   :  { %7887 = vmatmul.mubr.msk.f32.vlgmr.msra.gmra.mxu0 %vm202_vm5, %v7277_v5  ;;  %7896 = vmatprep.subr.mxu0 %v10664_v12 }
 0x718   :  { %v6594_v59 = vpop.permute.xlu0 %6593  ;;  %7900 = vmatprep.mubr.msk.f32.mxu0 %vm7983_vm1, %v10664_v12  ;;  %v10438_v41 = vpop.f32.mrf.mxu0 }
 0x719   :  { %v6592_v16 = vpop.permute.xlu1 %6591  ;;  %v6616_v39 = vsel %vm192_vm2, %v6594_v59, %v6600_v61 }
 0x71a   :  { %v7804_v21 = vpop.f32.mrf.mxu0  ;;  %v6618_v40 = vsel %vm195_vm3, %v6616_v39, %v6606_v0 }
 0x71c   :  { %v6487_v18 = vpop.permute.xlu0 %6486 }
 0x71d   :  { %v6612_v44 = vpop.permute.xlu1 %6611  ;;  %v6510_v47 = vsel %vm192_vm2, %v6487_v18, %v6493_v50 }
 0x71e   :  { %v6620_v52 = vsel %vm198_vm4, %v6618_v40, %v6612_v44  ;;  %v7285_v40 = vld [vmem:[%s10584_s0 + $0xf4] sm:$0xf] }
 0x71f   :  { %7897 = vmatpush3.msra.mxu0 %v6620_v52 }
 0x720   :  { %v6507_v20 = vpop.permute.xlu0 %6506  ;;  %7898 = vmatprep.subr.mxu0 %v10664_v12 }
 0x721   :  { %v6515_v53 = vsel %vm198_vm4, %v6513_v55, %v6507_v20  ;;  %v6604_v10 = vpop.permute.xlu1 %6603 }
 0x722   :  { %7890 = vmatpush3.msra.mxu1 %v6515_v53 }
 0x723   :  { %7891 = vmatprep.subr.mxu1 %v10664_v12 }
 0x724   :  { %v6499_v33 = vpop.permute.xlu0 %6498 }
 0x725   :  { %v6705_v28 = vpop.permute.xlu1 %6704  ;;  %v6512_v32 = vsel %vm195_vm3, %v6510_v47, %v6499_v33 }
 0x728   :  { %v6598_v34 = vpop.permute.xlu0 %6597 }
 0x729   :  { %v6711_v43 = vpop.permute.xlu1 %6710  ;;  %v6615_v22 = vsel %vm192_vm2, %v6592_v16, %v6598_v34 }
 0x72a   :  { %v6617_v49 = vsel %vm195_vm3, %v6615_v22, %v6604_v10 }
 0x72c   :  { %v6505_v54 = vpop.permute.xlu0 %6504 }
 0x72d   :  { %v6514_v56 = vsel %vm198_vm4, %v6512_v32, %v6505_v54  ;;  %v6810_v24 = vpop.permute.xlu1 %6809 }
 0x72e   :  { %7892 = vmatpush3.msra.mxu1 %v6514_v56 }
 0x72f   :  { %7894 = vmatmul.mubr.msk.f32.vlgmr.msra.gmra.mxu1 %vm202_vm5, %v7279_v62  ;;  %7903 = vmatprep.subr.mxu1 %v10664_v12 }
 0x730   :  { %v6699_v27 = vpop.permute.xlu0 %6698  ;;  %7907 = vmatprep.mubr.msk.f32.mxu1 %vm7983_vm1, %v10664_v12  ;;  %v10458_v2 = vpop.f32.mrf.mxu1 }
 0x731   :  { %v6703_v8 = vpop.permute.xlu1 %6702  ;;  %v6721_v1 = vsel %vm192_vm2, %v6699_v27, %v6705_v28 }
 0x732   :  { %v7811_v29 = vpop.f32.mrf.mxu1  ;;  %v6723_v11 = vsel %vm195_vm3, %v6721_v1, %v6711_v43 }
 0x733   :  { %v7287_v29 = vld [vmem:[%s10584_s0 + $0xf8] sm:$0xf] }
 0x734   :  { %v6610_v63 = vpop.permute.xlu0 %6609 }
 0x735   :  { %v6619_v46 = vsel %vm198_vm4, %v6617_v49, %v6610_v63  ;;  %v6816_v58 = vpop.permute.xlu1 %6815 }
 0x736   :  { %7899 = vmatpush3.msra.mxu0 %v6619_v46 }
 0x737   :  { %7901 = vmatmul.mubr.msk.f32.vlgmr.msra.gmra.mxu0 %vm202_vm5, %v7281_v57  ;;  %7910 = vmatprep.subr.mxu0 %v10664_v12 }
 0x738   :  { %v6804_v60 = vpop.permute.xlu0 %6803  ;;  %7914 = vmatprep.mubr.msk.f32.mxu0 %vm7983_vm1, %v10664_v12  ;;  %v10470_v31 = vpop.f32.mrf.mxu0 }
 0x739   :  { %v6802_v51 = vpop.permute.xlu1 %6801  ;;  %v6826_v35 = vsel %vm192_vm2, %v6804_v60, %v6810_v24 }
 0x73a   :  { %v7818_v13 = vpop.f32.mrf.mxu0  ;;  %v6828_v15 = vsel %vm195_vm3, %v6826_v35, %v6816_v58  ;;  %v7289_v58 = vld [vmem:[%s10584_s0 + $0xfc] sm:$0xf] }
 0x73c   :  { %v6697_v9 = vpop.permute.xlu0 %6696 }
 0x73d   :  { %v6822_v45 = vpop.permute.xlu1 %6821  ;;  %v6720_v50 = vsel %vm192_vm2, %v6697_v9, %v6703_v8 }
 0x73e   :  { %v6830_v30 = vsel %vm198_vm4, %v6828_v15, %v6822_v45 }
 0x73f   :  { %7911 = vmatpush3.msra.mxu0 %v6830_v30 }
 0x740   :  { %v6717_v25 = vpop.permute.xlu0 %6716  ;;  %7912 = vmatprep.subr.mxu0 %v10664_v12 }
 0x741   :  { %v6725_v26 = vsel %vm198_vm4, %v6723_v11, %v6717_v25  ;;  %v6814_v42 = vpop.permute.xlu1 %6813 }
 0x742   :  { %7904 = vmatpush3.msra.mxu1 %v6725_v26 }
 0x743   :  { %7905 = vmatprep.subr.mxu1 %v10664_v12 }
 0x744   :  { %v6709_v14 = vpop.permute.xlu0 %6708 }
 0x745   :  { %v6915_v61 = vpop.permute.xlu1 %6914  ;;  %v6722_v17 = vsel %vm195_vm3, %v6720_v50, %v6709_v14 }
 0x748   :  { %v6808_v36 = vpop.permute.xlu0 %6807 }
 0x749   :  { %v6921_v23 = vpop.permute.xlu1 %6920  ;;  %v6825_v16 = vsel %vm192_vm2, %v6802_v51, %v6808_v36 }
 0x74a   :  { %v6827_v37 = vsel %vm195_vm3, %v6825_v16, %v6814_v42 }
 0x74c   :  { %v6715_v19 = vpop.permute.xlu0 %6714 }
 0x74d   :  { %v6724_v5 = vsel %vm198_vm4, %v6722_v17, %v6715_v19  ;;  %v7020_v6 = vpop.permute.xlu1 %7019 }
 0x74e   :  { %7906 = vmatpush3.msra.mxu1 %v6724_v5 }
 0x74f   :  { %7908 = vmatmul.mubr.msk.f32.vlgmr.msra.gmra.mxu1 %vm202_vm5, %v7283_v4  ;;  %7917 = vmatprep.subr.mxu1 %v10664_v12 }
 0x750   :  { %v6909_v0 = vpop.permute.xlu0 %6908  ;;  %7921 = vmatprep.mubr.msk.f32.mxu1 %vm7983_vm1, %v10664_v12  ;;  %v10490_v59 = vpop.f32.mrf.mxu1 }
 0x751   :  { %v6913_v39 = vpop.permute.xlu1 %6912  ;;  %v6931_v34 = vsel %vm192_vm2, %v6909_v0, %v6915_v61 }
 0x752   :  { %v7825_v21 = vpop.f32.mrf.mxu1  ;;  %v6933_v62 = vsel %vm195_vm3, %v6931_v34, %v6921_v23 }
 0x754   :  { %v6820_v18 = vpop.permute.xlu0 %6819 }
 0x755   :  { %v6829_v44 = vsel %vm198_vm4, %v6827_v37, %v6820_v18  ;;  %v7026_v52 = vpop.permute.xlu1 %7025 }
 0x756   :  { %7913 = vmatpush3.msra.mxu0 %v6829_v44 }
 0x757   :  { %7915 = vmatmul.mubr.msk.f32.vlgmr.msra.gmra.mxu0 %vm202_vm5, %v7285_v40  ;;  %7924 = vmatprep.subr.mxu0 %v10664_v12 }
 0x758   :  { %v7014_v20 = vpop.permute.xlu0 %7013  ;;  %7928 = vmatprep.mubr.msk.f32.mxu0 %vm7983_vm1, %v10664_v12  ;;  %v5606_v55 = vpop.f32.mrf.mxu0 }
 0x759   :  { %v7012_v53 = vpop.permute.xlu1 %7011  ;;  %6241 = vrot.lane.b32.xlu0 %v5606_v55, %s7996_s14  ;;  %v7036_v10 = vsel %vm192_vm2, %v7014_v20, %v7020_v6 }
 0x75a   :  { %v7832_v33 = vpop.f32.mrf.mxu0  ;;  %v7038_v43 = vsel %vm195_vm3, %v7036_v10, %v7026_v52 }
 0x75c   :  { %v6907_v28 = vpop.permute.xlu0 %6906 }
 0x75d   :  { %v7032_v47 = vpop.permute.xlu1 %7031  ;;  %5369 = vrot.lane.b32.xlu0 %v10402_v38, %s7992_s8  ;;  %v6930_v22 = vsel %vm192_vm2, %v6907_v28, %v6913_v39 }
 0x75e   :  { %v7040_v32 = vsel %vm198_vm4, %v7038_v43, %v7032_v47 }
 0x75f   :  { %7925 = vmatpush3.msra.mxu0 %v7040_v32 }
 0x760   :  { %v6927_v54 = vpop.permute.xlu0 %6926  ;;  %7926 = vmatprep.subr.mxu0 %v10664_v12 }
 0x761   :  { %v6935_v56 = vsel %vm198_vm4, %v6933_v62, %v6927_v54  ;;  %v7024_v57 = vpop.permute.xlu1 %7023 }
 0x762   :  { %7918 = vmatpush3.msra.mxu1 %v6935_v56 }
 0x763   :  { %7919 = vmatprep.subr.mxu1 %v10664_v12 }
 0x764   :  { %v6919_v24 = vpop.permute.xlu0 %6918 }
 0x765   :  { %v6932_v8 = vsel %vm195_vm3, %v6930_v22, %v6919_v24  ;;  %v5366_v21 = vpop.permute.xlu1 %5365 }
 0x766   :  { %v5392_v43 = vsel %vm202_vm5, %v10386_v3, %v5366_v21 }
 0x768   :  { %v7018_v27 = vpop.permute.xlu0 %7017 }
 0x769   :  { %v7035_v63 = vsel %vm192_vm2, %v7012_v53, %v7018_v27 }
 0x76a   :  { %v7037_v46 = vsel %vm195_vm3, %v7035_v63, %v7024_v57 }
 0x76c   :  { %v6925_v38 = vpop.permute.xlu0 %6924 }
 0x76d   :  { %v6934_v49 = vsel %vm198_vm4, %v6932_v8, %v6925_v38 }
 0x76e   :  { %7920 = vmatpush3.msra.mxu1 %v6934_v49 }
 0x76f   :  { %7922 = vmatmul.mubr.msk.f32.vlgmr.msra.gmra.mxu1 %vm202_vm5, %v7287_v29 }
 0x770   :  { %v7030_v12 = vpop.permute.xlu0 %7029  ;;  %v5711_v60 = vpop.f32.mrf.mxu1 }
 0x771   :  { %v7039_v51 = vsel %vm198_vm4, %v7037_v46, %v7030_v12 }
 0x772   :  { %7927 = vmatpush3.msra.mxu0 %v7039_v51  ;;  %v7839_v35 = vpop.f32.mrf.mxu1 }
 0x773   :  { %7929 = vmatmul.mubr.msk.f32.vlgmr.msra.gmra.mxu0 %vm202_vm5, %v7289_v58 }
 0x778   :  { %v5816_v13 = vpop.f32.mrf.mxu0 }
 0x77a   :  { %v7846_v9 = vpop.f32.mrf.mxu0 }
 0x790   :  { %v5921_v1 = vpop.f32.mrf.mxu1 }
 0x792   :  { %v7853_v15 = vpop.f32.mrf.mxu1 }
 0x798   :  { %v6026_v45 = vpop.f32.mrf.mxu0 }
 0x79a   :  { %v7860_v30 = vpop.f32.mrf.mxu0 }
 0x7b0   :  { %v6131_v25 = vpop.f32.mrf.mxu1 }
 0x7b2   :  { %v7867_v11 = vpop.f32.mrf.mxu1 }
 0x7b7   :  { %v6236_v26 = vpop.f32.mrf.mxu0 }
 0x7b9   :  { %v7874_v42 = vpop.f32.mrf.mxu0 }
 0x7cb   :  { %v6242_v18 = vpop.permute.xlu0 %6241 }
 0x7cc   :  { %v6268_v3 = vsel %vm202_vm5, %v10490_v59, %v6242_v18 }
 0x7cf   :  { %v6377_v14 = vpop.f32.mrf.mxu1 }
 0x7d1   :  { %v7881_v61 = vpop.f32.mrf.mxu1 }
 0x7d7   :  { %v6482_v36 = vpop.f32.mrf.mxu0 }
 0x7d8   :  { %7117 = vrot.lane.b32.xlu1 %v6482_v36, %s7996_s14 }
 0x7d9   :  { %v7888_v23 = vpop.f32.mrf.mxu0 }
 0x7dc   :  { %6245 = vrot.lane.b32.xlu1 %v5711_v60, %s7992_s8 }
 0x7e0   :  { %5373 = vrot.lane.b32.xlu1 %v10394_v7, %s7988_s9 }
 0x7ef   :  { %v6587_v50 = vpop.f32.mrf.mxu1 }
 0x7f0   :  { %7121 = vrot.lane.b32.xlu0 %v6587_v50, %s7992_s8 }
 0x7f1   :  { %v7895_v17 = vpop.f32.mrf.mxu1 }
 0x7f4   :  { %6249 = vrot.lane.b32.xlu0 %v5816_v13, %s7988_s9 }
 0x7f7   :  { %v6692_v19 = vpop.f32.mrf.mxu0 }
 0x7f8   :  { %7125 = vrot.lane.b32.xlu1 %v6692_v19, %s7988_s9  ;;  %5377 = vrot.lane.b32.xlu0 %v10426_v48, %s7984_s5 }
 0x7f9   :  { %v7902_v4 = vpop.f32.mrf.mxu0 }
 0x7fc   :  { %6253 = vrot.lane.b32.xlu1 %v5921_v1, %s7984_s5 }
 0x800   :  { %5381 = vrot.lane.b32.xlu1 %v10438_v41, %s7973_s23 }
 0x80f   :  { %v6797_v5 = vpop.f32.mrf.mxu1 }
 0x810   :  { %7129 = vrot.lane.b32.xlu0 %v6797_v5, %s7984_s5 }
 0x811   :  { %v7909_v7 = vpop.f32.mrf.mxu1 }
 0x814   :  { %6257 = vrot.lane.b32.xlu0 %v6026_v45, %s7973_s23 }
 0x817   :  { %v6902_v6 = vpop.f32.mrf.mxu0 }
 0x818   :  { %7133 = vrot.lane.b32.xlu1 %v6902_v6, %s7973_s23  ;;  %5385 = vrot.lane.b32.xlu0 %v10458_v2, %s7965_s16  ;;  %v5370_v2 = vpop.permute.xlu0 %5369 }
 0x819   :  { %v7916_v0 = vpop.f32.mrf.mxu0  ;;  %v5393_v47 = vsel %vm30_vm0, %v5392_v43, %v5370_v2 }
 0x81c   :  { %6261 = vrot.lane.b32.xlu1 %v6131_v25, %s7965_s16 }
 0x820   :  { %5389 = vrot.lane.b32.xlu1 %v10470_v31, %s7972_s22 }
 0x82f   :  { %v7007_v48 = vpop.f32.mrf.mxu1 }
 0x830   :  { %7137 = vrot.lane.b32.xlu0 %v7007_v48, %s7965_s16 }
 0x831   :  { %v7923_v41 = vpop.f32.mrf.mxu1 }
 0x833   :  { %v7112_v16 = vpop.f32.mrf.mxu0 }
 0x834   :  { %7141 = vrot.lane.b32.xlu1 %v7112_v16, %s7972_s22  ;;  %6265 = vrot.lane.b32.xlu0 %v6236_v26, %s7972_s22 }
 0x835   :  { %v7930_v39 = vpop.f32.mrf.mxu0 }
 0x84a   :  { %v7118_v37 = vpop.permute.xlu1 %7117 }
 0x84b   :  { %v7144_v38 = vsel %vm202_vm5, %v6377_v14, %v7118_v37 }
 0x84e   :  { %v6246_v40 = vpop.permute.xlu1 %6245 }
 0x84f   :  { %v6269_v29 = vsel %vm30_vm0, %v6268_v3, %v6246_v40 }
 0x852   :  { %v5374_v52 = vpop.permute.xlu1 %5373 }
 0x853   :  { %v5394_v54 = vsel %vm1025_vm6, %v5393_v47, %v5374_v52 }
 0x862   :  { %v7122_v44 = vpop.permute.xlu0 %7121 }
 0x863   :  { %v7145_v63 = vsel %vm30_vm0, %v7144_v38, %v7122_v44 }
 0x866   :  { %v6250_v20 = vpop.permute.xlu0 %6249 }
 0x867   :  { %v6270_v57 = vsel %vm1025_vm6, %v6269_v29, %v6250_v20 }
 0x86a   :  { %v7126_v55 = vpop.permute.xlu1 %7125  ;;  %v5378_v31 = vpop.permute.xlu0 %5377 }
 0x86b   :  { %v5395_v56 = vsel %vm1027_vm7, %v5394_v54, %v5378_v31  ;;  %v7146_v12 = vsel %vm1025_vm6, %v7145_v63, %v7126_v55 }
 0x86e   :  { %v6254_v53 = vpop.permute.xlu1 %6253 }
 0x86f   :  { %v6271_v46 = vsel %vm1027_vm7, %v6270_v57, %v6254_v53 }
 0x872   :  { %v5382_v33 = vpop.permute.xlu1 %5381 }
 0x873   :  { %v5396_v24 = vsel %vm1029_vm8, %v5395_v56, %v5382_v33 }
 0x882   :  { %v7130_v10 = vpop.permute.xlu0 %7129 }
 0x883   :  { %v7147_v58 = vsel %vm1027_vm7, %v7146_v12, %v7130_v10 }
 0x886   :  { %v6258_v28 = vpop.permute.xlu0 %6257 }
 0x887   :  { %v6272_v60 = vsel %vm1029_vm8, %v6271_v46, %v6258_v28 }
 0x88a   :  { %v7134_v34 = vpop.permute.xlu1 %7133  ;;  %v5386_v62 = vpop.permute.xlu0 %5385 }
 0x88b   :  { %v5397_v27 = vsel %vm1031_vm9, %v5396_v24, %v5386_v62  ;;  %v7148_v51 = vsel %vm1029_vm8, %v7147_v58, %v7134_v34 }
 0x88e   :  { %v6262_v32 = vpop.permute.xlu1 %6261 }
 0x88f   :  { %v6273_v59 = vsel %vm1031_vm9, %v6272_v60, %v6262_v32 }
 0x892   :  { %v5390_v22 = vpop.permute.xlu1 %5389 }
 0x893   :  { %v5398_v8 = vsel %vm1033_vm10, %v5397_v27, %v5390_v22 }
 0x894   :  { %5399 = vst [vmem:[%s10585_s3 + $0x14] sm:$0xf] %v5398_v8 }
 0x8a2   :  { %v7138_v49 = vpop.permute.xlu0 %7137 }
 0x8a3   :  { %v7149_v35 = vsel %vm1031_vm9, %v7148_v51, %v7138_v49 }
 0x8a6   :  { %v7142_v13 = vpop.permute.xlu1 %7141  ;;  %v6266_v9 = vpop.permute.xlu0 %6265 }
 0x8a7   :  { %v7150_v1 = vsel %vm1033_vm10, %v7149_v35, %v7142_v13  ;;  %v6274_v15 = vsel %vm1033_vm10, %v6273_v59, %v6266_v9 }
 0x8a8   :  { %7151 = vst [vmem:[%s10585_s3 + $0x1c] sm:$0xf] %v7150_v1  ;;  %6275 = vst [vmem:[%s10585_s3 + $0x18] sm:$0xf] %v6274_v15 }

</bundles_post_ra>
